<compile_context>
chip_gen: v5e
topology: v5e:2x2
jax: 0.10.0
libtpu: 0.0.40
codegen_flags: <defaults>
</compile_context>

<pallas_src>
import functools

import jax
import jax.numpy as jnp
import numpy as np
from jax.experimental import pallas as pl
from jax.experimental.pallas import tpu as pltpu

EPS = 1e-5
MS_CFG = [(3, 1), (3, 2), (3, 3), (3, 4), ("max", 3), "1x1"]
VMEM_LIMIT = 64 * 1024 * 1024
TILE_M = 512          # row tile for the M = N*T*V gridded kernels


def _round_up(x, m):
    return ((x + m - 1) // m) * m


def _full_spec(shape):
    nd = len(shape)
    return pl.BlockSpec(shape, lambda *_: (0,) * nd)


# --------------------------- Pallas kernels ---------------------------------

def _matmul_stats_kernel(x_ref, s_ref, t_ref, w_ref, b_ref,
                         y_ref, sum_ref, sq_ref,
                         *, pre_relu, rows_total, tile_rows, need_mask):
    """y = (relu?)(x*s + t) @ W + b, tiled over rows; accumulates per-channel
    sum / sumsq of y across the (arbitrary) grid axis for exact batch-norm."""
    @pl.when(pl.program_id(0) == 0)
    def _init():
        sum_ref[...] = jnp.zeros_like(sum_ref)
        sq_ref[...] = jnp.zeros_like(sq_ref)

    z = x_ref[...] * s_ref[...] + t_ref[...]
    if pre_relu:
        z = jnp.maximum(z, 0.0)
    y = jnp.dot(z, w_ref[...], preferred_element_type=jnp.float32) + b_ref[...]
    y_ref[...] = y

    if need_mask:  # last tile may contain zero-padded rows -> exclude from stats
        row = (pl.program_id(0) * tile_rows
               + jax.lax.broadcasted_iota(jnp.int32, (tile_rows, 1), 0))
        ym = jnp.where(row < rows_total, y, 0.0)
    else:
        ym = y
    sum_ref[...] += jnp.sum(ym, axis=0, keepdims=True)
    sq_ref[...] += jnp.sum(ym * ym, axis=0, keepdims=True)


def _temporal_kernel(*refs, kinds, dils, V):
    """Fused BN affine + ReLU + temporal op per branch (grid over batch).
    The 3-tap window is built in-VMEM by shifting rows of the flattened
    (T*V, c) block by dilation*V -- no slab materialization in HBM."""
    nb = len(kinds)
    n_tc = sum(1 for k in kinds if k == "tconv")
    h_refs = refs[:nb]
    s_refs = refs[nb:2 * nb]
    t_refs = refs[2 * nb:3 * nb]
    w_refs = refs[3 * nb:3 * nb + n_tc]
    b_refs = refs[3 * nb + n_tc:3 * nb + 2 * n_tc]
    o_refs = refs[3 * nb + 2 * n_tc:]

    ti = 0
    for j, kind in enumerate(kinds):
        z = jnp.maximum(h_refs[j][0] * s_refs[j][...] + t_refs[j][...], 0.0)
        L, c = z.shape
        s = dils[j] * V                       # temporal shift in flattened rows
        zpad = jnp.zeros((s, c), jnp.float32)
        zprev = jnp.concatenate([zpad, z[:L - s, :]], axis=0)   # x[t - d]
        znext = jnp.concatenate([z[s:, :], zpad], axis=0)       # x[t + d]
        if kind == "max":
            # zero padding is exact: values are >= 0 after ReLU
            out = jnp.maximum(jnp.maximum(zprev, z), znext)
        else:
            w = w_refs[ti]
            out = (jnp.dot(zprev, w[0], preferred_element_type=jnp.float32)
                   + jnp.dot(z, w[1], preferred_element_type=jnp.float32)
                   + jnp.dot(znext, w[2], preferred_element_type=jnp.float32)
                   + b_refs[ti][...])
            ti += 1
        o_refs[j][0] = out


def _fgn_kernel(g_ref, cf_ref, sf_ref, ci_ref, si_ref,
                wr_ref, wi_ref, br_ref, bi_ref,
                o_ref, rsum_ref, rsq_ref, *, lambd):
    """Lane-dense FGN: rows = (batch, channel), lanes = L.  rfft/irfft
    (norm='ortho') are DFT matmuls; the frequency axis is zero-padded to a
    multiple of 128 (padded bins are killed by zero rows of the inverse)."""
    g = g_ref[...]                                                      # (R, L)
    xr = jnp.dot(g, cf_ref[...], preferred_element_type=jnp.float32)    # (R, Lfp)
    xi = -jnp.dot(g, sf_ref[...], preferred_element_type=jnp.float32)

    wr = wr_ref[...]                                                    # (R, 1)
    wi = wi_ref[...]
    o1r = jnp.maximum(xr * wr - xi * wi + br_ref[...], 0.0)
    o1i = jnp.maximum(xi * wr + xr * wi + bi_ref[...], 0.0)

    def soft(v):  # softshrink
        return jnp.where(v > lambd, v - lambd,
                         jnp.where(v < -lambd, v + lambd, 0.0))

    yr = soft(o1r) + xr        # residual with the rfft of the input
    yi = soft(o1i) + xi

    out = (jnp.dot(yr, ci_ref[...], preferred_element_type=jnp.float32)
           - jnp.dot(yi, si_ref[...], preferred_element_type=jnp.float32))
    o_ref[...] = out
    # per-row stats -> per-channel BN stats for the transform (no extra pass)
    rsum_ref[...] = jnp.sum(out, axis=1, keepdims=True)
    rsq_ref[...] = jnp.sum(out * out, axis=1, keepdims=True)


def _affine_kernel(y_ref, s_ref, t_ref, o_ref):
    o_ref[...] = y_ref[...] * s_ref[...] + t_ref[...]


# --------------------------- kernel wrappers ---------------------------------

def matmul_bn_stats(x, scale_in, shift_in, w, b, *, pre_relu, tile_rows=TILE_M):
    M, Cin = x.shape
    Cout = int(w.shape[1])
    tm = min(tile_rows, _round_up(M, 8))
    Mp = _round_up(M, tm)
    need_mask = Mp != M
    xp = jnp.pad(x, ((0, Mp - M), (0, 0))) if need_mask else x

    y, s, q = pl.pallas_call(
        functools.partial(_matmul_stats_kernel, pre_relu=pre_relu,
                          rows_total=M, tile_rows=tm, need_mask=need_mask),
        grid=(Mp // tm,),
        in_specs=[pl.BlockSpec((tm, Cin), lambda i: (i, 0)),
                  _full_spec((1, Cin)), _full_spec((1, Cin)),
                  _full_spec((Cin, Cout)), _full_spec((1, Cout))],
        out_specs=[pl.BlockSpec((tm, Cout), lambda i: (i, 0)),
                   _full_spec((1, Cout)), _full_spec((1, Cout))],
        out_shape=[jax.ShapeDtypeStruct((Mp, Cout), jnp.float32),
                   jax.ShapeDtypeStruct((1, Cout), jnp.float32),
                   jax.ShapeDtypeStruct((1, Cout), jnp.float32)],
        compiler_params=pltpu.CompilerParams(
            dimension_semantics=("arbitrary",),      # stats accumulate over M
            vmem_limit_bytes=VMEM_LIMIT),
    )(xp, scale_in, shift_in, w, b)
    y = y[:M] if need_mask else y
    return y, s[0], q[0]


def temporal_stage(hs, scales, shifts, wts, bts, kinds, dils, V):
    N, L, _ = hs[0].shape
    in_specs = ([pl.BlockSpec((1, L, int(h.shape[2])), lambda n: (n, 0, 0)) for h in hs]
                + [_full_spec(tuple(s.shape)) for s in scales]
                + [_full_spec(tuple(t.shape)) for t in shifts]
                + [_full_spec(tuple(w.shape)) for w in wts]
                + [_full_spec(tuple(b.shape)) for b in bts])
    out_specs = [pl.BlockSpec((1, L, int(h.shape[2])), lambda n: (n, 0, 0)) for h in hs]
    out_shape = [jax.ShapeDtypeStruct(tuple(h.shape), jnp.float32) for h in hs]
    return pl.pallas_call(
        functools.partial(_temporal_kernel, kinds=tuple(kinds),
                          dils=tuple(dils), V=V),
        grid=(N,),
        in_specs=in_specs,
        out_specs=out_specs,
        out_shape=out_shape,
        compiler_params=pltpu.CompilerParams(
            dimension_semantics=("parallel",), vmem_limit_bytes=VMEM_LIMIT),
    )(*hs, *scales, *shifts, *wts, *bts)


def _dft_matrices(L, lf_pad):
    Lf = L // 2 + 1
    n = np.arange(L)[:, None]
    k = np.arange(Lf)[None, :]
    ang = 2.0 * np.pi * n * k / L                 # (L, Lf)
    s = 1.0 / np.sqrt(L)                          # norm='ortho'
    wk = np.full((Lf,), 2.0)
    wk[0] = 1.0
    if L % 2 == 0:
        wk[-1] = 1.0                              # DC / Nyquist counted once
    cf = np.zeros((L, lf_pad), np.float32)
    sf = np.zeros((L, lf_pad), np.float32)
    ci = np.zeros((lf_pad, L), np.float32)
    si = np.zeros((lf_pad, L), np.float32)
    cf[:, :Lf] = np.cos(ang) * s
    sf[:, :Lf] = np.sin(ang) * s
    ci[:Lf, :] = (np.cos(ang) * wk[None, :] * s).T
    si[:Lf, :] = (np.sin(ang) * wk[None, :] * s).T   # sin rows at DC/Nyq are 0
    return (jnp.asarray(cf), jnp.asarray(sf), jnp.asarray(ci), jnp.asarray(si))


def fgn_stage(g, wr, wi, br, bi, *, N, lambd=0.01, tile_rows=TILE_M):
    M2, L = g.shape
    Lf = L // 2 + 1
    lf_pad = _round_up(Lf, 128)
    cf, sf, ci, si = _dft_matrices(L, lf_pad)

    tr = min(tile_rows, _round_up(M2, 8))
    M2p = _round_up(M2, tr)

    def per_row(p):  # (1, Ctot) per-channel params -> (M2p, 1), row (n, c) -> p[c]
        r = jnp.tile(p, (N, 1)).reshape(M2, 1)
        return jnp.pad(r, ((0, M2p - M2), (0, 0)))

    gp = jnp.pad(g, ((0, M2p - M2), (0, 0))) if M2p != M2 else g
    row_spec = pl.BlockSpec((tr, L), lambda i: (i, 0))
    vec_spec = pl.BlockSpec((tr, 1), lambda i: (i, 0))

    out, rsum, rsq = pl.pallas_call(
        functools.partial(_fgn_kernel, lambd=lambd),
        grid=(M2p // tr,),
        in_specs=[row_spec,
                  _full_spec(tuple(cf.shape)), _full_spec(tuple(sf.shape)),
                  _full_spec(tuple(ci.shape)), _full_spec(tuple(si.shape)),
                  vec_spec, vec_spec, vec_spec, vec_spec],
        out_specs=[row_spec, vec_spec, vec_spec],
        out_shape=[jax.ShapeDtypeStruct((M2p, L), jnp.float32),
                   jax.ShapeDtypeStruct((M2p, 1), jnp.float32),
                   jax.ShapeDtypeStruct((M2p, 1), jnp.float32)],
        compiler_params=pltpu.CompilerParams(
            dimension_semantics=("parallel",), vmem_limit_bytes=VMEM_LIMIT),
    )(gp, cf, sf, ci, si, per_row(wr), per_row(wi), per_row(br), per_row(bi))
    if M2p != M2:
        out, rsum, rsq = out[:M2], rsum[:M2], rsq[:M2]
    return out, rsum, rsq


def affine_apply(y, scale, shift, *, tile_rows=TILE_M):
    M, C = y.shape
    tm = min(tile_rows, _round_up(M, 8))
    Mp = _round_up(M, tm)
    yp = jnp.pad(y, ((0, Mp - M), (0, 0))) if Mp != M else y
    out = pl.pallas_call(
        _affine_kernel,
        grid=(Mp // tm,),
        in_specs=[pl.BlockSpec((tm, C), lambda i: (i, 0)),
                  _full_spec((1, C)), _full_spec((1, C))],
        out_specs=pl.BlockSpec((tm, C), lambda i: (i, 0)),
        out_shape=jax.ShapeDtypeStruct((Mp, C), jnp.float32),
        compiler_params=pltpu.CompilerParams(
            dimension_semantics=("parallel",), vmem_limit_bytes=VMEM_LIMIT),
    )(yp, scale, shift)
    return out[:M] if Mp != M else out


# ------------------------------- forward -------------------------------------

def msftcn_forward(x_nctv, params):
    N, Cin, T, V = x_nctv.shape
    L = T * V
    M = N * L
    branches = params["branches"]

    widths = [int(p["w1"].shape[1]) for p in branches]
    offs = [0]
    for w_ in widths[:-1]:
        offs.append(offs[-1] + w_)
    Ctot = sum(widths)

    x = jnp.transpose(x_nctv, (0, 2, 3, 1)).astype(jnp.float32).reshape(M, Cin)

    # ---- Stage A: all six branch 1x1 convs fused into one lane-dense matmul
    W1 = jnp.concatenate([p["w1"] for p in branches], axis=1)          # (Cin, Ctot)
    b1 = jnp.concatenate([p["b1"] for p in branches], axis=1)          # (1, Ctot)
    ones_in = jnp.ones((1, Cin), jnp.float32)
    zeros_in = jnp.zeros((1, Cin), jnp.float32)
    h, csum, csq = matmul_bn_stats(x, ones_in, zeros_in, W1, b1, pre_relu=False)

    # BatchNorm (batch stats) affine per channel, from in-kernel sum/sumsq
    gamma = jnp.concatenate([p["gamma"] for p in branches], axis=1)[0]
    beta = jnp.concatenate([p["beta"] for p in branches], axis=1)[0]
    mean = csum / M
    var = csq / M - mean * mean
    inv = gamma * jax.lax.rsqrt(var + EPS)
    scale = inv.reshape(1, Ctot)
    shift = (beta - mean * inv).reshape(1, Ctot)

    # ---- Stage B: fused BN + ReLU + temporal op (no slab materialization)
    h3 = h.reshape(N, L, Ctot)
    branch_h = [h3[:, :, offs[i]:offs[i] + widths[i]] for i in range(len(branches))]

    temp_in, sc_l, sh_l, wt_l, bt_l, kinds, dils, temp_idx = [], [], [], [], [], [], [], []
    for i, cfg in enumerate(MS_CFG):
        if cfg == "1x1":          # plain conv branch: no BN/ReLU/temporal op
            continue
        temp_idx.append(i)
        temp_in.append(branch_h[i])
        sc_l.append(scale[:, offs[i]:offs[i] + widths[i]])
        sh_l.append(shift[:, offs[i]:offs[i] + widths[i]])
        if cfg[0] == "max":
            kinds.append("max")
            dils.append(1)
        else:
            kinds.append("tconv")
            dils.append(int(cfg[1]))
            wt_l.append(branches[i]["wt"])
            bt_l.append(branches[i]["bt"])
    temp_out = temporal_stage(temp_in, sc_l, sh_l, wt_l, bt_l, kinds, dils, V)

    proc = list(branch_h)
    for j, i in enumerate(temp_idx):
        proc[i] = temp_out[j]

    # ---- Stage C: all branch FGN blocks fused, lane-dense along L
    g = jnp.concatenate([jnp.transpose(p_, (0, 2, 1)) for p_ in proc], axis=1)
    g = g.reshape(N * Ctot, L)
    wr = jnp.concatenate([p["fgn"]["wr"] for p in branches], axis=1)
    wi = jnp.concatenate([p["fgn"]["wi"] for p in branches], axis=1)
    br = jnp.concatenate([p["fgn"]["br"] for p in branches], axis=1)
    bi = jnp.concatenate([p["fgn"]["bi"] for p in branches], axis=1)
    fout, rsum, rsq = fgn_stage(g, wr, wi, br, bi, N=N)

    feat = jnp.transpose(fout.reshape(N, Ctot, L), (0, 2, 1)).reshape(M, Ctot)

    # ---- Stage D: transform (BN -> ReLU -> 1x1 conv); stats came from the FGN
    tp = params["transform"]
    csum1 = jnp.sum(rsum.reshape(N, Ctot), axis=0)
    csq1 = jnp.sum(rsq.reshape(N, Ctot), axis=0)
    mean1 = csum1 / M
    var1 = csq1 / M - mean1 * mean1
    inv1 = tp["g1"][0] * jax.lax.rsqrt(var1 + EPS)
    scale1 = inv1.reshape(1, Ctot)
    shift1 = (tp["b1"][0] - mean1 * inv1).reshape(1, Ctot)
    y, ysum, ysq = matmul_bn_stats(feat, scale1, shift1, tp["w"], tp["b"],
                                   pre_relu=True)

    # ---- Stage E: final BatchNorm (batch stats) as a tiled affine pass
    Cout = int(tp["w"].shape[1])
    mean2 = ysum / M
    var2 = ysq / M - mean2 * mean2
    inv2 = tp["g2"][0] * jax.lax.rsqrt(var2 + EPS)
    scale2 = inv2.reshape(1, Cout)
    shift2 = (tp["b2"][0] - mean2 * inv2).reshape(1, Cout)
    out = affine_apply(y, scale2, shift2)

    return jnp.transpose(out.reshape(N, T, V, Cout), (0, 3, 1, 2))  # (N, Cout, T, V)


# ------------------------------- params --------------------------------------

def init_params(key, in_channels, out_channels):
    num_branches = len(MS_CFG)
    mid = out_channels // num_branches
    rem = out_channels - mid * (num_branches - 1)
    scale = 0.02
    branches = []
    for i, cfg in enumerate(MS_CFG):
        c = rem if i == 0 else mid
        key, k1, k2, k3, k4, k5, k6 = jax.random.split(key, 7)
        p = {
            "w1": 0.1 * jax.random.normal(k1, (in_channels, c), jnp.float32),
            "b1": 0.1 * jax.random.normal(k2, (1, c), jnp.float32),
            "gamma": jnp.ones((1, c), jnp.float32),   # BN default init
            "beta": jnp.zeros((1, c), jnp.float32),
        }
        if isinstance(cfg, tuple) and cfg[0] != "max":
            p["wt"] = 0.1 * jax.random.normal(k3, (3, c, c), jnp.float32)
            p["bt"] = 0.1 * jax.random.normal(k4, (1, c), jnp.float32)
        w1_full = scale * jax.random.normal(k5, (2, c, c), jnp.float32)
        b1_full = scale * jax.random.normal(k6, (2, c), jnp.float32)
        p["fgn"] = {
            "wr": jnp.diagonal(w1_full[0]).reshape(1, c),
            "wi": jnp.diagonal(w1_full[1]).reshape(1, c),
            "br": b1_full[0].reshape(1, c),
            "bi": b1_full[1].reshape(1, c),
        }
        branches.append(p)
    tin = mid * (num_branches - 1) + rem
    key, k1, k2 = jax.random.split(key, 3)
    transform = {
        "g1": jnp.ones((1, tin), jnp.float32),
        "b1": jnp.zeros((1, tin), jnp.float32),
        "w": 0.1 * jax.random.normal(k1, (tin, out_channels), jnp.float32),
        "b": 0.1 * jax.random.normal(k2, (1, out_channels), jnp.float32),
        "g2": jnp.ones((1, out_channels), jnp.float32),
        "b2": jnp.zeros((1, out_channels), jnp.float32),
    }
    return {"branches": branches, "transform": transform}


# --------------------- pure-JAX reference (for verification) -----------------

def reference_forward(x_nctv, params):
    N, Cin, T, V = x_nctv.shape
    x = jnp.transpose(x_nctv, (0, 2, 3, 1)).astype(jnp.float32)

    def bn(z, gamma, beta):
        m = jnp.mean(z, axis=(0, 1, 2), keepdims=True)
        v = jnp.mean((z - m) ** 2, axis=(0, 1, 2), keepdims=True)
        return ((z - m) / jnp.sqrt(v + EPS) * gamma.reshape(1, 1, 1, -1)
                + beta.reshape(1, 1, 1, -1))

    def fgn_ref(h, fp, lambd=0.01):
        B, _, _, C = h.shape
        L = T * V
        z = h.reshape(B, L, C)
        X = jnp.fft.rfft(z, axis=1, norm="ortho")
        xr, xi = jnp.real(X), jnp.imag(X)
        o1r = jnp.maximum(xr * fp["wr"] - xi * fp["wi"] + fp["br"], 0.0)
        o1i = jnp.maximum(xi * fp["wr"] + xr * fp["wi"] + fp["bi"], 0.0)
        soft = lambda y: jnp.where(y > lambd, y - lambd,
                                   jnp.where(y < -lambd, y + lambd, 0.0))
        yr = soft(o1r) + xr
        yi = soft(o1i) + xi
        out = jnp.fft.irfft(yr + 1j * yi, n=L, axis=1, norm="ortho")
        return out.reshape(B, T, V, C)

    outs = []
    for i, cfg in enumerate(MS_CFG):
        p = params["branches"][i]
        h = jnp.einsum("ntvc,cd->ntvd", x, p["w1"]) + p["b1"].reshape(1, 1, 1, -1)
        if cfg != "1x1":
            h = jnp.maximum(bn(h, p["gamma"], p["beta"]), 0.0)
            if cfg[0] == "max":
                h = jax.lax.reduce_window(h, -jnp.inf, jax.lax.max,
                                          (1, 3, 1, 1), (1, 1, 1, 1),
                                          [(0, 0), (1, 1), (0, 0), (0, 0)])
            else:
                d = cfg[1]
                c = p["wt"].shape[1]
                w = p["wt"].reshape(3, 1, c, c)  # HWIO
                h = jax.lax.conv_general_dilated(
                    h, w, window_strides=(1, 1), padding=((d, d), (0, 0)),
                    rhs_dilation=(d, 1),
                    dimension_numbers=("NHWC", "HWIO", "NHWC"),
                ) + p["bt"].reshape(1, 1, 1, -1)
        h = fgn_ref(h, p["fgn"])
        outs.append(h)
    feat = jnp.concatenate(outs, axis=-1)
    tp = params["transform"]
    z = jnp.maximum(bn(feat, tp["g1"], tp["b1"]), 0.0)
    y = jnp.einsum("ntvc,cd->ntvd", z, tp["w"]) + tp["b"].reshape(1, 1, 1, -1)
    y = bn(y, tp["g2"], tp["b2"])
    return jnp.transpose(y, (0, 3, 1, 2))


# ------------------------------- main ----------------------------------------

if __name__ == "__main__":
    N, C, T, V = 2, 4, 8, 16       # (batch, in_channels, frames, joints)
    out_channels = 12              # 6 branches -> mid=2, rem=2, tin=12
    key = jax.random.PRNGKey(0)
    kx, kp = jax.random.split(key)
    x = jax.random.normal(kx, (N, C, T, V), jnp.float32)
    params = init_params(kp, C, out_channels)

    out = jax.jit(msftcn_forward)(x, params)
    out = jax.block_until_ready(out)
    assert out.shape == (N, out_channels, T, V), out.shape

    ref = reference_forward(x, params)
    err = float(jnp.max(jnp.abs(out - ref)))
    assert err < 5e-3, f"max abs err vs reference: {err}"
    print("KERNEL_OK")
</pallas_src>

<mosaic_0001>
module attributes {stable_mosaic.version = 11 : i64} {
  func.func @_matmul_stats_kernel(%arg0: i32, %arg1: memref<256x4xf32, #tpu.memory_space<vmem>>, %arg2: memref<1x4xf32, #tpu.memory_space<vmem>>, %arg3: memref<1x4xf32, #tpu.memory_space<vmem>>, %arg4: memref<4x12xf32, #tpu.memory_space<vmem>>, %arg5: memref<1x12xf32, #tpu.memory_space<vmem>>, %arg6: memref<256x12xf32, #tpu.memory_space<vmem>>, %arg7: memref<1x12xf32, #tpu.memory_space<vmem>>, %arg8: memref<1x12xf32, #tpu.memory_space<vmem>>) attributes {dimension_semantics = [#tpu.dimension_semantics<arbitrary>], iteration_bounds = array<i64: 1>, scalar_prefetch = 0 : i64, scratch_operands = 0 : i64, tpu.core_type = #tpu.core_type<tc>, window_params = [{transform_indices = @transform_0, window_bounds = array<i64: 256, 4>}, {pipeline_mode = #tpu.pipeline_mode<synchronous>, transform_indices = @transform_1, window_bounds = array<i64: 1, 4>}, {pipeline_mode = #tpu.pipeline_mode<synchronous>, transform_indices = @transform_2, window_bounds = array<i64: 1, 4>}, {pipeline_mode = #tpu.pipeline_mode<synchronous>, transform_indices = @transform_3, window_bounds = array<i64: 4, 12>}, {pipeline_mode = #tpu.pipeline_mode<synchronous>, transform_indices = @transform_4, window_bounds = array<i64: 1, 12>}, {transform_indices = @transform_5, window_bounds = array<i64: 256, 12>}, {pipeline_mode = #tpu.pipeline_mode<synchronous>, transform_indices = @transform_6, window_bounds = array<i64: 1, 12>}, {pipeline_mode = #tpu.pipeline_mode<synchronous>, transform_indices = @transform_7, window_bounds = array<i64: 1, 12>}]} {
    %c0_i32 = arith.constant 0 : i32
    %0 = arith.cmpi eq, %arg0, %c0_i32 : i32
    %1 = arith.extui %0 : i1 to i32
    %c0_i32_0 = arith.constant 0 : i32
    %2 = arith.cmpi ne, %1, %c0_i32_0 : i32
    scf.if %2 {
      %cst_22 = arith.constant 0.000000e+00 : f32
      %27 = vector.broadcast %cst_22 : f32 to vector<1x12xf32>
      %c0_23 = arith.constant 0 : index
      %c0_24 = arith.constant 0 : index
      %28 = vector.load %arg7[%c0_23, %c0_24] : memref<1x12xf32, #tpu.memory_space<vmem>>, vector<1x12xf32>
      tpu.vector_store %arg7[%c0_23, %c0_24], %27 {strides = array<i32>} : memref<1x12xf32, #tpu.memory_space<vmem>>, vector<1x12xf32>,
      %cst_25 = arith.constant 0.000000e+00 : f32
      %29 = vector.broadcast %cst_25 : f32 to vector<1x12xf32>
      %c0_26 = arith.constant 0 : index
      %c0_27 = arith.constant 0 : index
      %30 = vector.load %arg8[%c0_26, %c0_27] : memref<1x12xf32, #tpu.memory_space<vmem>>, vector<1x12xf32>
      tpu.vector_store %arg8[%c0_26, %c0_27], %29 {strides = array<i32>} : memref<1x12xf32, #tpu.memory_space<vmem>>, vector<1x12xf32>,
    } else {
    }
    %c0 = arith.constant 0 : index
    %c0_1 = arith.constant 0 : index
    %3 = vector.load %arg1[%c0, %c0_1] : memref<256x4xf32, #tpu.memory_space<vmem>>, vector<256x4xf32>
    %c0_2 = arith.constant 0 : index
    %c0_3 = arith.constant 0 : index
    %4 = vector.load %arg2[%c0_2, %c0_3] : memref<1x4xf32, #tpu.memory_space<vmem>>, vector<1x4xf32>
    %5 = vector.broadcast %4 : vector<1x4xf32> to vector<256x4xf32>
    %6 = arith.mulf %3, %5 : vector<256x4xf32>
    %c0_4 = arith.constant 0 : index
    %c0_5 = arith.constant 0 : index
    %7 = vector.load %arg3[%c0_4, %c0_5] : memref<1x4xf32, #tpu.memory_space<vmem>>, vector<1x4xf32>
    %8 = vector.broadcast %7 : vector<1x4xf32> to vector<256x4xf32>
    %9 = arith.addf %6, %8 : vector<256x4xf32>
    %c0_6 = arith.constant 0 : index
    %c0_7 = arith.constant 0 : index
    %10 = vector.load %arg4[%c0_6, %c0_7] : memref<4x12xf32, #tpu.memory_space<vmem>>, vector<4x12xf32>
    %cst = arith.constant dense<0.000000e+00> : vector<256x12xf32>
    %11 = tpu.matmul %9, %10, %cst {dimension_numbers = #tpu.dot_dimension_numbers<[1], [0], [0], [1], [0, 0, 1, 1], [], []>} : vector<256x4xf32>, vector<4x12xf32>, vector<256x12xf32> -> vector<256x12xf32>
    %c0_8 = arith.constant 0 : index
    %c0_9 = arith.constant 0 : index
    %12 = vector.load %arg5[%c0_8, %c0_9] : memref<1x12xf32, #tpu.memory_space<vmem>>, vector<1x12xf32>
    %13 = vector.broadcast %12 : vector<1x12xf32> to vector<256x12xf32>
    %14 = arith.addf %11, %13 : vector<256x12xf32>
    %c0_10 = arith.constant 0 : index
    %c0_11 = arith.constant 0 : index
    %15 = vector.load %arg6[%c0_10, %c0_11] : memref<256x12xf32, #tpu.memory_space<vmem>>, vector<256x12xf32>
    tpu.vector_store %arg6[%c0_10, %c0_11], %14 {strides = array<i32>} : memref<256x12xf32, #tpu.memory_space<vmem>>, vector<256x12xf32>,
    %c0_12 = arith.constant 0 : index
    %c0_13 = arith.constant 0 : index
    %16 = vector.load %arg7[%c0_12, %c0_13] : memref<1x12xf32, #tpu.memory_space<vmem>>, vector<1x12xf32>
    %cst_14 = arith.constant dense<0.000000e+00> : vector<12xf32>
    %17 = vector.multi_reduction <add>, %14, %cst_14 [0] : vector<256x12xf32> to vector<12xf32>
    %18 = vector.shape_cast %17 : vector<12xf32> to vector<1x12xf32>
    %19 = arith.addf %16, %18 : vector<1x12xf32>
    %c0_15 = arith.constant 0 : index
    %c0_16 = arith.constant 0 : index
    %20 = vector.load %arg7[%c0_15, %c0_16] : memref<1x12xf32, #tpu.memory_space<vmem>>, vector<1x12xf32>
    tpu.vector_store %arg7[%c0_15, %c0_16], %19 {strides = array<i32>} : memref<1x12xf32, #tpu.memory_space<vmem>>, vector<1x12xf32>,
    %c0_17 = arith.constant 0 : index
    %c0_18 = arith.constant 0 : index
    %21 = vector.load %arg8[%c0_17, %c0_18] : memref<1x12xf32, #tpu.memory_space<vmem>>, vector<1x12xf32>
    %22 = arith.mulf %14, %14 : vector<256x12xf32>
    %cst_19 = arith.constant dense<0.000000e+00> : vector<12xf32>
    %23 = vector.multi_reduction <add>, %22, %cst_19 [0] : vector<256x12xf32> to vector<12xf32>
    %24 = vector.shape_cast %23 : vector<12xf32> to vector<1x12xf32>
    %25 = arith.addf %21, %24 : vector<1x12xf32>
    %c0_20 = arith.constant 0 : index
    %c0_21 = arith.constant 0 : index
    %26 = vector.load %arg8[%c0_20, %c0_21] : memref<1x12xf32, #tpu.memory_space<vmem>>, vector<1x12xf32>
    tpu.vector_store %arg8[%c0_20, %c0_21], %25 {strides = array<i32>} : memref<1x12xf32, #tpu.memory_space<vmem>>, vector<1x12xf32>,
    return
  }
  func.func @transform_0(%arg0: i32) -> (i32, i32) {
    %c0_i32 = arith.constant 0 : i32
    %c0_i32_0 = arith.constant 0 : i32
    return %arg0, %c0_i32 : i32, i32
  }
  func.func @transform_1(%arg0: i32) -> (i32, i32) {
    %c0_i32 = arith.constant 0 : i32
    %c0_i32_0 = arith.constant 0 : i32
    %c0_i32_1 = arith.constant 0 : i32
    return %c0_i32, %c0_i32_0 : i32, i32
  }
  func.func @transform_2(%arg0: i32) -> (i32, i32) {
    %c0_i32 = arith.constant 0 : i32
    %c0_i32_0 = arith.constant 0 : i32
    %c0_i32_1 = arith.constant 0 : i32
    return %c0_i32, %c0_i32_0 : i32, i32
  }
  func.func @transform_3(%arg0: i32) -> (i32, i32) {
    %c0_i32 = arith.constant 0 : i32
    %c0_i32_0 = arith.constant 0 : i32
    %c0_i32_1 = arith.constant 0 : i32
    return %c0_i32, %c0_i32_0 : i32, i32
  }
  func.func @transform_4(%arg0: i32) -> (i32, i32) {
    %c0_i32 = arith.constant 0 : i32
    %c0_i32_0 = arith.constant 0 : i32
    %c0_i32_1 = arith.constant 0 : i32
    return %c0_i32, %c0_i32_0 : i32, i32
  }
  func.func @transform_5(%arg0: i32) -> (i32, i32) {
    %c0_i32 = arith.constant 0 : i32
    %c0_i32_0 = arith.constant 0 : i32
    return %arg0, %c0_i32 : i32, i32
  }
  func.func @transform_6(%arg0: i32) -> (i32, i32) {
    %c0_i32 = arith.constant 0 : i32
    %c0_i32_0 = arith.constant 0 : i32
    %c0_i32_1 = arith.constant 0 : i32
    return %c0_i32, %c0_i32_0 : i32, i32
  }
  func.func @transform_7(%arg0: i32) -> (i32, i32) {
    %c0_i32 = arith.constant 0 : i32
    %c0_i32_0 = arith.constant 0 : i32
    %c0_i32_1 = arith.constant 0 : i32
    return %c0_i32, %c0_i32_0 : i32, i32
  }
}

module attributes {stable_mosaic.version = 11 : i64} {
  func.func @_temporal_kernel(%arg0: i32, %arg1: memref<1x128x2xf32, #tpu.memory_space<vmem>>, %arg2: memref<1x128x2xf32, #tpu.memory_space<vmem>>, %arg3: memref<1x128x2xf32, #tpu.memory_space<vmem>>, %arg4: memref<1x128x2xf32, #tpu.memory_space<vmem>>, %arg5: memref<1x128x2xf32, #tpu.memory_space<vmem>>, %arg6: memref<1x2xf32, #tpu.memory_space<vmem>>, %arg7: memref<1x2xf32, #tpu.memory_space<vmem>>, %arg8: memref<1x2xf32, #tpu.memory_space<vmem>>, %arg9: memref<1x2xf32, #tpu.memory_space<vmem>>, %arg10: memref<1x2xf32, #tpu.memory_space<vmem>>, %arg11: memref<1x2xf32, #tpu.memory_space<vmem>>, %arg12: memref<1x2xf32, #tpu.memory_space<vmem>>, %arg13: memref<1x2xf32, #tpu.memory_space<vmem>>, %arg14: memref<1x2xf32, #tpu.memory_space<vmem>>, %arg15: memref<1x2xf32, #tpu.memory_space<vmem>>, %arg16: memref<3x2x2xf32, #tpu.memory_space<vmem>>, %arg17: memref<3x2x2xf32, #tpu.memory_space<vmem>>, %arg18: memref<3x2x2xf32, #tpu.memory_space<vmem>>, %arg19: memref<3x2x2xf32, #tpu.memory_space<vmem>>, %arg20: memref<1x2xf32, #tpu.memory_space<vmem>>, %arg21: memref<1x2xf32, #tpu.memory_space<vmem>>, %arg22: memref<1x2xf32, #tpu.memory_space<vmem>>, %arg23: memref<1x2xf32, #tpu.memory_space<vmem>>, %arg24: memref<1x128x2xf32, #tpu.memory_space<vmem>>, %arg25: memref<1x128x2xf32, #tpu.memory_space<vmem>>, %arg26: memref<1x128x2xf32, #tpu.memory_space<vmem>>, %arg27: memref<1x128x2xf32, #tpu.memory_space<vmem>>, %arg28: memref<1x128x2xf32, #tpu.memory_space<vmem>>) attributes {dimension_semantics = [#tpu.dimension_semantics<parallel>], iteration_bounds = array<i64: 2>, scalar_prefetch = 0 : i64, scratch_operands = 0 : i64, tpu.core_type = #tpu.core_type<tc>, window_params = [{transform_indices = @transform_0, window_bounds = array<i64: 1, 128, 2>}, {transform_indices = @transform_1, window_bounds = array<i64: 1, 128, 2>}, {transform_indices = @transform_2, window_bounds = array<i64: 1, 128, 2>}, {transform_indices = @transform_3, window_bounds = array<i64: 1, 128, 2>}, {transform_indices = @transform_4, window_bounds = array<i64: 1, 128, 2>}, {pipeline_mode = #tpu.pipeline_mode<synchronous>, transform_indices = @transform_5, window_bounds = array<i64: 1, 2>}, {pipeline_mode = #tpu.pipeline_mode<synchronous>, transform_indices = @transform_6, window_bounds = array<i64: 1, 2>}, {pipeline_mode = #tpu.pipeline_mode<synchronous>, transform_indices = @transform_7, window_bounds = array<i64: 1, 2>}, {pipeline_mode = #tpu.pipeline_mode<synchronous>, transform_indices = @transform_8, window_bounds = array<i64: 1, 2>}, {pipeline_mode = #tpu.pipeline_mode<synchronous>, transform_indices = @transform_9, window_bounds = array<i64: 1, 2>}, {pipeline_mode = #tpu.pipeline_mode<synchronous>, transform_indices = @transform_10, window_bounds = array<i64: 1, 2>}, {pipeline_mode = #tpu.pipeline_mode<synchronous>, transform_indices = @transform_11, window_bounds = array<i64: 1, 2>}, {pipeline_mode = #tpu.pipeline_mode<synchronous>, transform_indices = @transform_12, window_bounds = array<i64: 1, 2>}, {pipeline_mode = #tpu.pipeline_mode<synchronous>, transform_indices = @transform_13, window_bounds = array<i64: 1, 2>}, {pipeline_mode = #tpu.pipeline_mode<synchronous>, transform_indices = @transform_14, window_bounds = array<i64: 1, 2>}, {pipeline_mode = #tpu.pipeline_mode<synchronous>, transform_indices = @transform_15, window_bounds = array<i64: 3, 2, 2>}, {pipeline_mode = #tpu.pipeline_mode<synchronous>, transform_indices = @transform_16, window_bounds = array<i64: 3, 2, 2>}, {pipeline_mode = #tpu.pipeline_mode<synchronous>, transform_indices = @transform_17, window_bounds = array<i64: 3, 2, 2>}, {pipeline_mode = #tpu.pipeline_mode<synchronous>, transform_indices = @transform_18, window_bounds = array<i64: 3, 2, 2>}, {pipeline_mode = #tpu.pipeline_mode<synchronous>, transform_indices = @transform_19, window_bounds = array<i64: 1, 2>}, {pipeline_mode = #tpu.pipeline_mode<synchronous>, transform_indices = @transform_20, window_bounds = array<i64: 1, 2>}, {pipeline_mode = #tpu.pipeline_mode<synchronous>, transform_indices = @transform_21, window_bounds = array<i64: 1, 2>}, {pipeline_mode = #tpu.pipeline_mode<synchronous>, transform_indices = @transform_22, window_bounds = array<i64: 1, 2>}, {transform_indices = @transform_23, window_bounds = array<i64: 1, 128, 2>}, {transform_indices = @transform_24, window_bounds = array<i64: 1, 128, 2>}, {transform_indices = @transform_25, window_bounds = array<i64: 1, 128, 2>}, {transform_indices = @transform_26, window_bounds = array<i64: 1, 128, 2>}, {transform_indices = @transform_27, window_bounds = array<i64: 1, 128, 2>}]} {
    %c0 = arith.constant 0 : index
    %c0_0 = arith.constant 0 : index
    %c0_1 = arith.constant 0 : index
    %0 = vector.load %arg1[%c0, %c0_0, %c0_1] : memref<1x128x2xf32, #tpu.memory_space<vmem>>, vector<1x128x2xf32>
    %1 = vector.shape_cast %0 : vector<1x128x2xf32> to vector<128x2xf32>
    %c0_2 = arith.constant 0 : index
    %c0_3 = arith.constant 0 : index
    %2 = vector.load %arg6[%c0_2, %c0_3] : memref<1x2xf32, #tpu.memory_space<vmem>>, vector<1x2xf32>
    %3 = vector.broadcast %2 : vector<1x2xf32> to vector<128x2xf32>
    %4 = arith.mulf %1, %3 : vector<128x2xf32>
    %c0_4 = arith.constant 0 : index
    %c0_5 = arith.constant 0 : index
    %5 = vector.load %arg11[%c0_4, %c0_5] : memref<1x2xf32, #tpu.memory_space<vmem>>, vector<1x2xf32>
    %6 = vector.broadcast %5 : vector<1x2xf32> to vector<128x2xf32>
    %7 = arith.addf %4, %6 : vector<128x2xf32>
    %cst = arith.constant 0.000000e+00 : f32
    %8 = vector.broadcast %cst : f32 to vector<128x2xf32>
    %9 = arith.maximumf %7, %8 : vector<128x2xf32>
    %cst_6 = arith.constant 0.000000e+00 : f32
    %10 = vector.broadcast %cst_6 : f32 to vector<16x2xf32>
    %11 = vector.extract_strided_slice %9 {offsets = [0, 0], sizes = [112, 2], strides = [1, 1]} : vector<128x2xf32> to vector<112x2xf32>
    %12 = tpu.concatenate %10, %11 in 0 : vector<16x2xf32>, vector<112x2xf32> -> vector<128x2xf32>
    %13 = vector.extract_strided_slice %9 {offsets = [16, 0], sizes = [112, 2], strides = [1, 1]} : vector<128x2xf32> to vector<112x2xf32>
    %14 = tpu.concatenate %13, %10 in 0 : vector<112x2xf32>, vector<16x2xf32> -> vector<128x2xf32>
    %c0_7 = arith.constant 0 : index
    %c0_8 = arith.constant 0 : index
    %c0_9 = arith.constant 0 : index
    %15 = vector.load %arg16[%c0_7, %c0_8, %c0_9] : memref<3x2x2xf32, #tpu.memory_space<vmem>>, vector<1x2x2xf32>
    %16 = vector.shape_cast %15 : vector<1x2x2xf32> to vector<2x2xf32>
    %cst_10 = arith.constant dense<0.000000e+00> : vector<128x2xf32>
    %17 = tpu.matmul %12, %16, %cst_10 {dimension_numbers = #tpu.dot_dimension_numbers<[1], [0], [0], [1], [0, 0, 1, 1], [], []>} : vector<128x2xf32>, vector<2x2xf32>, vector<128x2xf32> -> vector<128x2xf32>
    %c1 = arith.constant 1 : index
    %c0_11 = arith.constant 0 : index
    %c0_12 = arith.constant 0 : index
    %18 = vector.load %arg16[%c1, %c0_11, %c0_12] : memref<3x2x2xf32, #tpu.memory_space<vmem>>, vector<1x2x2xf32>
    %19 = vector.shape_cast %18 : vector<1x2x2xf32> to vector<2x2xf32>
    %cst_13 = arith.constant dense<0.000000e+00> : vector<128x2xf32>
    %20 = tpu.matmul %9, %19, %cst_13 {dimension_numbers = #tpu.dot_dimension_numbers<[1], [0], [0], [1], [0, 0, 1, 1], [], []>} : vector<128x2xf32>, vector<2x2xf32>, vector<128x2xf32> -> vector<128x2xf32>
    %21 = arith.addf %17, %20 : vector<128x2xf32>
    %c2 = arith.constant 2 : index
    %c0_14 = arith.constant 0 : index
    %c0_15 = arith.constant 0 : index
    %22 = vector.load %arg16[%c2, %c0_14, %c0_15] : memref<3x2x2xf32, #tpu.memory_space<vmem>>, vector<1x2x2xf32>
    %23 = vector.shape_cast %22 : vector<1x2x2xf32> to vector<2x2xf32>
    %cst_16 = arith.constant dense<0.000000e+00> : vector<128x2xf32>
    %24 = tpu.matmul %14, %23, %cst_16 {dimension_numbers = #tpu.dot_dimension_numbers<[1], [0], [0], [1], [0, 0, 1, 1], [], []>} : vector<128x2xf32>, vector<2x2xf32>, vector<128x2xf32> -> vector<128x2xf32>
    %25 = arith.addf %21, %24 : vector<128x2xf32>
    %c0_17 = arith.constant 0 : index
    %c0_18 = arith.constant 0 : index
    %26 = vector.load %arg20[%c0_17, %c0_18] : memref<1x2xf32, #tpu.memory_space<vmem>>, vector<1x2xf32>
    %27 = vector.broadcast %26 : vector<1x2xf32> to vector<128x2xf32>
    %28 = arith.addf %25, %27 : vector<128x2xf32>
    %c0_19 = arith.constant 0 : index
    %c0_20 = arith.constant 0 : index
    %c0_21 = arith.constant 0 : index
    %29 = vector.load %arg24[%c0_19, %c0_20, %c0_21] : memref<1x128x2xf32, #tpu.memory_space<vmem>>, vector<1x128x2xf32>
    %30 = vector.shape_cast %29 : vector<1x128x2xf32> to vector<128x2xf32>
    %31 = vector.shape_cast %28 : vector<128x2xf32> to vector<1x128x2xf32>
    tpu.vector_store %arg24[%c0_19, %c0_20, %c0_21], %31 {strides = array<i32>} : memref<1x128x2xf32, #tpu.memory_space<vmem>>, vector<1x128x2xf32>,
    %c0_22 = arith.constant 0 : index
    %c0_23 = arith.constant 0 : index
    %c0_24 = arith.constant 0 : index
    %32 = vector.load %arg2[%c0_22, %c0_23, %c0_24] : memref<1x128x2xf32, #tpu.memory_space<vmem>>, vector<1x128x2xf32>
    %33 = vector.shape_cast %32 : vector<1x128x2xf32> to vector<128x2xf32>
    %c0_25 = arith.constant 0 : index
    %c0_26 = arith.constant 0 : index
    %34 = vector.load %arg7[%c0_25, %c0_26] : memref<1x2xf32, #tpu.memory_space<vmem>>, vector<1x2xf32>
    %35 = vector.broadcast %34 : vector<1x2xf32> to vector<128x2xf32>
    %36 = arith.mulf %33, %35 : vector<128x2xf32>
    %c0_27 = arith.constant 0 : index
    %c0_28 = arith.constant 0 : index
    %37 = vector.load %arg12[%c0_27, %c0_28] : memref<1x2xf32, #tpu.memory_space<vmem>>, vector<1x2xf32>
    %38 = vector.broadcast %37 : vector<1x2xf32> to vector<128x2xf32>
    %39 = arith.addf %36, %38 : vector<128x2xf32>
    %cst_29 = arith.constant 0.000000e+00 : f32
    %40 = vector.broadcast %cst_29 : f32 to vector<128x2xf32>
    %41 = arith.maximumf %39, %40 : vector<128x2xf32>
    %cst_30 = arith.constant 0.000000e+00 : f32
    %42 = vector.broadcast %cst_30 : f32 to vector<32x2xf32>
    %43 = vector.extract_strided_slice %41 {offsets = [0, 0], sizes = [96, 2], strides = [1, 1]} : vector<128x2xf32> to vector<96x2xf32>
    %44 = tpu.concatenate %42, %43 in 0 : vector<32x2xf32>, vector<96x2xf32> -> vector<128x2xf32>
    %45 = vector.extract_strided_slice %41 {offsets = [32, 0], sizes = [96, 2], strides = [1, 1]} : vector<128x2xf32> to vector<96x2xf32>
    %46 = tpu.concatenate %45, %42 in 0 : vector<96x2xf32>, vector<32x2xf32> -> vector<128x2xf32>
    %c0_31 = arith.constant 0 : index
    %c0_32 = arith.constant 0 : index
    %c0_33 = arith.constant 0 : index
    %47 = vector.load %arg17[%c0_31, %c0_32, %c0_33] : memref<3x2x2xf32, #tpu.memory_space<vmem>>, vector<1x2x2xf32>
    %48 = vector.shape_cast %47 : vector<1x2x2xf32> to vector<2x2xf32>
    %cst_34 = arith.constant dense<0.000000e+00> : vector<128x2xf32>
    %49 = tpu.matmul %44, %48, %cst_34 {dimension_numbers = #tpu.dot_dimension_numbers<[1], [0], [0], [1], [0, 0, 1, 1], [], []>} : vector<128x2xf32>, vector<2x2xf32>, vector<128x2xf32> -> vector<128x2xf32>
    %c1_35 = arith.constant 1 : index
    %c0_36 = arith.constant 0 : index
    %c0_37 = arith.constant 0 : index
    %50 = vector.load %arg17[%c1_35, %c0_36, %c0_37] : memref<3x2x2xf32, #tpu.memory_space<vmem>>, vector<1x2x2xf32>
    %51 = vector.shape_cast %50 : vector<1x2x2xf32> to vector<2x2xf32>
    %cst_38 = arith.constant dense<0.000000e+00> : vector<128x2xf32>
    %52 = tpu.matmul %41, %51, %cst_38 {dimension_numbers = #tpu.dot_dimension_numbers<[1], [0], [0], [1], [0, 0, 1, 1], [], []>} : vector<128x2xf32>, vector<2x2xf32>, vector<128x2xf32> -> vector<128x2xf32>
    %53 = arith.addf %49, %52 : vector<128x2xf32>
    %c2_39 = arith.constant 2 : index
    %c0_40 = arith.constant 0 : index
    %c0_41 = arith.constant 0 : index
    %54 = vector.load %arg17[%c2_39, %c0_40, %c0_41] : memref<3x2x2xf32, #tpu.memory_space<vmem>>, vector<1x2x2xf32>
    %55 = vector.shape_cast %54 : vector<1x2x2xf32> to vector<2x2xf32>
    %cst_42 = arith.constant dense<0.000000e+00> : vector<128x2xf32>
    %56 = tpu.matmul %46, %55, %cst_42 {dimension_numbers = #tpu.dot_dimension_numbers<[1], [0], [0], [1], [0, 0, 1, 1], [], []>} : vector<128x2xf32>, vector<2x2xf32>, vector<128x2xf32> -> vector<128x2xf32>
    %57 = arith.addf %53, %56 : vector<128x2xf32>
    %c0_43 = arith.constant 0 : index
    %c0_44 = arith.constant 0 : index
    %58 = vector.load %arg21[%c0_43, %c0_44] : memref<1x2xf32, #tpu.memory_space<vmem>>, vector<1x2xf32>
    %59 = vector.broadcast %58 : vector<1x2xf32> to vector<128x2xf32>
    %60 = arith.addf %57, %59 : vector<128x2xf32>
    %c0_45 = arith.constant 0 : index
    %c0_46 = arith.constant 0 : index
    %c0_47 = arith.constant 0 : index
    %61 = vector.load %arg25[%c0_45, %c0_46, %c0_47] : memref<1x128x2xf32, #tpu.memory_space<vmem>>, vector<1x128x2xf32>
    %62 = vector.shape_cast %61 : vector<1x128x2xf32> to vector<128x2xf32>
    %63 = vector.shape_cast %60 : vector<128x2xf32> to vector<1x128x2xf32>
    tpu.vector_store %arg25[%c0_45, %c0_46, %c0_47], %63 {strides = array<i32>} : memref<1x128x2xf32, #tpu.memory_space<vmem>>, vector<1x128x2xf32>,
    %c0_48 = arith.constant 0 : index
    %c0_49 = arith.constant 0 : index
    %c0_50 = arith.constant 0 : index
    %64 = vector.load %arg3[%c0_48, %c0_49, %c0_50] : memref<1x128x2xf32, #tpu.memory_space<vmem>>, vector<1x128x2xf32>
    %65 = vector.shape_cast %64 : vector<1x128x2xf32> to vector<128x2xf32>
    %c0_51 = arith.constant 0 : index
    %c0_52 = arith.constant 0 : index
    %66 = vector.load %arg8[%c0_51, %c0_52] : memref<1x2xf32, #tpu.memory_space<vmem>>, vector<1x2xf32>
    %67 = vector.broadcast %66 : vector<1x2xf32> to vector<128x2xf32>
    %68 = arith.mulf %65, %67 : vector<128x2xf32>
    %c0_53 = arith.constant 0 : index
    %c0_54 = arith.constant 0 : index
    %69 = vector.load %arg13[%c0_53, %c0_54] : memref<1x2xf32, #tpu.memory_space<vmem>>, vector<1x2xf32>
    %70 = vector.broadcast %69 : vector<1x2xf32> to vector<128x2xf32>
    %71 = arith.addf %68, %70 : vector<128x2xf32>
    %cst_55 = arith.constant 0.000000e+00 : f32
    %72 = vector.broadcast %cst_55 : f32 to vector<128x2xf32>
    %73 = arith.maximumf %71, %72 : vector<128x2xf32>
    %cst_56 = arith.constant 0.000000e+00 : f32
    %74 = vector.broadcast %cst_56 : f32 to vector<48x2xf32>
    %75 = vector.extract_strided_slice %73 {offsets = [0, 0], sizes = [80, 2], strides = [1, 1]} : vector<128x2xf32> to vector<80x2xf32>
    %76 = tpu.concatenate %74, %75 in 0 : vector<48x2xf32>, vector<80x2xf32> -> vector<128x2xf32>
    %77 = vector.extract_strided_slice %73 {offsets = [48, 0], sizes = [80, 2], strides = [1, 1]} : vector<128x2xf32> to vector<80x2xf32>
    %78 = tpu.concatenate %77, %74 in 0 : vector<80x2xf32>, vector<48x2xf32> -> vector<128x2xf32>
    %c0_57 = arith.constant 0 : index
    %c0_58 = arith.constant 0 : index
    %c0_59 = arith.constant 0 : index
    %79 = vector.load %arg18[%c0_57, %c0_58, %c0_59] : memref<3x2x2xf32, #tpu.memory_space<vmem>>, vector<1x2x2xf32>
    %80 = vector.shape_cast %79 : vector<1x2x2xf32> to vector<2x2xf32>
    %cst_60 = arith.constant dense<0.000000e+00> : vector<128x2xf32>
    %81 = tpu.matmul %76, %80, %cst_60 {dimension_numbers = #tpu.dot_dimension_numbers<[1], [0], [0], [1], [0, 0, 1, 1], [], []>} : vector<128x2xf32>, vector<2x2xf32>, vector<128x2xf32> -> vector<128x2xf32>
    %c1_61 = arith.constant 1 : index
    %c0_62 = arith.constant 0 : index
    %c0_63 = arith.constant 0 : index
    %82 = vector.load %arg18[%c1_61, %c0_62, %c0_63] : memref<3x2x2xf32, #tpu.memory_space<vmem>>, vector<1x2x2xf32>
    %83 = vector.shape_cast %82 : vector<1x2x2xf32> to vector<2x2xf32>
    %cst_64 = arith.constant dense<0.000000e+00> : vector<128x2xf32>
    %84 = tpu.matmul %73, %83, %cst_64 {dimension_numbers = #tpu.dot_dimension_numbers<[1], [0], [0], [1], [0, 0, 1, 1], [], []>} : vector<128x2xf32>, vector<2x2xf32>, vector<128x2xf32> -> vector<128x2xf32>
    %85 = arith.addf %81, %84 : vector<128x2xf32>
    %c2_65 = arith.constant 2 : index
    %c0_66 = arith.constant 0 : index
    %c0_67 = arith.constant 0 : index
    %86 = vector.load %arg18[%c2_65, %c0_66, %c0_67] : memref<3x2x2xf32, #tpu.memory_space<vmem>>, vector<1x2x2xf32>
    %87 = vector.shape_cast %86 : vector<1x2x2xf32> to vector<2x2xf32>
    %cst_68 = arith.constant dense<0.000000e+00> : vector<128x2xf32>
    %88 = tpu.matmul %78, %87, %cst_68 {dimension_numbers = #tpu.dot_dimension_numbers<[1], [0], [0], [1], [0, 0, 1, 1], [], []>} : vector<128x2xf32>, vector<2x2xf32>, vector<128x2xf32> -> vector<128x2xf32>
    %89 = arith.addf %85, %88 : vector<128x2xf32>
    %c0_69 = arith.constant 0 : index
    %c0_70 = arith.constant 0 : index
    %90 = vector.load %arg22[%c0_69, %c0_70] : memref<1x2xf32, #tpu.memory_space<vmem>>, vector<1x2xf32>
    %91 = vector.broadcast %90 : vector<1x2xf32> to vector<128x2xf32>
    %92 = arith.addf %89, %91 : vector<128x2xf32>
    %c0_71 = arith.constant 0 : index
    %c0_72 = arith.constant 0 : index
    %c0_73 = arith.constant 0 : index
    %93 = vector.load %arg26[%c0_71, %c0_72, %c0_73] : memref<1x128x2xf32, #tpu.memory_space<vmem>>, vector<1x128x2xf32>
    %94 = vector.shape_cast %93 : vector<1x128x2xf32> to vector<128x2xf32>
    %95 = vector.shape_cast %92 : vector<128x2xf32> to vector<1x128x2xf32>
    tpu.vector_store %arg26[%c0_71, %c0_72, %c0_73], %95 {strides = array<i32>} : memref<1x128x2xf32, #tpu.memory_space<vmem>>, vector<1x128x2xf32>,
    %c0_74 = arith.constant 0 : index
    %c0_75 = arith.constant 0 : index
    %c0_76 = arith.constant 0 : index
    %96 = vector.load %arg4[%c0_74, %c0_75, %c0_76] : memref<1x128x2xf32, #tpu.memory_space<vmem>>, vector<1x128x2xf32>
    %97 = vector.shape_cast %96 : vector<1x128x2xf32> to vector<128x2xf32>
    %c0_77 = arith.constant 0 : index
    %c0_78 = arith.constant 0 : index
    %98 = vector.load %arg9[%c0_77, %c0_78] : memref<1x2xf32, #tpu.memory_space<vmem>>, vector<1x2xf32>
    %99 = vector.broadcast %98 : vector<1x2xf32> to vector<128x2xf32>
    %100 = arith.mulf %97, %99 : vector<128x2xf32>
    %c0_79 = arith.constant 0 : index
    %c0_80 = arith.constant 0 : index
    %101 = vector.load %arg14[%c0_79, %c0_80] : memref<1x2xf32, #tpu.memory_space<vmem>>, vector<1x2xf32>
    %102 = vector.broadcast %101 : vector<1x2xf32> to vector<128x2xf32>
    %103 = arith.addf %100, %102 : vector<128x2xf32>
    %cst_81 = arith.constant 0.000000e+00 : f32
    %104 = vector.broadcast %cst_81 : f32 to vector<128x2xf32>
    %105 = arith.maximumf %103, %104 : vector<128x2xf32>
    %cst_82 = arith.constant 0.000000e+00 : f32
    %106 = vector.broadcast %cst_82 : f32 to vector<64x2xf32>
    %107 = vector.extract_strided_slice %105 {offsets = [0, 0], sizes = [64, 2], strides = [1, 1]} : vector<128x2xf32> to vector<64x2xf32>
    %108 = tpu.concatenate %106, %107 in 0 : vector<64x2xf32>, vector<64x2xf32> -> vector<128x2xf32>
    %109 = vector.extract_strided_slice %105 {offsets = [64, 0], sizes = [64, 2], strides = [1, 1]} : vector<128x2xf32> to vector<64x2xf32>
    %110 = tpu.concatenate %109, %106 in 0 : vector<64x2xf32>, vector<64x2xf32> -> vector<128x2xf32>
    %c0_83 = arith.constant 0 : index
    %c0_84 = arith.constant 0 : index
    %c0_85 = arith.constant 0 : index
    %111 = vector.load %arg19[%c0_83, %c0_84, %c0_85] : memref<3x2x2xf32, #tpu.memory_space<vmem>>, vector<1x2x2xf32>
    %112 = vector.shape_cast %111 : vector<1x2x2xf32> to vector<2x2xf32>
    %cst_86 = arith.constant dense<0.000000e+00> : vector<128x2xf32>
    %113 = tpu.matmul %108, %112, %cst_86 {dimension_numbers = #tpu.dot_dimension_numbers<[1], [0], [0], [1], [0, 0, 1, 1], [], []>} : vector<128x2xf32>, vector<2x2xf32>, vector<128x2xf32> -> vector<128x2xf32>
    %c1_87 = arith.constant 1 : index
    %c0_88 = arith.constant 0 : index
    %c0_89 = arith.constant 0 : index
    %114 = vector.load %arg19[%c1_87, %c0_88, %c0_89] : memref<3x2x2xf32, #tpu.memory_space<vmem>>, vector<1x2x2xf32>
    %115 = vector.shape_cast %114 : vector<1x2x2xf32> to vector<2x2xf32>
    %cst_90 = arith.constant dense<0.000000e+00> : vector<128x2xf32>
    %116 = tpu.matmul %105, %115, %cst_90 {dimension_numbers = #tpu.dot_dimension_numbers<[1], [0], [0], [1], [0, 0, 1, 1], [], []>} : vector<128x2xf32>, vector<2x2xf32>, vector<128x2xf32> -> vector<128x2xf32>
    %117 = arith.addf %113, %116 : vector<128x2xf32>
    %c2_91 = arith.constant 2 : index
    %c0_92 = arith.constant 0 : index
    %c0_93 = arith.constant 0 : index
    %118 = vector.load %arg19[%c2_91, %c0_92, %c0_93] : memref<3x2x2xf32, #tpu.memory_space<vmem>>, vector<1x2x2xf32>
    %119 = vector.shape_cast %118 : vector<1x2x2xf32> to vector<2x2xf32>
    %cst_94 = arith.constant dense<0.000000e+00> : vector<128x2xf32>
    %120 = tpu.matmul %110, %119, %cst_94 {dimension_numbers = #tpu.dot_dimension_numbers<[1], [0], [0], [1], [0, 0, 1, 1], [], []>} : vector<128x2xf32>, vector<2x2xf32>, vector<128x2xf32> -> vector<128x2xf32>
    %121 = arith.addf %117, %120 : vector<128x2xf32>
    %c0_95 = arith.constant 0 : index
    %c0_96 = arith.constant 0 : index
    %122 = vector.load %arg23[%c0_95, %c0_96] : memref<1x2xf32, #tpu.memory_space<vmem>>, vector<1x2xf32>
    %123 = vector.broadcast %122 : vector<1x2xf32> to vector<128x2xf32>
    %124 = arith.addf %121, %123 : vector<128x2xf32>
    %c0_97 = arith.constant 0 : index
    %c0_98 = arith.constant 0 : index
    %c0_99 = arith.constant 0 : index
    %125 = vector.load %arg27[%c0_97, %c0_98, %c0_99] : memref<1x128x2xf32, #tpu.memory_space<vmem>>, vector<1x128x2xf32>
    %126 = vector.shape_cast %125 : vector<1x128x2xf32> to vector<128x2xf32>
    %127 = vector.shape_cast %124 : vector<128x2xf32> to vector<1x128x2xf32>
    tpu.vector_store %arg27[%c0_97, %c0_98, %c0_99], %127 {strides = array<i32>} : memref<1x128x2xf32, #tpu.memory_space<vmem>>, vector<1x128x2xf32>,
    %c0_100 = arith.constant 0 : index
    %c0_101 = arith.constant 0 : index
    %c0_102 = arith.constant 0 : index
    %128 = vector.load %arg5[%c0_100, %c0_101, %c0_102] : memref<1x128x2xf32, #tpu.memory_space<vmem>>, vector<1x128x2xf32>
    %129 = vector.shape_cast %128 : vector<1x128x2xf32> to vector<128x2xf32>
    %c0_103 = arith.constant 0 : index
    %c0_104 = arith.constant 0 : index
    %130 = vector.load %arg10[%c0_103, %c0_104] : memref<1x2xf32, #tpu.memory_space<vmem>>, vector<1x2xf32>
    %131 = vector.broadcast %130 : vector<1x2xf32> to vector<128x2xf32>
    %132 = arith.mulf %129, %131 : vector<128x2xf32>
    %c0_105 = arith.constant 0 : index
    %c0_106 = arith.constant 0 : index
    %133 = vector.load %arg15[%c0_105, %c0_106] : memref<1x2xf32, #tpu.memory_space<vmem>>, vector<1x2xf32>
    %134 = vector.broadcast %133 : vector<1x2xf32> to vector<128x2xf32>
    %135 = arith.addf %132, %134 : vector<128x2xf32>
    %cst_107 = arith.constant 0.000000e+00 : f32
    %136 = vector.broadcast %cst_107 : f32 to vector<128x2xf32>
    %137 = arith.maximumf %135, %136 : vector<128x2xf32>
    %cst_108 = arith.constant 0.000000e+00 : f32
    %138 = vector.broadcast %cst_108 : f32 to vector<16x2xf32>
    %139 = vector.extract_strided_slice %137 {offsets = [0, 0], sizes = [112, 2], strides = [1, 1]} : vector<128x2xf32> to vector<112x2xf32>
    %140 = tpu.concatenate %138, %139 in 0 : vector<16x2xf32>, vector<112x2xf32> -> vector<128x2xf32>
    %141 = vector.extract_strided_slice %137 {offsets = [16, 0], sizes = [112, 2], strides = [1, 1]} : vector<128x2xf32> to vector<112x2xf32>
    %142 = tpu.concatenate %141, %138 in 0 : vector<112x2xf32>, vector<16x2xf32> -> vector<128x2xf32>
    %143 = arith.maximumf %140, %137 : vector<128x2xf32>
    %144 = arith.maximumf %143, %142 : vector<128x2xf32>
    %c0_109 = arith.constant 0 : index
    %c0_110 = arith.constant 0 : index
    %c0_111 = arith.constant 0 : index
    %145 = vector.load %arg28[%c0_109, %c0_110, %c0_111] : memref<1x128x2xf32, #tpu.memory_space<vmem>>, vector<1x128x2xf32>
    %146 = vector.shape_cast %145 : vector<1x128x2xf32> to vector<128x2xf32>
    %147 = vector.shape_cast %144 : vector<128x2xf32> to vector<1x128x2xf32>
    tpu.vector_store %arg28[%c0_109, %c0_110, %c0_111], %147 {strides = array<i32>} : memref<1x128x2xf32, #tpu.memory_space<vmem>>, vector<1x128x2xf32>,
    return
  }
  func.func @transform_0(%arg0: i32) -> (i32, i32, i32) {
    %c0_i32 = arith.constant 0 : i32
    %c0_i32_0 = arith.constant 0 : i32
    %c0_i32_1 = arith.constant 0 : i32
    return %arg0, %c0_i32, %c0_i32_0 : i32, i32, i32
  }
  func.func @transform_1(%arg0: i32) -> (i32, i32, i32) {
    %c0_i32 = arith.constant 0 : i32
    %c0_i32_0 = arith.constant 0 : i32
    %c0_i32_1 = arith.constant 0 : i32
    return %arg0, %c0_i32, %c0_i32_0 : i32, i32, i32
  }
  func.func @transform_2(%arg0: i32) -> (i32, i32, i32) {
    %c0_i32 = arith.constant 0 : i32
    %c0_i32_0 = arith.constant 0 : i32
    %c0_i32_1 = arith.constant 0 : i32
    return %arg0, %c0_i32, %c0_i32_0 : i32, i32, i32
  }
  func.func @transform_3(%arg0: i32) -> (i32, i32, i32) {
    %c0_i32 = arith.constant 0 : i32
    %c0_i32_0 = arith.constant 0 : i32
    %c0_i32_1 = arith.constant 0 : i32
    return %arg0, %c0_i32, %c0_i32_0 : i32, i32, i32
  }
  func.func @transform_4(%arg0: i32) -> (i32, i32, i32) {
    %c0_i32 = arith.constant 0 : i32
    %c0_i32_0 = arith.constant 0 : i32
    %c0_i32_1 = arith.constant 0 : i32
    return %arg0, %c0_i32, %c0_i32_0 : i32, i32, i32
  }
  func.func @transform_5(%arg0: i32) -> (i32, i32) {
    %c0_i32 = arith.constant 0 : i32
    %c0_i32_0 = arith.constant 0 : i32
    %c0_i32_1 = arith.constant 0 : i32
    return %c0_i32, %c0_i32_0 : i32, i32
  }
  func.func @transform_6(%arg0: i32) -> (i32, i32) {
    %c0_i32 = arith.constant 0 : i32
    %c0_i32_0 = arith.constant 0 : i32
    %c0_i32_1 = arith.constant 0 : i32
    return %c0_i32, %c0_i32_0 : i32, i32
  }
  func.func @transform_7(%arg0: i32) -> (i32, i32) {
    %c0_i32 = arith.constant 0 : i32
    %c0_i32_0 = arith.constant 0 : i32
    %c0_i32_1 = arith.constant 0 : i32
    return %c0_i32, %c0_i32_0 : i32, i32
  }
  func.func @transform_8(%arg0: i32) -> (i32, i32) {
    %c0_i32 = arith.constant 0 : i32
    %c0_i32_0 = arith.constant 0 : i32
    %c0_i32_1 = arith.constant 0 : i32
    return %c0_i32, %c0_i32_0 : i32, i32
  }
  func.func @transform_9(%arg0: i32) -> (i32, i32) {
    %c0_i32 = arith.constant 0 : i32
    %c0_i32_0 = arith.constant 0 : i32
    %c0_i32_1 = arith.constant 0 : i32
    return %c0_i32, %c0_i32_0 : i32, i32
  }
  func.func @transform_10(%arg0: i32) -> (i32, i32) {
    %c0_i32 = arith.constant 0 : i32
    %c0_i32_0 = arith.constant 0 : i32
    %c0_i32_1 = arith.constant 0 : i32
    return %c0_i32, %c0_i32_0 : i32, i32
  }
  func.func @transform_11(%arg0: i32) -> (i32, i32) {
    %c0_i32 = arith.constant 0 : i32
    %c0_i32_0 = arith.constant 0 : i32
    %c0_i32_1 = arith.constant 0 : i32
    return %c0_i32, %c0_i32_0 : i32, i32
  }
  func.func @transform_12(%arg0: i32) -> (i32, i32) {
    %c0_i32 = arith.constant 0 : i32
    %c0_i32_0 = arith.constant 0 : i32
    %c0_i32_1 = arith.constant 0 : i32
    return %c0_i32, %c0_i32_0 : i32, i32
  }
  func.func @transform_13(%arg0: i32) -> (i32, i32) {
    %c0_i32 = arith.constant 0 : i32
    %c0_i32_0 = arith.constant 0 : i32
    %c0_i32_1 = arith.constant 0 : i32
    return %c0_i32, %c0_i32_0 : i32, i32
  }
  func.func @transform_14(%arg0: i32) -> (i32, i32) {
    %c0_i32 = arith.constant 0 : i32
    %c0_i32_0 = arith.constant 0 : i32
    %c0_i32_1 = arith.constant 0 : i32
    return %c0_i32, %c0_i32_0 : i32, i32
  }
  func.func @transform_15(%arg0: i32) -> (i32, i32, i32) {
    %c0_i32 = arith.constant 0 : i32
    %c0_i32_0 = arith.constant 0 : i32
    %c0_i32_1 = arith.constant 0 : i32
    %c0_i32_2 = arith.constant 0 : i32
    return %c0_i32, %c0_i32_0, %c0_i32_1 : i32, i32, i32
  }
  func.func @transform_16(%arg0: i32) -> (i32, i32, i32) {
    %c0_i32 = arith.constant 0 : i32
    %c0_i32_0 = arith.constant 0 : i32
    %c0_i32_1 = arith.constant 0 : i32
    %c0_i32_2 = arith.constant 0 : i32
    return %c0_i32, %c0_i32_0, %c0_i32_1 : i32, i32, i32
  }
  func.func @transform_17(%arg0: i32) -> (i32, i32, i32) {
    %c0_i32 = arith.constant 0 : i32
    %c0_i32_0 = arith.constant 0 : i32
    %c0_i32_1 = arith.constant 0 : i32
    %c0_i32_2 = arith.constant 0 : i32
    return %c0_i32, %c0_i32_0, %c0_i32_1 : i32, i32, i32
  }
  func.func @transform_18(%arg0: i32) -> (i32, i32, i32) {
    %c0_i32 = arith.constant 0 : i32
    %c0_i32_0 = arith.constant 0 : i32
    %c0_i32_1 = arith.constant 0 : i32
    %c0_i32_2 = arith.constant 0 : i32
    return %c0_i32, %c0_i32_0, %c0_i32_1 : i32, i32, i32
  }
  func.func @transform_19(%arg0: i32) -> (i32, i32) {
    %c0_i32 = arith.constant 0 : i32
    %c0_i32_0 = arith.constant 0 : i32
    %c0_i32_1 = arith.constant 0 : i32
    return %c0_i32, %c0_i32_0 : i32, i32
  }
  func.func @transform_20(%arg0: i32) -> (i32, i32) {
    %c0_i32 = arith.constant 0 : i32
    %c0_i32_0 = arith.constant 0 : i32
    %c0_i32_1 = arith.constant 0 : i32
    return %c0_i32, %c0_i32_0 : i32, i32
  }
  func.func @transform_21(%arg0: i32) -> (i32, i32) {
    %c0_i32 = arith.constant 0 : i32
    %c0_i32_0 = arith.constant 0 : i32
    %c0_i32_1 = arith.constant 0 : i32
    return %c0_i32, %c0_i32_0 : i32, i32
  }
  func.func @transform_22(%arg0: i32) -> (i32, i32) {
    %c0_i32 = arith.constant 0 : i32
    %c0_i32_0 = arith.constant 0 : i32
    %c0_i32_1 = arith.constant 0 : i32
    return %c0_i32, %c0_i32_0 : i32, i32
  }
  func.func @transform_23(%arg0: i32) -> (i32, i32, i32) {
    %c0_i32 = arith.constant 0 : i32
    %c0_i32_0 = arith.constant 0 : i32
    %c0_i32_1 = arith.constant 0 : i32
    return %arg0, %c0_i32, %c0_i32_0 : i32, i32, i32
  }
  func.func @transform_24(%arg0: i32) -> (i32, i32, i32) {
    %c0_i32 = arith.constant 0 : i32
    %c0_i32_0 = arith.constant 0 : i32
    %c0_i32_1 = arith.constant 0 : i32
    return %arg0, %c0_i32, %c0_i32_0 : i32, i32, i32
  }
  func.func @transform_25(%arg0: i32) -> (i32, i32, i32) {
    %c0_i32 = arith.constant 0 : i32
    %c0_i32_0 = arith.constant 0 : i32
    %c0_i32_1 = arith.constant 0 : i32
    return %arg0, %c0_i32, %c0_i32_0 : i32, i32, i32
  }
  func.func @transform_26(%arg0: i32) -> (i32, i32, i32) {
    %c0_i32 = arith.constant 0 : i32
    %c0_i32_0 = arith.constant 0 : i32
    %c0_i32_1 = arith.constant 0 : i32
    return %arg0, %c0_i32, %c0_i32_0 : i32, i32, i32
  }
  func.func @transform_27(%arg0: i32) -> (i32, i32, i32) {
    %c0_i32 = arith.constant 0 : i32
    %c0_i32_0 = arith.constant 0 : i32
    %c0_i32_1 = arith.constant 0 : i32
    return %arg0, %c0_i32, %c0_i32_0 : i32, i32, i32
  }
}

module attributes {stable_mosaic.version = 11 : i64} {
  func.func @_fgn_kernel(%arg0: i32, %arg1: memref<24x128xf32, #tpu.memory_space<vmem>>, %arg2: memref<128x128xf32, #tpu.memory_space<vmem>>, %arg3: memref<128x128xf32, #tpu.memory_space<vmem>>, %arg4: memref<128x128xf32, #tpu.memory_space<vmem>>, %arg5: memref<128x128xf32, #tpu.memory_space<vmem>>, %arg6: memref<24x1xf32, #tpu.memory_space<vmem>>, %arg7: memref<24x1xf32, #tpu.memory_space<vmem>>, %arg8: memref<24x1xf32, #tpu.memory_space<vmem>>, %arg9: memref<24x1xf32, #tpu.memory_space<vmem>>, %arg10: memref<24x128xf32, #tpu.memory_space<vmem>>, %arg11: memref<24x1xf32, #tpu.memory_space<vmem>>, %arg12: memref<24x1xf32, #tpu.memory_space<vmem>>) attributes {dimension_semantics = [#tpu.dimension_semantics<parallel>], iteration_bounds = array<i64: 1>, scalar_prefetch = 0 : i64, scratch_operands = 0 : i64, tpu.core_type = #tpu.core_type<tc>, window_params = [{transform_indices = @transform_0, window_bounds = array<i64: 24, 128>}, {pipeline_mode = #tpu.pipeline_mode<synchronous>, transform_indices = @transform_1, window_bounds = array<i64: 128, 128>}, {pipeline_mode = #tpu.pipeline_mode<synchronous>, transform_indices = @transform_2, window_bounds = array<i64: 128, 128>}, {pipeline_mode = #tpu.pipeline_mode<synchronous>, transform_indices = @transform_3, window_bounds = array<i64: 128, 128>}, {pipeline_mode = #tpu.pipeline_mode<synchronous>, transform_indices = @transform_4, window_bounds = array<i64: 128, 128>}, {transform_indices = @transform_5, window_bounds = array<i64: 24, 1>}, {transform_indices = @transform_6, window_bounds = array<i64: 24, 1>}, {transform_indices = @transform_7, window_bounds = array<i64: 24, 1>}, {transform_indices = @transform_8, window_bounds = array<i64: 24, 1>}, {transform_indices = @transform_9, window_bounds = array<i64: 24, 128>}, {transform_indices = @transform_10, window_bounds = array<i64: 24, 1>}, {transform_indices = @transform_11, window_bounds = array<i64: 24, 1>}]} {
    %c0 = arith.constant 0 : index
    %c0_0 = arith.constant 0 : index
    %0 = vector.load %arg1[%c0, %c0_0] : memref<24x128xf32, #tpu.memory_space<vmem>>, vector<24x128xf32>
    %c0_1 = arith.constant 0 : index
    %c0_2 = arith.constant 0 : index
    %1 = vector.load %arg2[%c0_1, %c0_2] : memref<128x128xf32, #tpu.memory_space<vmem>>, vector<128x128xf32>
    %cst = arith.constant dense<0.000000e+00> : vector<24x128xf32>
    %2 = tpu.matmul %0, %1, %cst {dimension_numbers = #tpu.dot_dimension_numbers<[1], [0], [0], [1], [0, 0, 1, 1], [], []>} : vector<24x128xf32>, vector<128x128xf32>, vector<24x128xf32> -> vector<24x128xf32>
    %c0_3 = arith.constant 0 : index
    %c0_4 = arith.constant 0 : index
    %3 = vector.load %arg3[%c0_3, %c0_4] : memref<128x128xf32, #tpu.memory_space<vmem>>, vector<128x128xf32>
    %cst_5 = arith.constant dense<0.000000e+00> : vector<24x128xf32>
    %4 = tpu.matmul %0, %3, %cst_5 {dimension_numbers = #tpu.dot_dimension_numbers<[1], [0], [0], [1], [0, 0, 1, 1], [], []>} : vector<24x128xf32>, vector<128x128xf32>, vector<24x128xf32> -> vector<24x128xf32>
    %cst_6 = arith.constant 0.000000e+00 : f32
    %5 = vector.broadcast %cst_6 : f32 to vector<24x128xf32>
    %6 = arith.subf %5, %4 : vector<24x128xf32>
    %c0_7 = arith.constant 0 : index
    %c0_8 = arith.constant 0 : index
    %7 = vector.load %arg6[%c0_7, %c0_8] : memref<24x1xf32, #tpu.memory_space<vmem>>, vector<24x1xf32>
    %c0_9 = arith.constant 0 : index
    %c0_10 = arith.constant 0 : index
    %8 = vector.load %arg7[%c0_9, %c0_10] : memref<24x1xf32, #tpu.memory_space<vmem>>, vector<24x1xf32>
    %9 = vector.broadcast %7 : vector<24x1xf32> to vector<24x128xf32>
    %10 = arith.mulf %2, %9 : vector<24x128xf32>
    %11 = vector.broadcast %8 : vector<24x1xf32> to vector<24x128xf32>
    %12 = arith.mulf %6, %11 : vector<24x128xf32>
    %13 = arith.subf %10, %12 : vector<24x128xf32>
    %c0_11 = arith.constant 0 : index
    %c0_12 = arith.constant 0 : index
    %14 = vector.load %arg8[%c0_11, %c0_12] : memref<24x1xf32, #tpu.memory_space<vmem>>, vector<24x1xf32>
    %15 = vector.broadcast %14 : vector<24x1xf32> to vector<24x128xf32>
    %16 = arith.addf %13, %15 : vector<24x128xf32>
    %cst_13 = arith.constant 0.000000e+00 : f32
    %17 = vector.broadcast %cst_13 : f32 to vector<24x128xf32>
    %18 = arith.maximumf %16, %17 : vector<24x128xf32>
    %19 = vector.broadcast %7 : vector<24x1xf32> to vector<24x128xf32>
    %20 = arith.mulf %6, %19 : vector<24x128xf32>
    %21 = vector.broadcast %8 : vector<24x1xf32> to vector<24x128xf32>
    %22 = arith.mulf %2, %21 : vector<24x128xf32>
    %23 = arith.addf %20, %22 : vector<24x128xf32>
    %c0_14 = arith.constant 0 : index
    %c0_15 = arith.constant 0 : index
    %24 = vector.load %arg9[%c0_14, %c0_15] : memref<24x1xf32, #tpu.memory_space<vmem>>, vector<24x1xf32>
    %25 = vector.broadcast %24 : vector<24x1xf32> to vector<24x128xf32>
    %26 = arith.addf %23, %25 : vector<24x128xf32>
    %cst_16 = arith.constant 0.000000e+00 : f32
    %27 = vector.broadcast %cst_16 : f32 to vector<24x128xf32>
    %28 = arith.maximumf %26, %27 : vector<24x128xf32>
    %cst_17 = arith.constant 0.00999999977 : f32
    %29 = vector.broadcast %cst_17 : f32 to vector<24x128xf32>
    %30 = arith.cmpf ogt, %18, %29 : vector<24x128xf32>
    %cst_18 = arith.constant 0.00999999977 : f32
    %31 = vector.broadcast %cst_18 : f32 to vector<24x128xf32>
    %32 = arith.subf %18, %31 : vector<24x128xf32>
    %cst_19 = arith.constant -0.00999999977 : f32
    %33 = vector.broadcast %cst_19 : f32 to vector<24x128xf32>
    %34 = arith.cmpf olt, %18, %33 : vector<24x128xf32>
    %cst_20 = arith.constant 0.00999999977 : f32
    %35 = vector.broadcast %cst_20 : f32 to vector<24x128xf32>
    %36 = arith.addf %18, %35 : vector<24x128xf32>
    %cst_21 = arith.constant 0.000000e+00 : f32
    %37 = vector.broadcast %cst_21 : f32 to vector<24x128xf32>
    %38 = arith.select %34, %36, %37 : vector<24x128xi1>, vector<24x128xf32>
    %39 = arith.select %30, %32, %38 : vector<24x128xi1>, vector<24x128xf32>
    %40 = arith.addf %39, %2 : vector<24x128xf32>
    %cst_22 = arith.constant 0.00999999977 : f32
    %41 = vector.broadcast %cst_22 : f32 to vector<24x128xf32>
    %42 = arith.cmpf ogt, %28, %41 : vector<24x128xf32>
    %cst_23 = arith.constant 0.00999999977 : f32
    %43 = vector.broadcast %cst_23 : f32 to vector<24x128xf32>
    %44 = arith.subf %28, %43 : vector<24x128xf32>
    %cst_24 = arith.constant -0.00999999977 : f32
    %45 = vector.broadcast %cst_24 : f32 to vector<24x128xf32>
    %46 = arith.cmpf olt, %28, %45 : vector<24x128xf32>
    %cst_25 = arith.constant 0.00999999977 : f32
    %47 = vector.broadcast %cst_25 : f32 to vector<24x128xf32>
    %48 = arith.addf %28, %47 : vector<24x128xf32>
    %cst_26 = arith.constant 0.000000e+00 : f32
    %49 = vector.broadcast %cst_26 : f32 to vector<24x128xf32>
    %50 = arith.select %46, %48, %49 : vector<24x128xi1>, vector<24x128xf32>
    %51 = arith.select %42, %44, %50 : vector<24x128xi1>, vector<24x128xf32>
    %52 = arith.addf %51, %6 : vector<24x128xf32>
    %c0_27 = arith.constant 0 : index
    %c0_28 = arith.constant 0 : index
    %53 = vector.load %arg4[%c0_27, %c0_28] : memref<128x128xf32, #tpu.memory_space<vmem>>, vector<128x128xf32>
    %cst_29 = arith.constant dense<0.000000e+00> : vector<24x128xf32>
    %54 = tpu.matmul %40, %53, %cst_29 {dimension_numbers = #tpu.dot_dimension_numbers<[1], [0], [0], [1], [0, 0, 1, 1], [], []>} : vector<24x128xf32>, vector<128x128xf32>, vector<24x128xf32> -> vector<24x128xf32>
    %c0_30 = arith.constant 0 : index
    %c0_31 = arith.constant 0 : index
    %55 = vector.load %arg5[%c0_30, %c0_31] : memref<128x128xf32, #tpu.memory_space<vmem>>, vector<128x128xf32>
    %cst_32 = arith.constant dense<0.000000e+00> : vector<24x128xf32>
    %56 = tpu.matmul %52, %55, %cst_32 {dimension_numbers = #tpu.dot_dimension_numbers<[1], [0], [0], [1], [0, 0, 1, 1], [], []>} : vector<24x128xf32>, vector<128x128xf32>, vector<24x128xf32> -> vector<24x128xf32>
    %57 = arith.subf %54, %56 : vector<24x128xf32>
    %c0_33 = arith.constant 0 : index
    %c0_34 = arith.constant 0 : index
    %58 = vector.load %arg10[%c0_33, %c0_34] : memref<24x128xf32, #tpu.memory_space<vmem>>, vector<24x128xf32>
    tpu.vector_store %arg10[%c0_33, %c0_34], %57 {strides = array<i32>} : memref<24x128xf32, #tpu.memory_space<vmem>>, vector<24x128xf32>,
    %cst_35 = arith.constant dense<0.000000e+00> : vector<24xf32>
    %59 = vector.multi_reduction <add>, %57, %cst_35 [1] : vector<24x128xf32> to vector<24xf32>
    %60 = vector.shape_cast %59 : vector<24xf32> to vector<24x1xf32>
    %c0_36 = arith.constant 0 : index
    %c0_37 = arith.constant 0 : index
    %61 = vector.load %arg11[%c0_36, %c0_37] : memref<24x1xf32, #tpu.memory_space<vmem>>, vector<24x1xf32>
    tpu.vector_store %arg11[%c0_36, %c0_37], %60 {strides = array<i32>} : memref<24x1xf32, #tpu.memory_space<vmem>>, vector<24x1xf32>,
    %62 = arith.mulf %57, %57 : vector<24x128xf32>
    %cst_38 = arith.constant dense<0.000000e+00> : vector<24xf32>
    %63 = vector.multi_reduction <add>, %62, %cst_38 [1] : vector<24x128xf32> to vector<24xf32>
    %64 = vector.shape_cast %63 : vector<24xf32> to vector<24x1xf32>
    %c0_39 = arith.constant 0 : index
    %c0_40 = arith.constant 0 : index
    %65 = vector.load %arg12[%c0_39, %c0_40] : memref<24x1xf32, #tpu.memory_space<vmem>>, vector<24x1xf32>
    tpu.vector_store %arg12[%c0_39, %c0_40], %64 {strides = array<i32>} : memref<24x1xf32, #tpu.memory_space<vmem>>, vector<24x1xf32>,
    return
  }
  func.func @transform_0(%arg0: i32) -> (i32, i32) {
    %c0_i32 = arith.constant 0 : i32
    %c0_i32_0 = arith.constant 0 : i32
    return %arg0, %c0_i32 : i32, i32
  }
  func.func @transform_1(%arg0: i32) -> (i32, i32) {
    %c0_i32 = arith.constant 0 : i32
    %c0_i32_0 = arith.constant 0 : i32
    %c0_i32_1 = arith.constant 0 : i32
    return %c0_i32, %c0_i32_0 : i32, i32
  }
  func.func @transform_2(%arg0: i32) -> (i32, i32) {
    %c0_i32 = arith.constant 0 : i32
    %c0_i32_0 = arith.constant 0 : i32
    %c0_i32_1 = arith.constant 0 : i32
    return %c0_i32, %c0_i32_0 : i32, i32
  }
  func.func @transform_3(%arg0: i32) -> (i32, i32) {
    %c0_i32 = arith.constant 0 : i32
    %c0_i32_0 = arith.constant 0 : i32
    %c0_i32_1 = arith.constant 0 : i32
    return %c0_i32, %c0_i32_0 : i32, i32
  }
  func.func @transform_4(%arg0: i32) -> (i32, i32) {
    %c0_i32 = arith.constant 0 : i32
    %c0_i32_0 = arith.constant 0 : i32
    %c0_i32_1 = arith.constant 0 : i32
    return %c0_i32, %c0_i32_0 : i32, i32
  }
  func.func @transform_5(%arg0: i32) -> (i32, i32) {
    %c0_i32 = arith.constant 0 : i32
    %c0_i32_0 = arith.constant 0 : i32
    return %arg0, %c0_i32 : i32, i32
  }
  func.func @transform_6(%arg0: i32) -> (i32, i32) {
    %c0_i32 = arith.constant 0 : i32
    %c0_i32_0 = arith.constant 0 : i32
    return %arg0, %c0_i32 : i32, i32
  }
  func.func @transform_7(%arg0: i32) -> (i32, i32) {
    %c0_i32 = arith.constant 0 : i32
    %c0_i32_0 = arith.constant 0 : i32
    return %arg0, %c0_i32 : i32, i32
  }
  func.func @transform_8(%arg0: i32) -> (i32, i32) {
    %c0_i32 = arith.constant 0 : i32
    %c0_i32_0 = arith.constant 0 : i32
    return %arg0, %c0_i32 : i32, i32
  }
  func.func @transform_9(%arg0: i32) -> (i32, i32) {
    %c0_i32 = arith.constant 0 : i32
    %c0_i32_0 = arith.constant 0 : i32
    return %arg0, %c0_i32 : i32, i32
  }
  func.func @transform_10(%arg0: i32) -> (i32, i32) {
    %c0_i32 = arith.constant 0 : i32
    %c0_i32_0 = arith.constant 0 : i32
    return %arg0, %c0_i32 : i32, i32
  }
  func.func @transform_11(%arg0: i32) -> (i32, i32) {
    %c0_i32 = arith.constant 0 : i32
    %c0_i32_0 = arith.constant 0 : i32
    return %arg0, %c0_i32 : i32, i32
  }
}

module attributes {stable_mosaic.version = 11 : i64} {
  func.func @_affine_kernel(%arg0: i32, %arg1: memref<256x12xf32, #tpu.memory_space<vmem>>, %arg2: memref<1x12xf32, #tpu.memory_space<vmem>>, %arg3: memref<1x12xf32, #tpu.memory_space<vmem>>, %arg4: memref<256x12xf32, #tpu.memory_space<vmem>>) attributes {dimension_semantics = [#tpu.dimension_semantics<parallel>], iteration_bounds = array<i64: 1>, scalar_prefetch = 0 : i64, scratch_operands = 0 : i64, tpu.core_type = #tpu.core_type<tc>, window_params = [{transform_indices = @transform_0, window_bounds = array<i64: 256, 12>}, {pipeline_mode = #tpu.pipeline_mode<synchronous>, transform_indices = @transform_1, window_bounds = array<i64: 1, 12>}, {pipeline_mode = #tpu.pipeline_mode<synchronous>, transform_indices = @transform_2, window_bounds = array<i64: 1, 12>}, {transform_indices = @transform_3, window_bounds = array<i64: 256, 12>}]} {
    %c0 = arith.constant 0 : index
    %c0_0 = arith.constant 0 : index
    %0 = vector.load %arg1[%c0, %c0_0] : memref<256x12xf32, #tpu.memory_space<vmem>>, vector<256x12xf32>
    %c0_1 = arith.constant 0 : index
    %c0_2 = arith.constant 0 : index
    %1 = vector.load %arg2[%c0_1, %c0_2] : memref<1x12xf32, #tpu.memory_space<vmem>>, vector<1x12xf32>
    %2 = vector.broadcast %1 : vector<1x12xf32> to vector<256x12xf32>
    %3 = arith.mulf %0, %2 : vector<256x12xf32>
    %c0_3 = arith.constant 0 : index
    %c0_4 = arith.constant 0 : index
    %4 = vector.load %arg3[%c0_3, %c0_4] : memref<1x12xf32, #tpu.memory_space<vmem>>, vector<1x12xf32>
    %5 = vector.broadcast %4 : vector<1x12xf32> to vector<256x12xf32>
    %6 = arith.addf %3, %5 : vector<256x12xf32>
    %c0_5 = arith.constant 0 : index
    %c0_6 = arith.constant 0 : index
    %7 = vector.load %arg4[%c0_5, %c0_6] : memref<256x12xf32, #tpu.memory_space<vmem>>, vector<256x12xf32>
    tpu.vector_store %arg4[%c0_5, %c0_6], %6 {strides = array<i32>} : memref<256x12xf32, #tpu.memory_space<vmem>>, vector<256x12xf32>,
    return
  }
  func.func @transform_0(%arg0: i32) -> (i32, i32) {
    %c0_i32 = arith.constant 0 : i32
    %c0_i32_0 = arith.constant 0 : i32
    return %arg0, %c0_i32 : i32, i32
  }
  func.func @transform_1(%arg0: i32) -> (i32, i32) {
    %c0_i32 = arith.constant 0 : i32
    %c0_i32_0 = arith.constant 0 : i32
    %c0_i32_1 = arith.constant 0 : i32
    return %c0_i32, %c0_i32_0 : i32, i32
  }
  func.func @transform_2(%arg0: i32) -> (i32, i32) {
    %c0_i32 = arith.constant 0 : i32
    %c0_i32_0 = arith.constant 0 : i32
    %c0_i32_1 = arith.constant 0 : i32
    return %c0_i32, %c0_i32_0 : i32, i32
  }
  func.func @transform_3(%arg0: i32) -> (i32, i32) {
    %c0_i32 = arith.constant 0 : i32
    %c0_i32_0 = arith.constant 0 : i32
    return %arg0, %c0_i32 : i32, i32
  }
}

module attributes {stable_mosaic.version = 11 : i64} {
  func.func @_matmul_stats_kernel(%arg0: i32, %arg1: memref<256x12xf32, #tpu.memory_space<vmem>>, %arg2: memref<1x12xf32, #tpu.memory_space<vmem>>, %arg3: memref<1x12xf32, #tpu.memory_space<vmem>>, %arg4: memref<12x12xf32, #tpu.memory_space<vmem>>, %arg5: memref<1x12xf32, #tpu.memory_space<vmem>>, %arg6: memref<256x12xf32, #tpu.memory_space<vmem>>, %arg7: memref<1x12xf32, #tpu.memory_space<vmem>>, %arg8: memref<1x12xf32, #tpu.memory_space<vmem>>) attributes {dimension_semantics = [#tpu.dimension_semantics<arbitrary>], iteration_bounds = array<i64: 1>, scalar_prefetch = 0 : i64, scratch_operands = 0 : i64, tpu.core_type = #tpu.core_type<tc>, window_params = [{transform_indices = @transform_0, window_bounds = array<i64: 256, 12>}, {pipeline_mode = #tpu.pipeline_mode<synchronous>, transform_indices = @transform_1, window_bounds = array<i64: 1, 12>}, {pipeline_mode = #tpu.pipeline_mode<synchronous>, transform_indices = @transform_2, window_bounds = array<i64: 1, 12>}, {pipeline_mode = #tpu.pipeline_mode<synchronous>, transform_indices = @transform_3, window_bounds = array<i64: 12, 12>}, {pipeline_mode = #tpu.pipeline_mode<synchronous>, transform_indices = @transform_4, window_bounds = array<i64: 1, 12>}, {transform_indices = @transform_5, window_bounds = array<i64: 256, 12>}, {pipeline_mode = #tpu.pipeline_mode<synchronous>, transform_indices = @transform_6, window_bounds = array<i64: 1, 12>}, {pipeline_mode = #tpu.pipeline_mode<synchronous>, transform_indices = @transform_7, window_bounds = array<i64: 1, 12>}]} {
    %c0_i32 = arith.constant 0 : i32
    %0 = arith.cmpi eq, %arg0, %c0_i32 : i32
    %1 = arith.extui %0 : i1 to i32
    %c0_i32_0 = arith.constant 0 : i32
    %2 = arith.cmpi ne, %1, %c0_i32_0 : i32
    scf.if %2 {
      %cst_23 = arith.constant 0.000000e+00 : f32
      %29 = vector.broadcast %cst_23 : f32 to vector<1x12xf32>
      %c0_24 = arith.constant 0 : index
      %c0_25 = arith.constant 0 : index
      %30 = vector.load %arg7[%c0_24, %c0_25] : memref<1x12xf32, #tpu.memory_space<vmem>>, vector<1x12xf32>
      tpu.vector_store %arg7[%c0_24, %c0_25], %29 {strides = array<i32>} : memref<1x12xf32, #tpu.memory_space<vmem>>, vector<1x12xf32>,
      %cst_26 = arith.constant 0.000000e+00 : f32
      %31 = vector.broadcast %cst_26 : f32 to vector<1x12xf32>
      %c0_27 = arith.constant 0 : index
      %c0_28 = arith.constant 0 : index
      %32 = vector.load %arg8[%c0_27, %c0_28] : memref<1x12xf32, #tpu.memory_space<vmem>>, vector<1x12xf32>
      tpu.vector_store %arg8[%c0_27, %c0_28], %31 {strides = array<i32>} : memref<1x12xf32, #tpu.memory_space<vmem>>, vector<1x12xf32>,
    } else {
    }
    %c0 = arith.constant 0 : index
    %c0_1 = arith.constant 0 : index
    %3 = vector.load %arg1[%c0, %c0_1] : memref<256x12xf32, #tpu.memory_space<vmem>>, vector<256x12xf32>
    %c0_2 = arith.constant 0 : index
    %c0_3 = arith.constant 0 : index
    %4 = vector.load %arg2[%c0_2, %c0_3] : memref<1x12xf32, #tpu.memory_space<vmem>>, vector<1x12xf32>
    %5 = vector.broadcast %4 : vector<1x12xf32> to vector<256x12xf32>
    %6 = arith.mulf %3, %5 : vector<256x12xf32>
    %c0_4 = arith.constant 0 : index
    %c0_5 = arith.constant 0 : index
    %7 = vector.load %arg3[%c0_4, %c0_5] : memref<1x12xf32, #tpu.memory_space<vmem>>, vector<1x12xf32>
    %8 = vector.broadcast %7 : vector<1x12xf32> to vector<256x12xf32>
    %9 = arith.addf %6, %8 : vector<256x12xf32>
    %cst = arith.constant 0.000000e+00 : f32
    %10 = vector.broadcast %cst : f32 to vector<256x12xf32>
    %11 = arith.maximumf %9, %10 : vector<256x12xf32>
    %c0_6 = arith.constant 0 : index
    %c0_7 = arith.constant 0 : index
    %12 = vector.load %arg4[%c0_6, %c0_7] : memref<12x12xf32, #tpu.memory_space<vmem>>, vector<12x12xf32>
    %cst_8 = arith.constant dense<0.000000e+00> : vector<256x12xf32>
    %13 = tpu.matmul %11, %12, %cst_8 {dimension_numbers = #tpu.dot_dimension_numbers<[1], [0], [0], [1], [0, 0, 1, 1], [], []>} : vector<256x12xf32>, vector<12x12xf32>, vector<256x12xf32> -> vector<256x12xf32>
    %c0_9 = arith.constant 0 : index
    %c0_10 = arith.constant 0 : index
    %14 = vector.load %arg5[%c0_9, %c0_10] : memref<1x12xf32, #tpu.memory_space<vmem>>, vector<1x12xf32>
    %15 = vector.broadcast %14 : vector<1x12xf32> to vector<256x12xf32>
    %16 = arith.addf %13, %15 : vector<256x12xf32>
    %c0_11 = arith.constant 0 : index
    %c0_12 = arith.constant 0 : index
    %17 = vector.load %arg6[%c0_11, %c0_12] : memref<256x12xf32, #tpu.memory_space<vmem>>, vector<256x12xf32>
    tpu.vector_store %arg6[%c0_11, %c0_12], %16 {strides = array<i32>} : memref<256x12xf32, #tpu.memory_space<vmem>>, vector<256x12xf32>,
    %c0_13 = arith.constant 0 : index
    %c0_14 = arith.constant 0 : index
    %18 = vector.load %arg7[%c0_13, %c0_14] : memref<1x12xf32, #tpu.memory_space<vmem>>, vector<1x12xf32>
    %cst_15 = arith.constant dense<0.000000e+00> : vector<12xf32>
    %19 = vector.multi_reduction <add>, %16, %cst_15 [0] : vector<256x12xf32> to vector<12xf32>
    %20 = vector.shape_cast %19 : vector<12xf32> to vector<1x12xf32>
    %21 = arith.addf %18, %20 : vector<1x12xf32>
    %c0_16 = arith.constant 0 : index
    %c0_17 = arith.constant 0 : index
    %22 = vector.load %arg7[%c0_16, %c0_17] : memref<1x12xf32, #tpu.memory_space<vmem>>, vector<1x12xf32>
    tpu.vector_store %arg7[%c0_16, %c0_17], %21 {strides = array<i32>} : memref<1x12xf32, #tpu.memory_space<vmem>>, vector<1x12xf32>,
    %c0_18 = arith.constant 0 : index
    %c0_19 = arith.constant 0 : index
    %23 = vector.load %arg8[%c0_18, %c0_19] : memref<1x12xf32, #tpu.memory_space<vmem>>, vector<1x12xf32>
    %24 = arith.mulf %16, %16 : vector<256x12xf32>
    %cst_20 = arith.constant dense<0.000000e+00> : vector<12xf32>
    %25 = vector.multi_reduction <add>, %24, %cst_20 [0] : vector<256x12xf32> to vector<12xf32>
    %26 = vector.shape_cast %25 : vector<12xf32> to vector<1x12xf32>
    %27 = arith.addf %23, %26 : vector<1x12xf32>
    %c0_21 = arith.constant 0 : index
    %c0_22 = arith.constant 0 : index
    %28 = vector.load %arg8[%c0_21, %c0_22] : memref<1x12xf32, #tpu.memory_space<vmem>>, vector<1x12xf32>
    tpu.vector_store %arg8[%c0_21, %c0_22], %27 {strides = array<i32>} : memref<1x12xf32, #tpu.memory_space<vmem>>, vector<1x12xf32>,
    return
  }
  func.func @transform_0(%arg0: i32) -> (i32, i32) {
    %c0_i32 = arith.constant 0 : i32
    %c0_i32_0 = arith.constant 0 : i32
    return %arg0, %c0_i32 : i32, i32
  }
  func.func @transform_1(%arg0: i32) -> (i32, i32) {
    %c0_i32 = arith.constant 0 : i32
    %c0_i32_0 = arith.constant 0 : i32
    %c0_i32_1 = arith.constant 0 : i32
    return %c0_i32, %c0_i32_0 : i32, i32
  }
  func.func @transform_2(%arg0: i32) -> (i32, i32) {
    %c0_i32 = arith.constant 0 : i32
    %c0_i32_0 = arith.constant 0 : i32
    %c0_i32_1 = arith.constant 0 : i32
    return %c0_i32, %c0_i32_0 : i32, i32
  }
  func.func @transform_3(%arg0: i32) -> (i32, i32) {
    %c0_i32 = arith.constant 0 : i32
    %c0_i32_0 = arith.constant 0 : i32
    %c0_i32_1 = arith.constant 0 : i32
    return %c0_i32, %c0_i32_0 : i32, i32
  }
  func.func @transform_4(%arg0: i32) -> (i32, i32) {
    %c0_i32 = arith.constant 0 : i32
    %c0_i32_0 = arith.constant 0 : i32
    %c0_i32_1 = arith.constant 0 : i32
    return %c0_i32, %c0_i32_0 : i32, i32
  }
  func.func @transform_5(%arg0: i32) -> (i32, i32) {
    %c0_i32 = arith.constant 0 : i32
    %c0_i32_0 = arith.constant 0 : i32
    return %arg0, %c0_i32 : i32, i32
  }
  func.func @transform_6(%arg0: i32) -> (i32, i32) {
    %c0_i32 = arith.constant 0 : i32
    %c0_i32_0 = arith.constant 0 : i32
    %c0_i32_1 = arith.constant 0 : i32
    return %c0_i32, %c0_i32_0 : i32, i32
  }
  func.func @transform_7(%arg0: i32) -> (i32, i32) {
    %c0_i32 = arith.constant 0 : i32
    %c0_i32_0 = arith.constant 0 : i32
    %c0_i32_1 = arith.constant 0 : i32
    return %c0_i32, %c0_i32_0 : i32, i32
  }
}

</mosaic_0001>

<bundles_post_ra>
// kernel: tile.23
= control target key start
LH: loop header
LB: loop body
LE: loop exit
PB: predicated region body
PF: predicated region fallthrough
CT: control target
= control target key end

     0   :  { %s22_s0 = inlined_call_operand.vmem [shape: f32[12], index: 0, kind: input, shape index: {}]   ;;  %s23_s1 = inlined_call_operand.vmem [shape: f32[2,1,1,12], index: 1, kind: output, shape index: {}]  }
   0x1   :  { %v4_v0 = vld [vmem:[%s22_s0] ss:$0 sm:$0xff] }
   0x2   :  { %5 = vst [vmem:[%s23_s1] sm:$0x3] %v4_v0 }

// kernel: tile.0
= control target key start
LH: loop header
LB: loop body
LE: loop exit
PB: predicated region body
PF: predicated region fallthrough
CT: control target
= control target key end

     0   :  { %s98_s8 = smov 127   ;;  %s99_s9 = smov 123   ;;  %vm7_vm0 = vcmask 7168   ;;  %s169_s0 = inlined_call_operand.vmem [shape: f32[2,1,1,12], index: 0, kind: input, shape index: {}]   ;;  %s170_s1 = inlined_call_operand.vmem [shape: f32[24,1], index: 1, kind: output, shape index: {}]  }
   0x1   :  { %v4_v0 = vld [vmem:[%s169_s0] sm:$0x3]  ;;  %s97_s0 = smov 125   ;;  %s100_s10 = smov 124  }
   0x2   :  { %5 = vst [vmem:[#allocation0] sm:$0x3] %v4_v0  ;;  %s101_s11 = smov 126   ;;  %s102_s12 = smov 122  }
   0x3   :  { %s103_s13 = smov 120   ;;  %s104_s14 = smov 121  }
   0x4   :  { %s105_s15 = smov 119   ;;  %s106_s16 = smov 117  }
   0x5   :  { %s107_s17 = smov 118  }
   0x9   :  { %v21_v1 = vld [vmem:[#allocation0] sm:$0x3]  }
   0xa   :  { %v9_v2 = vld [vmem:[#allocation0] sm:$0x3]   ;;  %22 = vrot.lane.b32.xlu1 %v21_v1, %s97_s0 }
   0xb   :  { %10 = vrot.lane.b32.xlu0 %v9_v2, %s98_s8  ;;  %v33_v3 = vld [vmem:[#allocation0] sm:$0x3]  }
   0xc   :  { %34 = vrot.lane.b32.xlu2 %v33_v3, %s99_s9  ;;  %v27_v4 = vld [vmem:[#allocation0] sm:$0x3]  }
   0xd   :  { %v15_v5 = vld [vmem:[#allocation0] sm:$0x3]  }
   0xe   :  { %v39_v6 = vld [vmem:[#allocation0] sm:$0x3]  }
   0xf   :  { %v51_v7 = vld [vmem:[#allocation0] sm:$0x3]  }
  0x10   :  { %v45_v8 = vld [vmem:[#allocation0] sm:$0x3]  }
  0x11   :  { %v57_v9 = vld [vmem:[#allocation0] sm:$0x3]  }
  0x12   :  { %28 = vrot.lane.b32.xlu1 %v27_v4, %s100_s10  ;;  %v69_v10 = vld [vmem:[#allocation0] sm:$0x3]  }
  0x13   :  { %16 = vrot.lane.b32.xlu0 %v15_v5, %s101_s11  ;;  %v63_v11 = vld [vmem:[#allocation0] sm:$0x3]  }
  0x14   :  { %40 = vrot.lane.b32.xlu2 %v39_v6, %s102_s12  ;;  %v6_v12 = vld [vmem:[#allocation0] sm:$0x3]  }
  0x15   :  { %8 = vst.msk [vmem:[%s170_s1] ss:$12 sm:$0x3] %vm7_vm0, %v6_v12  }
  0x1a   :  { %52 = vrot.lane.b32.xlu1 %v51_v7, %s103_s13 }
  0x1b   :  { %46 = vrot.lane.b32.xlu0 %v45_v8, %s104_s14 }
  0x1c   :  { %58 = vrot.lane.b32.xlu2 %v57_v9, %s105_s15 }
  0x22   :  { %70 = vrot.lane.b32.xlu1 %v69_v10, %s106_s16 }
  0x23   :  { %64 = vrot.lane.b32.xlu0 %v63_v11, %s107_s17 }
  0x66   :  { %v35_v13 = vpop.permute.xlu2 %34  }
  0x67   :  { %79 = vst.msk [vmem:[%s170_s1 + $0x5] ss:$12 sm:$0x3] %vm7_vm0, %v35_v13  }
  0x6e   :  { %v41_v14 = vpop.permute.xlu2 %40  }
  0x6f   :  { %80 = vst.msk [vmem:[%s170_s1 + $0x6] ss:$12 sm:$0x3] %vm7_vm0, %v41_v14  }
  0x76   :  { %v59_v15 = vpop.permute.xlu2 %58  }
  0x77   :  { %83 = vst.msk [vmem:[%s170_s1 + $0x9] ss:$12 sm:$0x3] %vm7_vm0, %v59_v15  }
  0x7c   :  { %v23_v16 = vpop.permute.xlu1 %22  }
  0x7d   :  { %v11_v17 = vpop.permute.xlu0 %10   ;;  %77 = vst.msk [vmem:[%s170_s1 + $0x3] ss:$12 sm:$0x3] %vm7_vm0, %v23_v16  }
  0x7e   :  { %75 = vst.msk [vmem:[%s170_s1 + $0x1] ss:$12 sm:$0x3] %vm7_vm0, %v11_v17  }
  0x84   :  { %v29_v18 = vpop.permute.xlu1 %28  }
  0x85   :  { %v17_v19 = vpop.permute.xlu0 %16   ;;  %78 = vst.msk [vmem:[%s170_s1 + $0x4] ss:$12 sm:$0x3] %vm7_vm0, %v29_v18  }
  0x86   :  { %76 = vst.msk [vmem:[%s170_s1 + $0x2] ss:$12 sm:$0x3] %vm7_vm0, %v17_v19  }
  0x8c   :  { %v53_v20 = vpop.permute.xlu1 %52  }
  0x8d   :  { %v47_v21 = vpop.permute.xlu0 %46   ;;  %82 = vst.msk [vmem:[%s170_s1 + $0x8] ss:$12 sm:$0x3] %vm7_vm0, %v53_v20  }
  0x8e   :  { %81 = vst.msk [vmem:[%s170_s1 + $0x7] ss:$12 sm:$0x3] %vm7_vm0, %v47_v21  }
  0x94   :  { %v71_v22 = vpop.permute.xlu1 %70  }
  0x95   :  { %v65_v23 = vpop.permute.xlu0 %64   ;;  %85 = vst.msk [vmem:[%s170_s1 + $0xb] ss:$12 sm:$0x3] %vm7_vm0, %v71_v22  }
  0x96   :  { %84 = vst.msk [vmem:[%s170_s1 + $0xa] ss:$12 sm:$0x3] %vm7_vm0, %v65_v23  }

// kernel: msftcn_forward.5
= control target key start
LH: loop header
LB: loop body
LE: loop exit
PB: predicated region body
PF: predicated region fallthrough
CT: control target
= control target key end

     0   :  { %vm236_vm0 = vcmask 1043456   ;;  %vm139_vm1 = vcmask 31744   ;;  %vm353_vm2 = vcmask 97280   ;;  %vm27_vm3 = vcmask 90112   ;;  %s1256_s3 = inlined_call_operand.vmem [shape: f32[4,12], index: 3, kind: input, shape index: {}]   ;;  %s1257_s0 = inlined_call_operand.vmem [shape: f32[256,4], index: 0, kind: input, shape index: {}]   ;;  %s1258_s1 = inlined_call_operand.vmem [shape: f32[1,4], index: 1, kind: input, shape index: {}]   ;;  %s1259_s2 = inlined_call_operand.vmem [shape: f32[1,4], index: 2, kind: input, shape index: {}]   ;;  %s1260_s4 = inlined_call_operand.vmem [shape: f32[1,12], index: 4, kind: input, shape index: {}]   ;;  %s1261_s5 = inlined_call_operand.vmem [shape: f32[256,12], index: 5, kind: output, shape index: {0}]   ;;  %s1262_s6 = inlined_call_operand.vmem [shape: f32[1,12], index: 6, kind: output, shape index: {1}]   ;;  %s1263_s7 = inlined_call_operand.vmem [shape: f32[1,12], index: 7, kind: output, shape index: {2}]  }
   0x1   :  { %v134_v0 = vld [vmem:[%s1256_s3] sm:$0xf]  ;;  %v31_v8 = vld [vmem:[%s1257_s0 + $0x8] sm:$0xff]  ;;  %v32_v20 = vld [vmem:[%s1257_s0 + $0x10] sm:$0xff] }
   0x2   :  { %v30_v1 = vld [vmem:[%s1257_s0] sm:$0xff]  ;;  %575 = vmatpush.msk.msra.mxu0 %vm236_vm0, %v134_v0  ;;  %608 = vmatpush.msk.msra.mxu1 %vm236_vm0, %v134_v0  ;;  %v39_v9 = vld [vmem:[%s1257_s0 + $0x48] sm:$0xff]  ;;  %v40_v21 = vld [vmem:[%s1257_s0 + $0x50] sm:$0xff] }
   0x3   :  { %v665_v2 = vld [vmem:[%s1258_s1] ss:$0 sm:$0xff]  ;;  %609 = vmatpush.msk.msra.mxu2 %vm236_vm0, %v134_v0  ;;  %610 = vmatpush.msk.msra.mxu3 %vm236_vm0, %v134_v0  ;;  %v47_v13 = vld [vmem:[%s1257_s0 + $0x88] sm:$0xff]  ;;  %v48_v24 = vld [vmem:[%s1257_s0 + $0x90] sm:$0xff] }
   0x4   :  { %v670_v3 = vld [vmem:[%s1259_s2] ss:$0 sm:$0xff]  ;;  %v66_v5 = vmul.f32 %v665_v2, %v30_v1  ;;  %v67_v15 = vmul.f32 %v665_v2, %v31_v8  ;;  %v75_v16 = vmul.f32 %v665_v2, %v39_v9  ;;  %v83_v17 = vmul.f32 %v665_v2, %v47_v13  ;;  %v33_v32 = vld [vmem:[%s1257_s0 + $0x18] sm:$0xff]  ;;  %v55_v35 = vld [vmem:[%s1257_s0 + $0xc8] sm:$0xff] }
   0x5   :  { %v38_v4 = vld [vmem:[%s1257_s0 + $0x40] sm:$0xff]  ;;  %v68_v26 = vmul.f32 %v665_v2, %v32_v20  ;;  %v76_v27 = vmul.f32 %v665_v2, %v40_v21  ;;  %v84_v29 = vmul.f32 %v665_v2, %v48_v24  ;;  %v41_v33 = vld [vmem:[%s1257_s0 + $0x58] sm:$0xff]  ;;  %v91_v37 = vmul.f32 %v665_v2, %v55_v35  ;;  %v56_v47 = vld [vmem:[%s1257_s0 + $0xd0] sm:$0xff] }
   0x6   :  { %v74_v6 = vmul.f32 %v665_v2, %v38_v4  ;;  %v46_v7 = vld [vmem:[%s1257_s0 + $0x80] sm:$0xff]  ;;  %v102_v11 = vadd.f32 %v670_v3, %v66_v5  ;;  %v103_v18 = vadd.f32 %v670_v3, %v67_v15  ;;  %v111_v19 = vadd.f32 %v670_v3, %v75_v16  ;;  %v49_v36 = vld [vmem:[%s1257_s0 + $0x98] sm:$0xff]  ;;  %v35_v59 = vld [vmem:[%s1257_s0 + $0x28] sm:$0xff] }
   0x7   :  { %v82_v10 = vmul.f32 %v665_v2, %v46_v7  ;;  %v119_v22 = vadd.f32 %v670_v3, %v83_v17  ;;  %v54_v23 = vld [vmem:[%s1257_s0 + $0xc0] sm:$0xff]  ;;  %v104_v30 = vadd.f32 %v670_v3, %v68_v26  ;;  %v112_v31 = vadd.f32 %v670_v3, %v76_v27  ;;  %v57_v53 = vld [vmem:[%s1257_s0 + $0xd8] sm:$0xff]  ;;  %v43_v60 = vld [vmem:[%s1257_s0 + $0x68] sm:$0xff] }
   0x8   :  { %v110_v12 = vadd.f32 %v670_v3, %v74_v6  ;;  %576 = vmatmul.msk.f32.vlgmr.msra.gmra.mxu0 %vm139_vm1, %v102_v11  ;;  %v90_v25 = vmul.f32 %v665_v2, %v54_v23  ;;  %v120_v34 = vadd.f32 %v670_v3, %v84_v29  ;;  %v69_v38 = vmul.f32 %v665_v2, %v33_v32  ;;  %v34_v44 = vld [vmem:[%s1257_s0 + $0x20] sm:$0xff]  ;;  %v61_v56 = vld [vmem:[%s1257_s0 + $0xf8] sm:$0xff]  ;;  %v51_v63 = vld [vmem:[%s1257_s0 + $0xa8] sm:$0xff] }
   0x9   :  { %v118_v14 = vadd.f32 %v670_v3, %v82_v10  ;;  %v77_v39 = vmul.f32 %v665_v2, %v41_v33  ;;  %v127_v40 = vadd.f32 %v670_v3, %v91_v37  ;;  %v85_v41 = vmul.f32 %v665_v2, %v49_v36  ;;  %v42_v45 = vld [vmem:[%s1257_s0 + $0x60] sm:$0xff]  ;;  %v36_v11 = vld [vmem:[%s1257_s0 + $0x30] sm:$0xff]  ;;  %v59_v16 = vld [vmem:[%s1257_s0 + $0xe8] sm:$0xff] }
   0xa   :  { %584 = vmatmul.msk.f32.vlgmr.msra.gmra.mxu1 %vm139_vm1, %v110_v12  ;;  %v126_v28 = vadd.f32 %v670_v3, %v90_v25  ;;  %v105_v42 = vadd.f32 %v670_v3, %v69_v38  ;;  %v50_v48 = vld [vmem:[%s1257_s0 + $0xa0] sm:$0xff]  ;;  %v92_v49 = vmul.f32 %v665_v2, %v56_v47  ;;  %v70_v50 = vmul.f32 %v665_v2, %v34_v44  ;;  %v44_v12 = vld [vmem:[%s1257_s0 + $0x70] sm:$0xff]  ;;  %v37_v23 = vld [vmem:[%s1257_s0 + $0x38] sm:$0xff] }
   0xb   :  { %592 = vmatmul.msk.f32.vlgmr.msra.gmra.mxu2 %vm139_vm1, %v118_v14  ;;  %v113_v43 = vadd.f32 %v670_v3, %v77_v39  ;;  %v121_v46 = vadd.f32 %v670_v3, %v85_v41  ;;  %v78_v51 = vmul.f32 %v665_v2, %v42_v45  ;;  %v86_v54 = vmul.f32 %v665_v2, %v50_v48  ;;  %v58_v1 = vld [vmem:[%s1257_s0 + $0xe0] sm:$0xff]  ;;  %v52_v14 = vld [vmem:[%s1257_s0 + $0xb0] sm:$0xff]  ;;  %v45_v24 = vld [vmem:[%s1257_s0 + $0x78] sm:$0xff] }
   0xc   :  { %600 = vmatmul.msk.f32.vlgmr.msra.gmra.mxu3 %vm139_vm1, %v126_v28  ;;  %v128_v52 = vadd.f32 %v670_v3, %v92_v49  ;;  %v93_v55 = vmul.f32 %v665_v2, %v57_v53  ;;  %v106_v57 = vadd.f32 %v670_v3, %v70_v50  ;;  %v97_v62 = vmul.f32 %v665_v2, %v61_v56  ;;  %v53_v26 = vld [vmem:[%s1257_s0 + $0xb8] sm:$0xff]  ;;  %v60_v28 = vld [vmem:[%s1257_s0 + $0xf0] sm:$0xff] }
   0xd   :  { %v114_v58 = vadd.f32 %v670_v3, %v78_v51  ;;  %v122_v61 = vadd.f32 %v670_v3, %v86_v54  ;;  %v71_v5 = vmul.f32 %v665_v2, %v35_v59  ;;  %v79_v6 = vmul.f32 %v665_v2, %v43_v60 }
   0xe   :  { %v129_v0 = vadd.f32 %v670_v3, %v93_v55  ;;  %v133_v4 = vadd.f32 %v670_v3, %v97_v62  ;;  %v87_v7 = vmul.f32 %v665_v2, %v51_v63  ;;  %v94_v8 = vmul.f32 %v665_v2, %v58_v1 }
   0xf   :  { %v107_v9 = vadd.f32 %v670_v3, %v71_v5  ;;  %v115_v10 = vadd.f32 %v670_v3, %v79_v6  ;;  %v72_v17 = vmul.f32 %v665_v2, %v36_v11  ;;  %v95_v20 = vmul.f32 %v665_v2, %v59_v16 }
  0x10   :  { %577 = vmatmul.msk.f32.gmra.mxu0 %vm139_vm1, %v103_v18  ;;  %v123_v13 = vadd.f32 %v670_v3, %v87_v7  ;;  %v130_v15 = vadd.f32 %v670_v3, %v94_v8  ;;  %v80_v18 = vmul.f32 %v665_v2, %v44_v12  ;;  %v73_v29 = vmul.f32 %v665_v2, %v37_v23 }
  0x11   :  { %v108_v21 = vadd.f32 %v670_v3, %v72_v17  ;;  %v131_v27 = vadd.f32 %v670_v3, %v95_v20  ;;  %v96_v32 = vmul.f32 %v665_v2, %v60_v28 }
  0x12   :  { %585 = vmatmul.msk.f32.gmra.mxu1 %vm139_vm1, %v111_v19  ;;  %v88_v19 = vmul.f32 %v665_v2, %v52_v14  ;;  %v109_v33 = vadd.f32 %v670_v3, %v73_v29 }
  0x13   :  { %593 = vmatmul.msk.f32.gmra.mxu2 %vm139_vm1, %v119_v22  ;;  %v116_v22 = vadd.f32 %v670_v3, %v80_v18  ;;  %v132_v36 = vadd.f32 %v670_v3, %v96_v32 }
  0x14   :  { %601 = vmatmul.msk.f32.gmra.mxu3 %vm139_vm1, %v127_v40  ;;  %v124_v25 = vadd.f32 %v670_v3, %v88_v19 }
  0x18   :  { %578 = vmatmul.msk.f32.gmra.mxu0 %vm139_vm1, %v104_v30  ;;  %v81_v30 = vmul.f32 %v665_v2, %v45_v24 }
  0x1a   :  { %586 = vmatmul.msk.f32.gmra.mxu1 %vm139_vm1, %v112_v31  ;;  %v89_v31 = vmul.f32 %v665_v2, %v53_v26  ;;  %v864_v2 = vld [vmem:[%s1260_s4] ss:$0 sm:$0xff] }
  0x1b   :  { %594 = vmatmul.msk.f32.gmra.mxu2 %vm139_vm1, %v120_v34  ;;  %v117_v34 = vadd.f32 %v670_v3, %v81_v30 }
  0x1c   :  { %602 = vmatmul.msk.f32.gmra.mxu3 %vm139_vm1, %v128_v52  ;;  %v125_v35 = vadd.f32 %v670_v3, %v89_v31 }
  0x20   :  { %579 = vmatmul.msk.f32.gmra.mxu0 %vm139_vm1, %v105_v42 }
  0x22   :  { %587 = vmatmul.msk.f32.gmra.mxu1 %vm139_vm1, %v113_v43 }
  0x23   :  { %595 = vmatmul.msk.f32.gmra.mxu2 %vm139_vm1, %v121_v46 }
  0x24   :  { %603 = vmatmul.msk.f32.gmra.mxu3 %vm139_vm1, %v129_v0 }
  0x28   :  { %580 = vmatmul.msk.f32.gmra.mxu0 %vm139_vm1, %v106_v57 }
  0x2a   :  { %588 = vmatmul.msk.f32.gmra.mxu1 %vm139_vm1, %v114_v58 }
  0x2b   :  { %596 = vmatmul.msk.f32.gmra.mxu2 %vm139_vm1, %v122_v61 }
  0x2c   :  { %604 = vmatmul.msk.f32.gmra.mxu3 %vm139_vm1, %v130_v15 }
  0x30   :  { %581 = vmatmul.msk.f32.gmra.mxu0 %vm139_vm1, %v107_v9 }
  0x32   :  { %589 = vmatmul.msk.f32.gmra.mxu1 %vm139_vm1, %v115_v10 }
  0x33   :  { %597 = vmatmul.msk.f32.gmra.mxu2 %vm139_vm1, %v123_v13 }
  0x34   :  { %605 = vmatmul.msk.f32.gmra.mxu3 %vm139_vm1, %v131_v27 }
  0x38   :  { %582 = vmatmul.msk.f32.gmra.mxu0 %vm139_vm1, %v108_v21 }
  0x3a   :  { %590 = vmatmul.msk.f32.gmra.mxu1 %vm139_vm1, %v116_v22 }
  0x3b   :  { %598 = vmatmul.msk.f32.gmra.mxu2 %vm139_vm1, %v124_v25 }
  0x3c   :  { %606 = vmatmul.msk.f32.gmra.mxu3 %vm139_vm1, %v132_v36 }
  0x40   :  { %583 = vmatmul.msk.f32.gmra.mxu0 %vm139_vm1, %v109_v33 }
  0x42   :  { %591 = vmatmul.msk.f32.gmra.mxu1 %vm139_vm1, %v117_v34 }
  0x43   :  { %599 = vmatmul.msk.f32.gmra.mxu2 %vm139_vm1, %v125_v35 }
  0x44   :  { %607 = vmatmul.msk.f32.gmra.mxu3 %vm139_vm1, %v133_v4 }
  0x85   :  { %v257_v37 = vpop.f32.mrf.mxu0 }
  0x86   :  { %v867_v3 = vadd.f32 %v864_v2, %v257_v37 }
  0x87   :  { %v281_v38 = vpop.f32.mrf.mxu1 }
  0x88   :  { %v870_v39 = vadd.f32 %v864_v2, %v281_v38  ;;  %354 = vst.msk [vmem:[%s1261_s5] sm:$0xff] %vm353_vm2, %v867_v3  ;;  %v460_v17 = vmul.f32 %v867_v3, %v867_v3  ;;  %v387_v20 = vsel %vm353_vm2, %v867_v3, 0.0 }
  0x8a   :  { %362 = vst.msk [vmem:[%s1261_s5 + $0x40] sm:$0xff] %vm353_vm2, %v870_v39  ;;  %v492_v25 = vsel %vm353_vm2, %v460_v17, 0.0 }
  0x8d   :  { %v260_v41 = vpop.f32.mrf.mxu0 }
  0x8e   :  { %v305_v40 = vpop.f32.mrf.mxu2  ;;  %v261_v44 = vadd.f32 %v864_v2, %v260_v41 }
  0x8f   :  { %v284_v42 = vpop.f32.mrf.mxu1  ;;  %v883_v43 = vadd.f32 %v864_v2, %v305_v40  ;;  %v329_v52 = vpop.f32.mrf.mxu3 }
  0x90   :  { %v887_v45 = vadd.f32 %v864_v2, %v284_v42  ;;  %355 = vst.msk [vmem:[%s1261_s5 + $0x8] sm:$0xff] %vm353_vm2, %v261_v44  ;;  %v916_v53 = vadd.f32 %v864_v2, %v329_v52  ;;  %v461_v16 = vmul.f32 %v261_v44, %v261_v44  ;;  %v388_v19 = vsel %vm353_vm2, %v261_v44, 0.0 }
  0x91   :  { %370 = vst.msk [vmem:[%s1261_s5 + $0x80] sm:$0xff] %vm353_vm2, %v883_v43  ;;  %v389_v26 = vadd.f32 %v388_v19, %v387_v20 }
  0x92   :  { %363 = vst.msk [vmem:[%s1261_s5 + $0x48] sm:$0xff] %vm353_vm2, %v887_v45  ;;  %v493_v21 = vsel %vm353_vm2, %v461_v16, 0.0  ;;  %v468_v16 = vmul.f32 %v870_v39, %v870_v39 }
  0x93   :  { %378 = vst.msk [vmem:[%s1261_s5 + $0xc0] sm:$0xff] %vm353_vm2, %v916_v53  ;;  %v494_v36 = vadd.f32 %v493_v21, %v492_v25  ;;  %v402_v21 = vsel %vm353_vm2, %v870_v39, 0.0 }
  0x95   :  { %v263_v47 = vpop.f32.mrf.mxu0 }
  0x96   :  { %v308_v46 = vpop.f32.mrf.mxu2  ;;  %v264_v50 = vadd.f32 %v864_v2, %v263_v47 }
  0x97   :  { %v287_v48 = vpop.f32.mrf.mxu1  ;;  %v904_v49 = vadd.f32 %v864_v2, %v308_v46  ;;  %v332_v60 = vpop.f32.mrf.mxu3 }
  0x98   :  { %v908_v51 = vadd.f32 %v864_v2, %v287_v48  ;;  %356 = vst.msk [vmem:[%s1261_s5 + $0x10] sm:$0xff] %vm353_vm2, %v264_v50  ;;  %v945_v61 = vadd.f32 %v864_v2, %v332_v60  ;;  %v462_v18 = vmul.f32 %v264_v50, %v264_v50  ;;  %v390_v22 = vsel %vm353_vm2, %v264_v50, 0.0 }
  0x99   :  { %371 = vst.msk [vmem:[%s1261_s5 + $0x88] sm:$0xff] %vm353_vm2, %v904_v49  ;;  %v391_v37 = vadd.f32 %v390_v22, %v389_v26  ;;  %v469_v22 = vmul.f32 %v887_v45, %v887_v45  ;;  %v507_v26 = vsel %vm353_vm2, %v468_v16, 0.0 }
  0x9a   :  { %364 = vst.msk [vmem:[%s1261_s5 + $0x50] sm:$0xff] %vm353_vm2, %v908_v51  ;;  %v495_v27 = vsel %vm353_vm2, %v462_v18, 0.0  ;;  %v470_v39 = vmul.f32 %v908_v51, %v908_v51 }
  0x9b   :  { %379 = vst.msk [vmem:[%s1261_s5 + $0xc8] sm:$0xff] %vm353_vm2, %v945_v61  ;;  %v496_v42 = vadd.f32 %v495_v27, %v494_v36  ;;  %v404_v27 = vsel %vm353_vm2, %v887_v45, 0.0 }
  0x9d   :  { %v266_v55 = vpop.f32.mrf.mxu0 }
  0x9e   :  { %v311_v54 = vpop.f32.mrf.mxu2  ;;  %v267_v58 = vadd.f32 %v864_v2, %v266_v55 }
  0x9f   :  { %v290_v56 = vpop.f32.mrf.mxu1  ;;  %v933_v57 = vadd.f32 %v864_v2, %v311_v54  ;;  %v335_v6 = vpop.f32.mrf.mxu3 }
  0xa0   :  { %v937_v59 = vadd.f32 %v864_v2, %v290_v56  ;;  %357 = vst.msk [vmem:[%s1261_s5 + $0x18] sm:$0xff] %vm353_vm2, %v267_v58  ;;  %v974_v7 = vadd.f32 %v864_v2, %v335_v6  ;;  %v463_v23 = vmul.f32 %v267_v58, %v267_v58  ;;  %v392_v31 = vsel %vm353_vm2, %v267_v58, 0.0 }
  0xa1   :  { %372 = vst.msk [vmem:[%s1261_s5 + $0x90] sm:$0xff] %vm353_vm2, %v933_v57  ;;  %v393_v44 = vadd.f32 %v392_v31, %v391_v37 }
  0xa2   :  { %365 = vst.msk [vmem:[%s1261_s5 + $0x58] sm:$0xff] %vm353_vm2, %v937_v59  ;;  %v497_v3 = vsel %vm353_vm2, %v463_v23, 0.0  ;;  %v471_v36 = vmul.f32 %v937_v59, %v937_v59 }
  0xa3   :  { %380 = vst.msk [vmem:[%s1261_s5 + $0xd0] sm:$0xff] %vm353_vm2, %v974_v7  ;;  %v498_v50 = vadd.f32 %v497_v3, %v496_v42 }
  0xa5   :  { %v269_v63 = vpop.f32.mrf.mxu0 }
  0xa6   :  { %v314_v62 = vpop.f32.mrf.mxu2  ;;  %v270_v4 = vadd.f32 %v864_v2, %v269_v63 }
  0xa7   :  { %v293_v0 = vpop.f32.mrf.mxu1  ;;  %v962_v1 = vadd.f32 %v864_v2, %v314_v62  ;;  %v338_v14 = vpop.f32.mrf.mxu3 }
  0xa8   :  { %v966_v5 = vadd.f32 %v864_v2, %v293_v0  ;;  %358 = vst.msk [vmem:[%s1261_s5 + $0x20] sm:$0xff] %vm353_vm2, %v270_v4  ;;  %v1003_v15 = vadd.f32 %v864_v2, %v338_v14  ;;  %v464_v32 = vmul.f32 %v270_v4, %v270_v4  ;;  %v394_v40 = vsel %vm353_vm2, %v270_v4, 0.0 }
  0xa9   :  { %373 = vst.msk [vmem:[%s1261_s5 + $0x98] sm:$0xff] %vm353_vm2, %v962_v1  ;;  %v395_v52 = vadd.f32 %v394_v40, %v393_v44  ;;  %v511_v40 = vsel %vm353_vm2, %v470_v39, 0.0  ;;  %v479_v39 = vmul.f32 %v962_v1, %v962_v1 }
  0xaa   :  { %366 = vst.msk [vmem:[%s1261_s5 + $0x60] sm:$0xff] %vm353_vm2, %v966_v5  ;;  %v499_v46 = vsel %vm353_vm2, %v464_v32, 0.0 }
  0xab   :  { %381 = vst.msk [vmem:[%s1261_s5 + $0xd8] sm:$0xff] %vm353_vm2, %v1003_v15  ;;  %v500_v58 = vadd.f32 %v499_v46, %v498_v50 }
  0xad   :  { %v272_v9 = vpop.f32.mrf.mxu0 }
  0xae   :  { %v317_v8 = vpop.f32.mrf.mxu2  ;;  %v273_v12 = vadd.f32 %v864_v2, %v272_v9 }
  0xaf   :  { %v296_v10 = vpop.f32.mrf.mxu1  ;;  %v991_v11 = vadd.f32 %v864_v2, %v317_v8  ;;  %v341_v35 = vpop.f32.mrf.mxu3 }
  0xb0   :  { %v995_v13 = vadd.f32 %v864_v2, %v296_v10  ;;  %359 = vst.msk [vmem:[%s1261_s5 + $0x28] sm:$0xff] %vm353_vm2, %v273_v12  ;;  %v1042_v38 = vadd.f32 %v864_v2, %v341_v35  ;;  %v465_v41 = vmul.f32 %v273_v12, %v273_v12  ;;  %v396_v47 = vsel %vm353_vm2, %v273_v12, 0.0 }
  0xb1   :  { %374 = vst.msk [vmem:[%s1261_s5 + $0xa0] sm:$0xff] %vm353_vm2, %v991_v11  ;;  %v397_v60 = vadd.f32 %v396_v47, %v395_v52  ;;  %v406_v35 = vsel %vm353_vm2, %v908_v51, 0.0  ;;  %v472_v51 = vmul.f32 %v966_v5, %v966_v5  ;;  %v513_v47 = vsel %vm353_vm2, %v471_v36, 0.0 }
  0xb2   :  { %367 = vst.msk [vmem:[%s1261_s5 + $0x68] sm:$0xff] %vm353_vm2, %v995_v13  ;;  %v501_v54 = vsel %vm353_vm2, %v465_v41, 0.0  ;;  %v408_v41 = vsel %vm353_vm2, %v937_v59, 0.0  ;;  %v473_v50 = vmul.f32 %v995_v13, %v995_v13 }
  0xb3   :  { %382 = vst.msk [vmem:[%s1261_s5 + $0xe0] sm:$0xff] %vm353_vm2, %v1042_v38  ;;  %v502_v10 = vadd.f32 %v501_v54, %v500_v58  ;;  %v515_v54 = vsel %vm353_vm2, %v472_v51, 0.0 }
  0xb5   :  { %v275_v28 = vpop.f32.mrf.mxu0 }
  0xb6   :  { %v320_v24 = vpop.f32.mrf.mxu2  ;;  %v276_v33 = vadd.f32 %v864_v2, %v275_v28 }
  0xb7   :  { %v299_v29 = vpop.f32.mrf.mxu1  ;;  %v1029_v30 = vadd.f32 %v864_v2, %v320_v24  ;;  %v344_v9 = vpop.f32.mrf.mxu3 }
  0xb8   :  { %v1034_v34 = vadd.f32 %v864_v2, %v299_v29  ;;  %360 = vst.msk [vmem:[%s1261_s5 + $0x30] sm:$0xff] %vm353_vm2, %v276_v33  ;;  %v466_v48 = vmul.f32 %v276_v33, %v276_v33  ;;  %v398_v55 = vsel %vm353_vm2, %v276_v33, 0.0  ;;  %v1076_v14 = vadd.f32 %v864_v2, %v344_v9 }
  0xb9   :  { %375 = vst.msk [vmem:[%s1261_s5 + $0xa8] sm:$0xff] %vm353_vm2, %v1029_v30  ;;  %v399_v12 = vadd.f32 %v398_v55, %v397_v60  ;;  %v509_v33 = vsel %vm353_vm2, %v469_v22, 0.0  ;;  %v412_v55 = vsel %vm353_vm2, %v995_v13, 0.0  ;;  %v476_v13 = vmul.f32 %v883_v43, %v883_v43 }
  0xba   :  { %368 = vst.msk [vmem:[%s1261_s5 + $0x70] sm:$0xff] %vm353_vm2, %v1034_v34  ;;  %v503_v4 = vsel %vm353_vm2, %v466_v48, 0.0  ;;  %v410_v48 = vsel %vm353_vm2, %v966_v5, 0.0 }
  0xbb   :  { %v504_v19 = vadd.f32 %v503_v4, %v502_v10  ;;  %383 = vst.msk [vmem:[%s1261_s5 + $0xe8] sm:$0xff] %vm353_vm2, %v1076_v14  ;;  %v523_v22 = vsel %vm353_vm2, %v476_v13, 0.0  ;;  %v487_v13 = vmul.f32 %v1003_v15, %v1003_v15 }
  0xbd   :  { %v278_v62 = vpop.f32.mrf.mxu0 }
  0xbe   :  { %v323_v56 = vpop.f32.mrf.mxu2  ;;  %v279_v6 = vadd.f32 %v864_v2, %v278_v62  ;;  %v517_v62 = vsel %vm353_vm2, %v473_v50, 0.0 }
  0xbf   :  { %v302_v63 = vpop.f32.mrf.mxu1  ;;  %v1065_v0 = vadd.f32 %v864_v2, %v323_v56  ;;  %v347_v37 = vpop.f32.mrf.mxu3  ;;  %v474_v56 = vmul.f32 %v1034_v34, %v1034_v34 }
  0xc0   :  { %v303_v8 = vadd.f32 %v864_v2, %v302_v63  ;;  %361 = vst.msk [vmem:[%s1261_s5 + $0x38] sm:$0xff] %vm353_vm2, %v279_v6  ;;  %v400_v17 = vsel %vm353_vm2, %v279_v6, 0.0  ;;  %v467_v18 = vmul.f32 %v279_v6, %v279_v6  ;;  %v1123_v42 = vadd.f32 %v864_v2, %v347_v37 }
  0xc1   :  { %376 = vst.msk [vmem:[%s1261_s5 + $0xb0] sm:$0xff] %vm353_vm2, %v1065_v0  ;;  %v401_v20 = vadd.f32 %v400_v17, %v399_v12  ;;  %v414_v63 = vsel %vm353_vm2, %v1034_v34, 0.0  ;;  %v519_v16 = vsel %vm353_vm2, %v474_v56, 0.0  ;;  %v477_v34 = vmul.f32 %v904_v49, %v904_v49 }
  0xc2   :  { %369 = vst.msk [vmem:[%s1261_s5 + $0x78] sm:$0xff] %vm353_vm2, %v303_v8  ;;  %v505_v23 = vsel %vm353_vm2, %v467_v18, 0.0  ;;  %v475_v5 = vmul.f32 %v303_v8, %v303_v8  ;;  %v416_v4 = vsel %vm353_vm2, %v303_v8, 0.0  ;;  %v615_v8 = vmov 0.0  }
  0xc3   :  { %v403_v24 = vadd.f32 %v402_v21, %v401_v20  ;;  %v506_v25 = vadd.f32 %v505_v23, %v504_v19  ;;  %384 = vst.msk [vmem:[%s1261_s5 + $0xf0] sm:$0xff] %vm353_vm2, %v1123_v42  ;;  %v478_v23 = vmul.f32 %v933_v57, %v933_v57  ;;  %v529_v37 = vsel %vm353_vm2, %v479_v39, 0.0 }
  0xc4   :  { %v521_v17 = vsel %vm353_vm2, %v475_v5, 0.0  ;;  %28 = vst.msk [vmem:[%s1262_s6] sm:$0x1] %vm27_vm3, %v615_v8  ;;  %v482_v51 = vmul.f32 %v1065_v0, %v1065_v0 }
  0xc5   :  { %v405_v29 = vadd.f32 %v404_v27, %v403_v24  ;;  %v508_v31 = vadd.f32 %v507_v26, %v506_v25  ;;  %29 = vst.msk [vmem:[%s1263_s7] sm:$0x1] %vm27_vm3, %v615_v8  ;;  %v525_v26 = vsel %vm353_vm2, %v477_v34, 0.0  ;;  %v422_v27 = vsel %vm353_vm2, %v933_v57, 0.0 }
  0xc6   :  { %v326_v28 = vpop.f32.mrf.mxu2  ;;  %v426_v57 = vsel %vm353_vm2, %v991_v11, 0.0  ;;  %v545_v8 = vsel %vm353_vm2, %v487_v13, 0.0 }
  0xc7   :  { %v1105_v32 = vadd.f32 %v864_v2, %v326_v28  ;;  %v510_v3 = vadd.f32 %v509_v33, %v508_v31  ;;  %v407_v45 = vadd.f32 %v406_v35, %v405_v29  ;;  %v350_v6 = vpop.f32.mrf.mxu3  ;;  %v527_v31 = vsel %vm353_vm2, %v478_v23, 0.0 }
  0xc8   :  { %v1145_v12 = vadd.f32 %v864_v2, %v350_v6  ;;  %v418_v2 = vsel %vm353_vm2, %v883_v43, 0.0  ;;  %v420_v43 = vsel %vm353_vm2, %v904_v49, 0.0  ;;  %v424_v49 = vsel %vm353_vm2, %v962_v1, 0.0 }
  0xc9   :  { %377 = vst.msk [vmem:[%s1261_s5 + $0xb8] sm:$0xff] %vm353_vm2, %v1105_v32  ;;  %v409_v44 = vadd.f32 %v408_v41, %v407_v45  ;;  %v512_v46 = vadd.f32 %v511_v40, %v510_v3  ;;  %v480_v33 = vmul.f32 %v991_v11, %v991_v11  ;;  %v481_v3 = vmul.f32 %v1029_v30, %v1029_v30 }
  0xca   :  { %385 = vst.msk [vmem:[%s1261_s5 + $0xf8] sm:$0xff] %vm353_vm2, %v1145_v12  ;;  %v428_v1 = vsel %vm353_vm2, %v1029_v30, 0.0  ;;  %v432_v50 = vsel %vm353_vm2, %v1105_v32, 0.0  ;;  %v484_v30 = vmul.f32 %v916_v53, %v916_v53  ;;  %v490_v23 = vmul.f32 %v1123_v42, %v1123_v42 }
  0xcb   :  { %v411_v59 = vadd.f32 %v410_v48, %v409_v44  ;;  %v514_v52 = vadd.f32 %v513_v47, %v512_v46  ;;  %v531_v41 = vsel %vm353_vm2, %v480_v33, 0.0  ;;  %v483_v44 = vmul.f32 %v1105_v32, %v1105_v32 }
  0xcc   :  { %v533_v11 = vsel %vm353_vm2, %v481_v3, 0.0  ;;  %v430_v48 = vsel %vm353_vm2, %v1065_v0, 0.0  ;;  %v485_v0 = vmul.f32 %v945_v61, %v945_v61  ;;  %v539_v32 = vsel %vm353_vm2, %v484_v30, 0.0 }
  0xcd   :  { %v413_v58 = vadd.f32 %v412_v55, %v411_v59  ;;  %v516_v60 = vadd.f32 %v515_v54, %v514_v52  ;;  %v535_v54 = vsel %vm353_vm2, %v482_v51, 0.0  ;;  %v537_v55 = vsel %vm353_vm2, %v483_v44, 0.0 }
  0xce   :  { %v448_v39 = vsel %vm353_vm2, %v1145_v12, 0.0 }
  0xcf   :  { %v518_v9 = vadd.f32 %v517_v62, %v516_v60  ;;  %v415_v10 = vadd.f32 %v414_v63, %v413_v58  ;;  %v434_v58 = vsel %vm353_vm2, %v916_v53, 0.0  ;;  %v436_v63 = vsel %vm353_vm2, %v945_v61, 0.0 }
  0xd0   :  { %v438_v53 = vsel %vm353_vm2, %v974_v7, 0.0  ;;  %v440_v61 = vsel %vm353_vm2, %v1003_v15, 0.0  ;;  %v444_v15 = vsel %vm353_vm2, %v1076_v14, 0.0 }
  0xd1   :  { %v520_v18 = vadd.f32 %v519_v16, %v518_v9  ;;  %v417_v19 = vadd.f32 %v416_v4, %v415_v10  ;;  %v486_v4 = vmul.f32 %v974_v7, %v974_v7  ;;  %v541_v10 = vsel %vm353_vm2, %v485_v0, 0.0 }
  0xd2   :  { %v442_v7 = vsel %vm353_vm2, %v1042_v38, 0.0 }
  0xd3   :  { %v419_v20 = vadd.f32 %v418_v2, %v417_v19  ;;  %v522_v21 = vadd.f32 %v521_v17, %v520_v18  ;;  %v543_v18 = vsel %vm353_vm2, %v486_v4, 0.0  ;;  %v488_v19 = vmul.f32 %v1042_v38, %v1042_v38 }
  0xd5   :  { %v421_v24 = vadd.f32 %v420_v43, %v419_v20  ;;  %v524_v25 = vadd.f32 %v523_v22, %v522_v21  ;;  %v489_v20 = vmul.f32 %v1076_v14, %v1076_v14  ;;  %v547_v43 = vsel %vm353_vm2, %v488_v19, 0.0 }
  0xd6   :  { %v551_v14 = vsel %vm353_vm2, %v490_v23, 0.0 }
  0xd7   :  { %v526_v28 = vadd.f32 %v525_v26, %v524_v25  ;;  %v423_v29 = vadd.f32 %v422_v27, %v421_v24  ;;  %v491_v24 = vmul.f32 %v1145_v12, %v1145_v12  ;;  %v549_v38 = vsel %vm353_vm2, %v489_v20, 0.0  ;;  %v386_v12 = vld [vmem:[%s1262_s6] sm:$0x1] }
  0xd8   :  { %v446_v27 = vsel %vm353_vm2, %v1123_v42, 0.0 }
  0xd9   :  { %v425_v35 = vadd.f32 %v424_v49, %v423_v29  ;;  %v528_v36 = vadd.f32 %v527_v31, %v526_v28  ;;  %v553_v31 = vsel %vm353_vm2, %v491_v24, 0.0 }
  0xdb   :  { %v427_v45 = vadd.f32 %v426_v57, %v425_v35  ;;  %v530_v40 = vadd.f32 %v529_v37, %v528_v36 }
  0xdd   :  { %v429_v46 = vadd.f32 %v428_v1, %v427_v45  ;;  %v532_v47 = vadd.f32 %v531_v41, %v530_v40 }
  0xdf   :  { %v534_v59 = vadd.f32 %v533_v11, %v532_v47  ;;  %v431_v52 = vadd.f32 %v430_v48, %v429_v46  ;;  %v459_v46 = vld [vmem:[%s1263_s7] sm:$0x1] }
  0xe1   :  { %v536_v56 = vadd.f32 %v535_v54, %v534_v59  ;;  %v433_v5 = vadd.f32 %v432_v50, %v431_v52 }
  0xe3   :  { %v435_v60 = vadd.f32 %v434_v58, %v433_v5  ;;  %v538_v62 = vadd.f32 %v537_v55, %v536_v56 }
  0xe5   :  { %v437_v6 = vadd.f32 %v436_v63, %v435_v60  ;;  %v540_v9 = vadd.f32 %v539_v32, %v538_v62 }
  0xe7   :  { %v542_v16 = vadd.f32 %v541_v10, %v540_v9  ;;  %v439_v17 = vadd.f32 %v438_v53, %v437_v6 }
  0xe9   :  { %v441_v2 = vadd.f32 %v440_v61, %v439_v17  ;;  %v544_v34 = vadd.f32 %v543_v18, %v542_v16 }
  0xeb   :  { %v443_v21 = vadd.f32 %v442_v7, %v441_v2  ;;  %v546_v22 = vadd.f32 %v545_v8, %v544_v34 }
  0xed   :  { %v445_v25 = vadd.f32 %v444_v15, %v443_v21  ;;  %v548_v26 = vadd.f32 %v547_v43, %v546_v22 }
  0xef   :  { %v550_v28 = vadd.f32 %v549_v38, %v548_v26  ;;  %v447_v29 = vadd.f32 %v446_v27, %v445_v25 }
  0xf1   :  { %v552_v49 = vadd.f32 %v551_v14, %v550_v28  ;;  %v449_v33 = vadd.f32 %v448_v39, %v447_v29 }
  0xf3   :  { %v450_v35 = vrot.slane %v449_v33, 4  ;;  %v554_v36 = vadd.f32 %v553_v31, %v552_v49 }
  0xf5   :  { %v451_v37 = vadd.f32 %v450_v35, %v449_v33  ;;  %v555_v57 = vrot.slane %v554_v36, 4 }
  0xf7   :  { %v452_v3 = vrot.slane %v451_v37, 2  ;;  %v556_v45 = vadd.f32 %v555_v57, %v554_v36 }
  0xf9   :  { %v453_v40 = vadd.f32 %v452_v3, %v451_v37  ;;  %v557_v41 = vrot.slane %v556_v45, 2 }
  0xfb   :  { %v454_v42 = vrot.slane %v453_v40, 1  ;;  %v558_v1 = vadd.f32 %v557_v41, %v556_v45 }
  0xfd   :  { %v455_v51 = vadd.f32 %v454_v42, %v453_v40  ;;  %v559_v44 = vrot.slane %v558_v1, 1 }
  0xff   :  { %v456_v47 = vadd.f32 %v455_v51, %v386_v12  ;;  %v560_v11 = vadd.f32 %v559_v44, %v558_v1 }
 0x101   :  { %458 = vst.msk [vmem:[%s1262_s6] sm:$0x1] %vm27_vm3, %v456_v47  ;;  %v561_v48 = vadd.f32 %v560_v11, %v459_v46 }
 0x103   :  { %562 = vst.msk [vmem:[%s1263_s7] sm:$0x1] %vm27_vm3, %v561_v48 }

// kernel: msftcn_forward.7
= control target key start
LH: loop header
LB: loop body
LE: loop exit
PB: predicated region body
PF: predicated region fallthrough
CT: control target
= control target key end

     0   :  { %v403_v3 = vmov 0   ;;  %vm365_vm12 = vcmask 7168   ;;  %s728_s1 = inlined_call_operand.vmem [shape: f32[128,128], index: 1, kind: input, shape index: {}]   ;;  %s729_s2 = inlined_call_operand.vmem [shape: f32[128,128], index: 2, kind: input, shape index: {}]   ;;  %s730_s5 = inlined_call_operand.vmem [shape: f32[24,1], index: 5, kind: input, shape index: {}]   ;;  %s731_s7 = inlined_call_operand.vmem [shape: f32[24,1], index: 7, kind: input, shape index: {}]   ;;  %s732_s6 = inlined_call_operand.vmem [shape: f32[24,1], index: 6, kind: input, shape index: {}]   ;;  %s733_s8 = inlined_call_operand.vmem [shape: f32[24,1], index: 8, kind: input, shape index: {}]   ;;  %s734_s0 = inlined_call_operand.vmem [shape: f32[24,128], index: 0, kind: input, shape index: {}]   ;;  %s735_s3 = inlined_call_operand.vmem [shape: f32[128,128], index: 3, kind: input, shape index: {}]   ;;  %s736_s4 = inlined_call_operand.vmem [shape: f32[128,128], index: 4, kind: input, shape index: {}]   ;;  %s737_s9 = inlined_call_operand.vmem [shape: f32[24,128], index: 9, kind: output, shape index: {0}]   ;;  %s738_s10 = inlined_call_operand.vmem [shape: f32[24,1], index: 10, kind: output, shape index: {1}]   ;;  %s739_s11 = inlined_call_operand.vmem [shape: f32[24,1], index: 11, kind: output, shape index: {2}]  }
   0x1   :  { %v53_v0 = vld [vmem:[%s728_s1 + $0x78] sm:$0xff]  ;;  %v52_v2 = vld [vmem:[%s728_s1 + $0x70] sm:$0xff]  ;;  %400 = vset.pattern.permute.xlu0 %v403_v3  ;;  %401 = vset.pattern.permute.xlu1 %v403_v3  ;;  %v51_v5 = vld [vmem:[%s728_s1 + $0x68] sm:$0xff] }
   0x2   :  { %v95_v1 = vld [vmem:[%s729_s2 + $0x78] sm:$0xff]  ;;  %54 = vmatpush.msra.mxu0 %v53_v0  ;;  %v94_v4 = vld [vmem:[%s729_s2 + $0x70] sm:$0xff]  ;;  %v93_v6 = vld [vmem:[%s729_s2 + $0x68] sm:$0xff]  ;;  %402 = vset.pattern.permute.xlu2 %v403_v3 }
   0x3   :  { %96 = vmatpush.msra.mxu1 %v95_v1  ;;  %v50_v7 = vld [vmem:[%s728_s1 + $0x60] sm:$0xff]  ;;  %v49_v11 = vld [vmem:[%s728_s1 + $0x58] sm:$0xff]  ;;  %v48_v13 = vld [vmem:[%s728_s1 + $0x50] sm:$0xff] }
   0x4   :  { %55 = vmatpush.msra.mxu0 %v52_v2  ;;  %v92_v8 = vld [vmem:[%s729_s2 + $0x60] sm:$0xff]  ;;  %v91_v12 = vld [vmem:[%s729_s2 + $0x58] sm:$0xff]  ;;  %v90_v14 = vld [vmem:[%s729_s2 + $0x50] sm:$0xff] }
   0x5   :  { %97 = vmatpush.msra.mxu1 %v94_v4  ;;  %v125_v9 = vld [vmem:[%s730_s5] sm:$0xff]  ;;  %v47_v15 = vld [vmem:[%s728_s1 + $0x48] sm:$0xff]  ;;  %v45_v21 = vld [vmem:[%s728_s1 + $0x38] sm:$0xff] }
   0x6   :  { %56 = vmatpush.msra.mxu0 %v51_v5  ;;  %v170_v10 = vld [vmem:[%s731_s7] sm:$0xff]  ;;  %133 = vperm.xlu0 %400, %v125_v9   ;;  %v89_v16 = vld [vmem:[%s729_s2 + $0x48] sm:$0xff]  ;;  %v87_v22 = vld [vmem:[%s729_s2 + $0x38] sm:$0xff] }
   0x7   :  { %98 = vmatpush.msra.mxu1 %v93_v6  ;;  %175 = vperm.xlu1 %401, %v170_v10   ;;  %v128_v17 = vld [vmem:[%s732_s6] sm:$0xff]  ;;  %v126_v23 = vld [vmem:[%s730_s5 + $0x8] sm:$0xff]  ;;  %v44_v24 = vld [vmem:[%s728_s1 + $0x30] sm:$0xff] }
   0x8   :  { %57 = vmatpush.msra.mxu0 %v50_v7  ;;  %v203_v18 = vld [vmem:[%s733_s8] sm:$0xff]  ;;  %v86_v25 = vld [vmem:[%s729_s2 + $0x30] sm:$0xff]  ;;  %138 = vperm.xlu2 %402, %v126_v23   ;;  %v43_v26 = vld [vmem:[%s728_s1 + $0x28] sm:$0xff] }
   0x9   :  { %99 = vmatpush.msra.mxu1 %v92_v8  ;;  %v46_v19 = vld [vmem:[%s728_s1 + $0x40] sm:$0xff]  ;;  %v85_v27 = vld [vmem:[%s729_s2 + $0x28] sm:$0xff]  ;;  %v41_v33 = vld [vmem:[%s728_s1 + $0x18] sm:$0xff] }
   0xa   :  { %58 = vmatpush.msra.mxu0 %v49_v11  ;;  %v88_v20 = vld [vmem:[%s729_s2 + $0x40] sm:$0xff]  ;;  %v171_v28 = vld [vmem:[%s731_s7 + $0x8] sm:$0xff]  ;;  %v83_v34 = vld [vmem:[%s729_s2 + $0x18] sm:$0xff] }
   0xb   :  { %100 = vmatpush.msra.mxu1 %v91_v12  ;;  %v204_v29 = vld [vmem:[%s733_s8 + $0x8] sm:$0xff]  ;;  %v42_v30 = vld [vmem:[%s728_s1 + $0x20] sm:$0xff]  ;;  %v40_v35 = vld [vmem:[%s728_s1 + $0x10] sm:$0xff] }
   0xc   :  { %59 = vmatpush.msra.mxu0 %v48_v13  ;;  %v84_v31 = vld [vmem:[%s729_s2 + $0x20] sm:$0xff]  ;;  %v129_v32 = vld [vmem:[%s732_s6 + $0x8] sm:$0xff]  ;;  %v82_v36 = vld [vmem:[%s729_s2 + $0x10] sm:$0xff] }
   0xd   :  { %101 = vmatpush.msra.mxu1 %v90_v14  ;;  %v39_v37 = vld [vmem:[%s728_s1 + $0x8] sm:$0xff]  ;;  %v130_v39 = vld [vmem:[%s732_s6 + $0x10] sm:$0xff]  ;;  %v38_v41 = vld [vmem:[%s728_s1] sm:$0xff] }
   0xe   :  { %60 = vmatpush.msra.mxu0 %v47_v15  ;;  %151 = vperm.xlu0 %400, %v128_v17   ;;  %v81_v38 = vld [vmem:[%s729_s2 + $0x8] sm:$0xff]  ;;  %v172_v40 = vld [vmem:[%s731_s7 + $0x10] sm:$0xff]  ;;  %v80_v42 = vld [vmem:[%s729_s2] sm:$0xff] }
   0xf   :  { %102 = vmatpush.msra.mxu1 %v89_v16  ;;  %208 = vperm.xlu1 %401, %v203_v18   ;;  %v35_v43 = vld [vmem:[%s734_s0] sm:$0xff]  ;;  %v127_v44 = vld [vmem:[%s730_s5 + $0x10] sm:$0xff]  ;;  %v36_v45 = vld [vmem:[%s734_s0 + $0x8] sm:$0xff] }
  0x10   :  { %61 = vmatpush.msra.mxu0 %v46_v19  ;;  %156 = vperm.xlu2 %402, %v129_v32   ;;  %v205_v46 = vld [vmem:[%s733_s8 + $0x10] sm:$0xff]  ;;  %v284_v48 = vld [vmem:[%s735_s3 + $0x78] sm:$0xff]  ;;  %v282_v52 = vld [vmem:[%s735_s3 + $0x68] sm:$0xff] }
  0x11   :  { %103 = vmatpush.msra.mxu1 %v88_v20  ;;  %v37_v47 = vld [vmem:[%s734_s0 + $0x10] sm:$0xff]  ;;  %v326_v49 = vld [vmem:[%s736_s4 + $0x78] sm:$0xff]  ;;  %285 = vmatpush.msra.mxu2 %v284_v48  ;;  %v324_v53 = vld [vmem:[%s736_s4 + $0x68] sm:$0xff] }
  0x12   :  { %62 = vmatpush.msra.mxu0 %v45_v21  ;;  %v283_v50 = vld [vmem:[%s735_s3 + $0x70] sm:$0xff]  ;;  %327 = vmatpush.msra.mxu3 %v326_v49  ;;  %v281_v54 = vld [vmem:[%s735_s3 + $0x60] sm:$0xff]  ;;  %v280_v56 = vld [vmem:[%s735_s3 + $0x58] sm:$0xff] }
  0x13   :  { %104 = vmatpush.msra.mxu1 %v87_v22  ;;  %v325_v51 = vld [vmem:[%s736_s4 + $0x70] sm:$0xff]  ;;  %286 = vmatpush.msra.mxu2 %v283_v50  ;;  %v323_v55 = vld [vmem:[%s736_s4 + $0x60] sm:$0xff]  ;;  %v322_v57 = vld [vmem:[%s736_s4 + $0x58] sm:$0xff] }
  0x14   :  { %63 = vmatpush.msra.mxu0 %v44_v24  ;;  %328 = vmatpush.msra.mxu3 %v325_v51  ;;  %v279_v58 = vld [vmem:[%s735_s3 + $0x50] sm:$0xff]  ;;  %v278_v60 = vld [vmem:[%s735_s3 + $0x48] sm:$0xff]  ;;  %v277_v62 = vld [vmem:[%s735_s3 + $0x40] sm:$0xff] }
  0x15   :  { %105 = vmatpush.msra.mxu1 %v86_v25  ;;  %287 = vmatpush.msra.mxu2 %v282_v52  ;;  %v321_v59 = vld [vmem:[%s736_s4 + $0x50] sm:$0xff]  ;;  %v320_v61 = vld [vmem:[%s736_s4 + $0x48] sm:$0xff]  ;;  %v319_v63 = vld [vmem:[%s736_s4 + $0x40] sm:$0xff] }
  0x16   :  { %64 = vmatpush.msra.mxu0 %v43_v26  ;;  %180 = vperm.xlu0 %400, %v171_v28   ;;  %v276_v0 = vld [vmem:[%s735_s3 + $0x38] sm:$0xff]  ;;  %v275_v2 = vld [vmem:[%s735_s3 + $0x30] sm:$0xff]  ;;  %v274_v4 = vld [vmem:[%s735_s3 + $0x28] sm:$0xff] }
  0x17   :  { %106 = vmatpush.msra.mxu1 %v85_v27  ;;  %213 = vperm.xlu1 %401, %v204_v29   ;;  %v318_v1 = vld [vmem:[%s736_s4 + $0x38] sm:$0xff]  ;;  %v317_v3 = vld [vmem:[%s736_s4 + $0x30] sm:$0xff]  ;;  %v316_v5 = vld [vmem:[%s736_s4 + $0x28] sm:$0xff] }
  0x18   :  { %65 = vmatpush.msra.mxu0 %v42_v30  ;;  %143 = vperm.xlu2 %402, %v127_v44   ;;  %v273_v6 = vld [vmem:[%s735_s3 + $0x20] sm:$0xff]  ;;  %v272_v8 = vld [vmem:[%s735_s3 + $0x18] sm:$0xff]  ;;  %v271_v10 = vld [vmem:[%s735_s3 + $0x10] sm:$0xff] }
  0x19   :  { %107 = vmatpush.msra.mxu1 %v84_v31  ;;  %329 = vmatpush.msra.mxu3 %v324_v53  ;;  %v315_v7 = vld [vmem:[%s736_s4 + $0x20] sm:$0xff]  ;;  %v314_v9 = vld [vmem:[%s736_s4 + $0x18] sm:$0xff]  ;;  %v313_v11 = vld [vmem:[%s736_s4 + $0x10] sm:$0xff] }
  0x1a   :  { %66 = vmatpush.msra.mxu0 %v41_v33  ;;  %288 = vmatpush.msra.mxu2 %v281_v54  ;;  %v270_v12 = vld [vmem:[%s735_s3 + $0x8] sm:$0xff]  ;;  %v269_v14 = vld [vmem:[%s735_s3] sm:$0xff] }
  0x1b   :  { %108 = vmatpush.msra.mxu1 %v83_v34  ;;  %330 = vmatpush.msra.mxu3 %v323_v55  ;;  %v312_v13 = vld [vmem:[%s736_s4 + $0x8] sm:$0xff]  ;;  %v311_v15 = vld [vmem:[%s736_s4] sm:$0xff] }
  0x1c   :  { %67 = vmatpush.msra.mxu0 %v40_v35  ;;  %289 = vmatpush.msra.mxu2 %v280_v56 }
  0x1d   :  { %109 = vmatpush.msra.mxu1 %v82_v36  ;;  %331 = vmatpush.msra.mxu3 %v322_v57 }
  0x1e   :  { %68 = vmatpush.msra.mxu0 %v39_v37  ;;  %161 = vperm.xlu0 %400, %v130_v39  }
  0x1f   :  { %110 = vmatpush.msra.mxu1 %v81_v38  ;;  %185 = vperm.xlu1 %401, %v172_v40  }
  0x20   :  { %69 = vmatpush.msra.mxu0 %v38_v41  ;;  %218 = vperm.xlu2 %402, %v205_v46  }
  0x21   :  { %111 = vmatpush.msra.mxu1 %v80_v42  ;;  %70 = vmatmul.f32.vlgmr.msra.gmra.mxu0 %v35_v43 }
  0x22   :  { %112 = vmatmul.f32.vlgmr.msra.gmra.mxu1 %v35_v43  ;;  %290 = vmatpush.msra.mxu2 %v279_v58 }
  0x23   :  { %332 = vmatpush.msra.mxu3 %v321_v59 }
  0x24   :  { %291 = vmatpush.msra.mxu2 %v278_v60 }
  0x25   :  { %333 = vmatpush.msra.mxu3 %v320_v61 }
  0x26   :  { %292 = vmatpush.msra.mxu2 %v277_v62 }
  0x27   :  { %334 = vmatpush.msra.mxu3 %v319_v63 }
  0x28   :  { %293 = vmatpush.msra.mxu2 %v276_v0 }
  0x29   :  { %73 = vmatmul.f32.gmra.mxu0 %v36_v45  ;;  %335 = vmatpush.msra.mxu3 %v318_v1 }
  0x2a   :  { %115 = vmatmul.f32.gmra.mxu1 %v36_v45  ;;  %294 = vmatpush.msra.mxu2 %v275_v2 }
  0x2b   :  { %336 = vmatpush.msra.mxu3 %v317_v3 }
  0x2c   :  { %295 = vmatpush.msra.mxu2 %v274_v4 }
  0x2d   :  { %337 = vmatpush.msra.mxu3 %v316_v5 }
  0x2e   :  { %296 = vmatpush.msra.mxu2 %v273_v6 }
  0x2f   :  { %338 = vmatpush.msra.mxu3 %v315_v7 }
  0x30   :  { %297 = vmatpush.msra.mxu2 %v272_v8 }
  0x31   :  { %76 = vmatmul.f32.gmra.mxu0 %v37_v47  ;;  %339 = vmatpush.msra.mxu3 %v314_v9 }
  0x32   :  { %118 = vmatmul.f32.gmra.mxu1 %v37_v47  ;;  %298 = vmatpush.msra.mxu2 %v271_v10 }
  0x33   :  { %340 = vmatpush.msra.mxu3 %v313_v11 }
  0x34   :  { %299 = vmatpush.msra.mxu2 %v270_v12 }
  0x35   :  { %341 = vmatpush.msra.mxu3 %v312_v13 }
  0x36   :  { %300 = vmatpush.msra.mxu2 %v269_v14 }
  0x37   :  { %342 = vmatpush.msra.mxu3 %v311_v15 }
  0x62   :  { %v139_v18 = vpop.permute.xlu2 %138 }
  0x6a   :  { %v157_v24 = vpop.permute.xlu2 %156 }
  0x72   :  { %v144_v42 = vpop.permute.xlu2 %143 }
  0x78   :  { %v134_v16 = vpop.permute.xlu0 %133 }
  0x79   :  { %v176_v17 = vpop.permute.xlu1 %175 }
  0x7a   :  { %v219_v10 = vpop.permute.xlu2 %218 }
  0x80   :  { %v152_v19 = vpop.permute.xlu0 %151 }
  0x81   :  { %v209_v23 = vpop.permute.xlu1 %208 }
  0x88   :  { %v181_v31 = vpop.permute.xlu0 %180 }
  0x89   :  { %v214_v41 = vpop.permute.xlu1 %213 }
  0x90   :  { %v162_v62 = vpop.permute.xlu0 %161 }
  0x91   :  { %v186_v9 = vpop.permute.xlu1 %185 }
  0x9e   :  { %v71_v20 = vpop.f32.mrf.mxu0 }
  0x9f   :  { %v113_v21 = vpop.f32.mrf.mxu1  ;;  %v146_v25 = vmul.f32 %v134_v16, %v71_v20  ;;  %v197_v26 = vmul.f32 %v152_v19, %v71_v20 }
  0xa0   :  { %v122_v22 = vsub.f32 0.0, %v113_v21 }
  0xa2   :  { %v164_v27 = vmul.f32 %v152_v19, %v122_v22  ;;  %v194_v28 = vmul.f32 %v134_v16, %v122_v22 }
  0xa4   :  { %v167_v29 = vsub.f32 %v146_v25, %v164_v27  ;;  %v200_v30 = vadd.f32 %v197_v26, %v194_v28 }
  0xa6   :  { %v188_v32 = vadd.f32 %v176_v17, %v167_v29  ;;  %v221_v33 = vadd.f32 %v209_v23, %v200_v30  ;;  %v74_v34 = vpop.f32.mrf.mxu0 }
  0xa7   :  { %v116_v35 = vpop.f32.mrf.mxu1  ;;  %v147_v39 = vmul.f32 %v139_v18, %v74_v34  ;;  %v198_v43 = vmul.f32 %v157_v24, %v74_v34 }
  0xa8   :  { %v191_v36 = vmax.f32 %v188_v32, 0.0  ;;  %v224_v37 = vmax.f32 %v221_v33, 0.0  ;;  %v123_v38 = vsub.f32 0.0, %v116_v35 }
  0xaa   :  { %v393_v40 = vadd.f32 -0.01, %v191_v36  ;;  %vm233_vm0 = vcmp.lt.f32.partialorder %v191_v36, -0.01  ;;  %v165_v44 = vmul.f32 %v157_v24, %v123_v38  ;;  %v195_v45 = vmul.f32 %v139_v18, %v123_v38 }
  0xab   :  { %v236_v46 = vadd.f32 0.01, %v191_v36  ;;  %v396_v47 = vadd.f32 -0.01, %v224_v37  ;;  %vm254_vm1 = vcmp.lt.f32.partialorder %v224_v37, -0.01 }
  0xac   :  { %v257_v48 = vadd.f32 0.01, %v224_v37  ;;  %v168_v49 = vsub.f32 %v147_v39, %v165_v44  ;;  %v201_v50 = vadd.f32 %v198_v43, %v195_v45  ;;  %vm227_vm2 = vcmp.gt.f32.partialorder %v191_v36, 0.01 }
  0xad   :  { %v239_v51 = vsel %vm233_vm0, %v236_v46, 0.0  ;;  %vm248_vm3 = vcmp.gt.f32.partialorder %v224_v37, 0.01 }
  0xae   :  { %v242_v52 = vsel %vm227_vm2, %v393_v40, %v239_v51  ;;  %v260_v53 = vsel %vm254_vm1, %v257_v48, 0.0  ;;  %v189_v54 = vadd.f32 %v181_v31, %v168_v49  ;;  %v222_v55 = vadd.f32 %v214_v41, %v201_v50  ;;  %v77_v56 = vpop.f32.mrf.mxu0 }
  0xaf   :  { %v119_v57 = vpop.f32.mrf.mxu1  ;;  %v245_v58 = vadd.f32 %v242_v52, %v71_v20  ;;  %v263_v59 = vsel %vm248_vm3, %v396_v47, %v260_v53  ;;  %v148_v1 = vmul.f32 %v144_v42, %v77_v56  ;;  %v199_v2 = vmul.f32 %v162_v62, %v77_v56 }
  0xb0   :  { %v124_v60 = vsub.f32 0.0, %v119_v57  ;;  %v266_v61 = vadd.f32 %v263_v59, %v122_v22  ;;  %v192_v63 = vmax.f32 %v189_v54, 0.0  ;;  %v225_v0 = vmax.f32 %v222_v55, 0.0 }
  0xb1   :  { %301 = vmatmul.f32.vlgmr.msra.gmra.mxu2 %v245_v58 }
  0xb2   :  { %v166_v3 = vmul.f32 %v162_v62, %v124_v60  ;;  %v196_v4 = vmul.f32 %v144_v42, %v124_v60  ;;  %343 = vmatmul.f32.vlgmr.msra.gmra.mxu3 %v266_v61  ;;  %v394_v5 = vadd.f32 -0.01, %v192_v63  ;;  %vm234_vm4 = vcmp.lt.f32.partialorder %v192_v63, -0.01 }
  0xb3   :  { %v237_v8 = vadd.f32 0.01, %v192_v63  ;;  %v397_v11 = vadd.f32 -0.01, %v225_v0  ;;  %vm255_vm5 = vcmp.lt.f32.partialorder %v225_v0, -0.01 }
  0xb4   :  { %v169_v6 = vsub.f32 %v148_v1, %v166_v3  ;;  %v202_v7 = vadd.f32 %v199_v2, %v196_v4  ;;  %v258_v12 = vadd.f32 0.01, %v225_v0  ;;  %vm228_vm6 = vcmp.gt.f32.partialorder %v192_v63, 0.01 }
  0xb5   :  { %v240_v15 = vsel %vm234_vm4, %v237_v8, 0.0  ;;  %vm249_vm7 = vcmp.gt.f32.partialorder %v225_v0, 0.01 }
  0xb6   :  { %v190_v13 = vadd.f32 %v186_v9, %v169_v6  ;;  %v223_v14 = vadd.f32 %v219_v10, %v202_v7  ;;  %v243_v16 = vsel %vm228_vm6, %v394_v5, %v240_v15  ;;  %v261_v17 = vsel %vm255_vm5, %v258_v12, 0.0 }
  0xb7   :  { %v246_v20 = vadd.f32 %v243_v16, %v74_v34  ;;  %v264_v21 = vsel %vm249_vm7, %v397_v11, %v261_v17 }
  0xb8   :  { %v193_v18 = vmax.f32 %v190_v13, 0.0  ;;  %v226_v19 = vmax.f32 %v223_v14, 0.0  ;;  %v267_v22 = vadd.f32 %v264_v21, %v123_v38 }
  0xb9   :  { %304 = vmatmul.f32.gmra.mxu2 %v246_v20 }
  0xba   :  { %v395_v23 = vadd.f32 -0.01, %v193_v18  ;;  %vm235_vm8 = vcmp.lt.f32.partialorder %v193_v18, -0.01  ;;  %346 = vmatmul.f32.gmra.mxu3 %v267_v22  ;;  %v238_v24 = vadd.f32 0.01, %v193_v18 }
  0xbb   :  { %v398_v25 = vadd.f32 -0.01, %v226_v19  ;;  %vm256_vm9 = vcmp.lt.f32.partialorder %v226_v19, -0.01  ;;  %v259_v26 = vadd.f32 0.01, %v226_v19 }
  0xbc   :  { %vm229_vm10 = vcmp.gt.f32.partialorder %v193_v18, 0.01  ;;  %v241_v27 = vsel %vm235_vm8, %v238_v24, 0.0  ;;  %vm250_vm11 = vcmp.gt.f32.partialorder %v226_v19, 0.01 }
  0xbd   :  { %v244_v28 = vsel %vm229_vm10, %v395_v23, %v241_v27  ;;  %v262_v29 = vsel %vm256_vm9, %v259_v26, 0.0 }
  0xbe   :  { %v247_v30 = vadd.f32 %v244_v28, %v77_v56  ;;  %v265_v31 = vsel %vm250_vm11, %v398_v25, %v262_v29 }
  0xbf   :  { %v268_v32 = vadd.f32 %v265_v31, %v124_v60 }
  0xc1   :  { %307 = vmatmul.f32.gmra.mxu2 %v247_v30 }
  0xc2   :  { %349 = vmatmul.f32.gmra.mxu3 %v268_v32 }
 0x134   :  { %v302_v33 = vpop.f32.mrf.mxu2 }
 0x135   :  { %v344_v34 = vpop.f32.mrf.mxu3 }
 0x136   :  { %v353_v35 = vsub.f32 %v302_v33, %v344_v34 }
 0x138   :  { %356 = vst [vmem:[%s737_s9] sm:$0xff] %v353_v35  ;;  %359 = vadd.xlane.f32.xlu0 %v353_v35  ;;  %v369_v44 = vmul.f32 %v353_v35, %v353_v35 }
 0x13c   :  { %v305_v36 = vpop.f32.mrf.mxu2 }
 0x13d   :  { %v347_v37 = vpop.f32.mrf.mxu3 }
 0x13e   :  { %v354_v38 = vsub.f32 %v305_v36, %v347_v37 }
 0x140   :  { %357 = vst [vmem:[%s737_s9 + $0x8] sm:$0xff] %v354_v38  ;;  %361 = vadd.xlane.f32.xlu1 %v354_v38  ;;  %v370_v39 = vmul.f32 %v354_v38, %v354_v38 }
 0x142   :  { %374 = vadd.xlane.f32.xlu0 %v370_v39 }
 0x144   :  { %v308_v40 = vpop.f32.mrf.mxu2 }
 0x145   :  { %v350_v41 = vpop.f32.mrf.mxu3 }
 0x146   :  { %v355_v42 = vsub.f32 %v308_v40, %v350_v41 }
 0x148   :  { %358 = vst [vmem:[%s737_s9 + $0x10] sm:$0xff] %v355_v42  ;;  %363 = vadd.xlane.f32.xlu2 %v355_v42  ;;  %v371_v43 = vmul.f32 %v355_v42, %v355_v42 }
 0x14a   :  { %376 = vadd.xlane.f32.xlu1 %v371_v43 }
 0x150   :  { %372 = vadd.xlane.f32.xlu2 %v369_v44 }
 0x1ab   :  { %v360_v45 = vpop.xlane.xlu0 %359 }
 0x1ac   :  { %366 = vst.msk [vmem:[%s738_s10] sm:$0xff] %vm365_vm12, %v360_v45 }
 0x1b3   :  { %v362_v46 = vpop.xlane.xlu1 %361 }
 0x1b4   :  { %367 = vst.msk [vmem:[%s738_s10 + $0x8] sm:$0xff] %vm365_vm12, %v362_v46 }
 0x1b5   :  { %v375_v47 = vpop.xlane.xlu0 %374 }
 0x1b6   :  { %379 = vst.msk [vmem:[%s739_s11 + $0x8] sm:$0xff] %vm365_vm12, %v375_v47 }
 0x1bb   :  { %v364_v48 = vpop.xlane.xlu2 %363 }
 0x1bc   :  { %368 = vst.msk [vmem:[%s738_s10 + $0x10] sm:$0xff] %vm365_vm12, %v364_v48 }
 0x1bd   :  { %v377_v49 = vpop.xlane.xlu1 %376 }
 0x1be   :  { %380 = vst.msk [vmem:[%s739_s11 + $0x10] sm:$0xff] %vm365_vm12, %v377_v49 }
 0x1c3   :  { %v373_v50 = vpop.xlane.xlu2 %372 }
 0x1c4   :  { %378 = vst.msk [vmem:[%s739_s11] sm:$0xff] %vm365_vm12, %v373_v50 }

// kernel: msftcn_forward.6
= control target key start
LH: loop header
LB: loop body
LE: loop exit
PB: predicated region body
PF: predicated region fallthrough
CT: control target
= control target key end

     0   :  { %s4468_s0 = inlined_call_operand.vmem [shape: f32[2,128,2], index: 0, kind: input, shape index: {}]   ;;  %s4469_s1 = inlined_call_operand.vmem [shape: f32[2,128,2], index: 1, kind: input, shape index: {}]   ;;  %s4470_s2 = inlined_call_operand.vmem [shape: f32[2,128,2], index: 2, kind: input, shape index: {}]   ;;  %s4471_s3 = inlined_call_operand.vmem [shape: f32[2,128,2], index: 3, kind: input, shape index: {}]   ;;  %s4472_s4 = inlined_call_operand.vmem [shape: f32[2,128,2], index: 4, kind: input, shape index: {}]   ;;  %s4473_s5 = inlined_call_operand.vmem [shape: f32[1,2], index: 5, kind: input, shape index: {}]   ;;  %s4474_s6 = inlined_call_operand.vmem [shape: f32[1,2], index: 6, kind: input, shape index: {}]   ;;  %s4475_s7 = inlined_call_operand.vmem [shape: f32[1,2], index: 7, kind: input, shape index: {}]   ;;  %s4476_s8 = inlined_call_operand.vmem [shape: f32[1,2], index: 8, kind: input, shape index: {}]   ;;  %s4477_s9 = inlined_call_operand.vmem [shape: f32[1,2], index: 9, kind: input, shape index: {}]   ;;  %s4478_s10 = inlined_call_operand.vmem [shape: f32[1,2], index: 10, kind: input, shape index: {}]   ;;  %s4479_s11 = inlined_call_operand.vmem [shape: f32[1,2], index: 11, kind: input, shape index: {}]   ;;  %s4480_s12 = inlined_call_operand.vmem [shape: f32[1,2], index: 12, kind: input, shape index: {}]   ;;  %s4481_s13 = inlined_call_operand.vmem [shape: f32[1,2], index: 13, kind: input, shape index: {}]   ;;  %s4482_s14 = inlined_call_operand.vmem [shape: f32[1,2], index: 14, kind: input, shape index: {}]   ;;  %s4483_s15 = inlined_call_operand.vmem [shape: f32[3,2,2], index: 15, kind: input, shape index: {}]   ;;  %s4484_s16 = inlined_call_operand.vmem [shape: f32[3,2,2], index: 16, kind: input, shape index: {}]   ;;  %s4485_s17 = inlined_call_operand.vmem [shape: f32[3,2,2], index: 17, kind: input, shape index: {}]   ;;  %s4486_s18 = inlined_call_operand.vmem [shape: f32[3,2,2], index: 18, kind: input, shape index: {}]   ;;  %s4487_s19 = inlined_call_operand.vmem [shape: f32[1,2], index: 19, kind: input, shape index: {}]   ;;  %s4488_s20 = inlined_call_operand.vmem [shape: f32[1,2], index: 20, kind: input, shape index: {}]   ;;  %s4489_s21 = inlined_call_operand.vmem [shape: f32[1,2], index: 21, kind: input, shape index: {}]   ;;  %s4490_s22 = inlined_call_operand.vmem [shape: f32[1,2], index: 22, kind: input, shape index: {}]   ;;  %s4491_s23 = inlined_call_operand.vmem [shape: f32[2,128,2], index: 23, kind: output, shape index: {0}]   ;;  %s4492_s24 = inlined_call_operand.vmem [shape: f32[2,128,2], index: 24, kind: output, shape index: {1}]   ;;  %s4493_s25 = inlined_call_operand.vmem [shape: f32[2,128,2], index: 25, kind: output, shape index: {2}]   ;;  %s4494_s26 = inlined_call_operand.vmem [shape: f32[2,128,2], index: 26, kind: output, shape index: {3}]   ;;  %s4495_s27 = inlined_call_operand.vmem [shape: f32[2,128,2], index: 27, kind: output, shape index: {4}]  }
   0x1   :  { %4501 = sst [smem:[#allocation2_spill]] %s4468_s0 }
   0x2   :  { %4502 = sst [smem:[#allocation3_spill]] %s4469_s1 }
   0x3   :  { %4503 = sst [smem:[#allocation4_spill]] %s4470_s2 }
   0x4   :  { %4504 = sst [smem:[#allocation5_spill]] %s4471_s3 }
   0x5   :  { %4505 = sst [smem:[#allocation6_spill]] %s4472_s4 }
   0x6   :  { %4506 = sst [smem:[#allocation7_spill]] %s4473_s5 }
   0x7   :  { %4507 = sst [smem:[#allocation8_spill]] %s4474_s6 }
   0x8   :  { %4508 = sst [smem:[#allocation9_spill]] %s4475_s7  ;;  %s3213_s7 = smov 0  }
   0x9   :  { %4509 = sst [smem:[#allocation10_spill]] %s4476_s8 }
   0xa   :  { %4510 = sst [smem:[#allocation11_spill]] %s4477_s9 }
   0xb   :  { %4511 = sst [smem:[#allocation12_spill]] %s4478_s10 }
   0xc   :  { %4512 = sst [smem:[#allocation13_spill]] %s4479_s11 }
   0xd LB: > { %s2832_s4 = sadd.s32 4294967295, %s3070_s7   ;;  %p2836_p0 = scmp.ge.s32.totalorder %s3070_s7, 1  ;;  %s3070_s7 = sphi %s3213_s7, %s38_s7  }
   0xe   : > { %p786_p1 = scmp.lt.s32.totalorder %s3070_s7, 3 }
  0x10   : > { %p787_p2 = pnand %p2836_p0, %p786_p1 }
  0x11   : > { %p898_p3 = scmp.lt.s32.totalorder (!%p787_p2), %s2832_s4, 1  ;;  %s4513_s1 = sld [smem:[#allocation7_spill]] (!%p787_p2) }
  0x12   : > { %790 = sbr.rel (%p787_p2) target bundleno = 551 (0x227), region = 112  ;;  %s4514_s2 = sld [smem:[#allocation12_spill]] (!%p787_p2) }
  0x13   : > { %s4515_s30 = sld [smem:[#allocation8_spill]] (!%p787_p2) }
  0x14   : > { %s4516_s0 = sld [smem:[#allocation13_spill]] (!%p787_p2) }
  0x15   : > { %s4517_s11 = sld [smem:[#allocation2_spill]] (!%p787_p2) }
  0x16   : > { %s4519_s6 = sld [smem:[#allocation4_spill]] (!%p787_p2) }
  0x17   : > { %v2857_v0 = vld [vmem:[%s4483_s15 + $0x2] sm:$0x3]  ;;  %vm1072_vm0 = vcmask 1041408   ;;  %v2890_v1 = vld [vmem:[%s4483_s15 + $0x4] sm:$0x3]  ;;  %s4531_s4 = smov (!%p898_p3, %s2832_s4), 1 }
  0x18   : > { %2858 = vmatpush.msk.msra.mxu0 %vm1072_vm0, %v2857_v0  ;;  %2891 = vmatpush.msk.msra.mxu2 %vm1072_vm0, %v2890_v1  ;;  %v2906_v2 = vld [vmem:[%s4484_s16 + $0x2] sm:$0x3]  ;;  %v3236_v3 = vld [vmem:[%s4513_s1] ss:$0 sm:$0xff]  ;;  %s3248_s9 = sshll.u32 %s4531_s4, 7  ;;  %s4518_s4 = sld [smem:[#allocation3_spill]] }
  0x19   : > { %2907 = vmatpush.msk.msra.mxu3 %vm1072_vm0, %v2906_v2  ;;  %v3241_v4 = vld [vmem:[%s4514_s2] ss:$0 sm:$0xff]  ;;  %v2951_v7 = vld [vmem:[%s4485_s17 + $0x2] sm:$0x3]  ;;  %v2937_v10 = vld [vmem:[%s4484_s16 + $0x4] sm:$0x3]  ;;  %s3577_s29 = scalar_lea.vmem %s4491_s23, %s3248_s9  ;;  %s4409_s10 = scalar_lea.vmem %s4495_s27, %s3248_s9 }
  0x1a   : > { %v3246_v5 = vld [vmem:[%s4515_s30] ss:$0 sm:$0xff]  ;;  %2952 = vmatpush.msk.msrb.mxu2 %vm1072_vm0, %v2951_v7  ;;  %v3072_v17 = vmov 0.0   ;;  %vm1023_vm1 = vcmask 15360   ;;  %s4522_s8 = sld [smem:[#allocation10_spill]] }
  0x1b   : > { %v3253_v6 = vld [vmem:[%s4516_s0] ss:$0 sm:$0xff]  ;;  %s3262_s2 = scalar_lea.vmem %s4517_s11, %s3248_s9  ;;  %s4255_s0 = scalar_lea.vmem %s4494_s26, %s3248_s9 }
  0x1c   : > { %v1020_v8 = vld [vmem:[%s4483_s15] sm:$0x3]  ;;  %v950_v12 = vld [vmem:[%s3262_s2 + $0x10] sm:$0xff]  ;;  %v949_v18 = vld [vmem:[%s3262_s2 + $0x8] sm:$0xff]  ;;  %s3516_s11 = scalar_lea.vmem %s4519_s6, %s3248_s9  ;;  %s3920_s6 = scalar_lea.vmem %s4492_s24, %s3248_s9 }
  0x1d   : > { %v1787_v9 = vld [vmem:[%s4485_s17] sm:$0x3]  ;;  %2875 = vmatpush.msk.msra.mxu1 %vm1072_vm0, %v1020_v8  ;;  %v970_v15 = vmul.f32 %v3236_v3, %v950_v12  ;;  %v951_v19 = vld [vmem:[%s3262_s2 + $0x18] sm:$0xff]  ;;  %v969_v21 = vmul.f32 %v3236_v3, %v949_v18  ;;  %v953_v43 = vld [vmem:[%s3262_s2 + $0x28] sm:$0xff] }
  0x1e   : > { %s3268_s30 = scalar_lea.vmem %s4518_s4, %s3248_s9  ;;  %v948_v11 = vld [vmem:[%s3262_s2] sm:$0xff]  ;;  %2969 = vmatpush.msk.msrb.mxu3 %vm1072_vm0, %v1787_v9  ;;  %1163 = vmatmul.f32.vlgmr.msra.gmra.mxu1 %v3072_v17  ;;  %v971_v26 = vmul.f32 %v3236_v3, %v951_v19  ;;  %v973_v46 = vmul.f32 %v3236_v3, %v953_v43  ;;  %v954_v51 = vld [vmem:[%s3262_s2 + $0x30] sm:$0xff]  ;;  %v955_v59 = vld [vmem:[%s3262_s2 + $0x38] sm:$0xff] }
  0x1f   : > { %v1334_v13 = vld [vmem:[%s3268_s30] sm:$0xff]  ;;  %v968_v14 = vmul.f32 %v3236_v3, %v948_v11  ;;  %v1335_v20 = vld [vmem:[%s3268_s30 + $0x8] sm:$0xff]  ;;  %2938 = vmatpush.msk.msrb.mxu1 %vm1072_vm0, %v2937_v10  ;;  %v990_v24 = vadd.f32 %v3241_v4, %v970_v15  ;;  %v989_v31 = vadd.f32 %v3241_v4, %v969_v21  ;;  %v1336_v35 = vld [vmem:[%s3268_s30 + $0x10] sm:$0xff]  ;;  %v974_v54 = vmul.f32 %v3236_v3, %v954_v51 }
  0x20   : > { %v1354_v16 = vmul.f32 %v3246_v5, %v1334_v13  ;;  %v1406_v22 = vld [vmem:[%s4484_s16] sm:$0x3]  ;;  %v1355_v27 = vmul.f32 %v3246_v5, %v1335_v20  ;;  %v991_v32 = vadd.f32 %v3241_v4, %v971_v26  ;;  %v1356_v40 = vmul.f32 %v3246_v5, %v1336_v35  ;;  %v1337_v44 = vld [vmem:[%s3268_s30 + $0x18] sm:$0xff]  ;;  %v1339_v60 = vld [vmem:[%s3268_s30 + $0x28] sm:$0xff] }
  0x21   : > { %v988_v23 = vadd.f32 %v3241_v4, %v968_v14  ;;  %2924 = vmatpush.msk.msrb.mxu0 %vm1072_vm0, %v1406_v22  ;;  %v1006_v29 = vmax.f32 %v990_v24, 0.0  ;;  %v952_v34 = vld [vmem:[%s3262_s2 + $0x20] sm:$0xff]  ;;  %v1005_v36 = vmax.f32 %v989_v31, 0.0  ;;  %v1357_v48 = vmul.f32 %v3246_v5, %v1337_v44  ;;  %v1340_v8 = vld [vmem:[%s3268_s30 + $0x30] sm:$0xff]  ;;  %v957_v15 = vld [vmem:[%s3262_s2 + $0x48] sm:$0xff] }
  0x22   : > { %v3300_v25 = vadd.f32 %v3253_v6, %v1354_v16  ;;  %v3314_v33 = vadd.f32 %v3253_v6, %v1355_v27  ;;  %v1007_v37 = vmax.f32 %v991_v32, 0.0  ;;  %v972_v38 = vmul.f32 %v3236_v3, %v952_v34  ;;  %v1338_v52 = vld [vmem:[%s3268_s30 + $0x20] sm:$0xff]  ;;  %v1341_v16 = vld [vmem:[%s3268_s30 + $0x38] sm:$0xff]  ;;  %v958_v24 = vld [vmem:[%s3262_s2 + $0x50] sm:$0xff] }
  0x23   : > { %v1004_v28 = vmax.f32 %v988_v23, 0.0  ;;  %2892 = vmatmul.msk.f32.vlgmr.msra.gmra.mxu2 %vm1023_vm1, %v1006_v29  ;;  %v3329_v42 = vadd.f32 %v3253_v6, %v1356_v40  ;;  %v993_v49 = vadd.f32 %v3241_v4, %v973_v46  ;;  %v3344_v50 = vadd.f32 %v3253_v6, %v1357_v48  ;;  %v956_v7 = vld [vmem:[%s3262_s2 + $0x40] sm:$0xff]  ;;  %v959_v35 = vld [vmem:[%s3262_s2 + $0x58] sm:$0xff]  ;;  %v1344_v46 = vld [vmem:[%s3268_s30 + $0x50] sm:$0xff] }
  0x24   : > { %v1390_v30 = vmax.f32 %v3300_v25, 0.0  ;;  %v1391_v39 = vmax.f32 %v3314_v33, 0.0  ;;  %v992_v41 = vadd.f32 %v3241_v4, %v972_v38  ;;  %v1358_v56 = vmul.f32 %v3246_v5, %v1338_v52  ;;  %v1342_v26 = vld [vmem:[%s3268_s30 + $0x40] sm:$0xff] }
  0x25   : > { %2859 = vmatmul.msk.f32.vlgmr.msra.gmra.mxu0 %vm1023_vm1, %v1004_v28  ;;  %v1392_v47 = vmax.f32 %v3329_v42, 0.0  ;;  %v1009_v53 = vmax.f32 %v993_v49, 0.0  ;;  %v1393_v55 = vmax.f32 %v3344_v50, 0.0  ;;  %v994_v57 = vadd.f32 %v3241_v4, %v974_v54 }
  0x26   : > { %2908 = vmatmul.msk.f32.vlgmr.msra.gmra.mxu3 %vm1023_vm1, %v1390_v30  ;;  %1166 = vmatmul.f32.gmra.mxu1 %v3072_v17  ;;  %v1008_v45 = vmax.f32 %v992_v41, 0.0  ;;  %v1378_v58 = vadd.f32 %v3253_v6, %v1358_v56  ;;  %v975_v62 = vmul.f32 %v3236_v3, %v955_v59  ;;  %v1359_v0 = vmul.f32 %v3246_v5, %v1339_v60  ;;  %v961_v56 = vld [vmem:[%s3262_s2 + $0x68] sm:$0xff] }
  0x27   : > { %v1010_v61 = vmax.f32 %v994_v57, 0.0  ;;  %v976_v10 = vmul.f32 %v3236_v3, %v956_v7  ;;  %v1360_v12 = vmul.f32 %v3246_v5, %v1340_v8  ;;  %v977_v19 = vmul.f32 %v3236_v3, %v957_v15  ;;  %v1345_v57 = vld [vmem:[%s3268_s30 + $0x58] sm:$0xff]  ;;  %v1347_v15 = vld [vmem:[%s3268_s30 + $0x68] sm:$0xff] }
  0x28   : > { %v3363_v63 = vmax.f32 %v1378_v58, 0.0  ;;  %v995_v1 = vadd.f32 %v3241_v4, %v975_v62  ;;  %v1379_v2 = vadd.f32 %v3253_v6, %v1359_v0  ;;  %v1361_v21 = vmul.f32 %v3246_v5, %v1341_v16 }
  0x29   : > { %v996_v13 = vadd.f32 %v3241_v4, %v976_v10  ;;  %v1380_v14 = vadd.f32 %v3253_v6, %v1360_v12  ;;  %v997_v22 = vadd.f32 %v3241_v4, %v977_v19  ;;  %v1362_v31 = vmul.f32 %v3246_v5, %v1342_v26  ;;  %v1348_v26 = vld [vmem:[%s3268_s30 + $0x70] sm:$0xff] }
  0x2a   : > { %v1011_v9 = vmax.f32 %v995_v1, 0.0  ;;  %v3376_v11 = vmax.f32 %v1379_v2, 0.0  ;;  %v1381_v23 = vadd.f32 %v3253_v6, %v1361_v21  ;;  %v979_v38 = vmul.f32 %v3236_v3, %v959_v35  ;;  %v962_v1 = vld [vmem:[%s3262_s2 + $0x70] sm:$0xff]  ;;  %v1346_v2 = vld [vmem:[%s3268_s30 + $0x60] sm:$0xff]  ;;  %v1349_v35 = vld [vmem:[%s3268_s30 + $0x78] sm:$0xff] }
  0x2b   : > { %2893 = vmatmul.msk.f32.gmra.mxu2 %vm1023_vm1, %v1007_v37  ;;  %v1012_v18 = vmax.f32 %v996_v13, 0.0  ;;  %v3389_v20 = vmax.f32 %v1380_v14, 0.0  ;;  %v1013_v27 = vmax.f32 %v997_v22, 0.0  ;;  %v1382_v34 = vadd.f32 %v3253_v6, %v1362_v31  ;;  %v963_v14 = vld [vmem:[%s3262_s2 + $0x78] sm:$0xff]  ;;  %v2992_v31 = vld [vmem:[%s4486_s18 + $0x2] sm:$0x3] }
  0x2c   : > { %v999_v43 = vadd.f32 %v3241_v4, %v979_v38  ;;  %v1364_v52 = vmul.f32 %v3246_v5, %v1344_v46  ;;  %v981_v59 = vmul.f32 %v3236_v3, %v961_v56  ;;  %v982_v8 = vmul.f32 %v3236_v3, %v962_v1  ;;  %2993 = vmatpush.msk.msra.mxu1 %vm1072_vm0, %v2992_v31 }
  0x2d   : > { %2860 = vmatmul.msk.f32.gmra.mxu0 %vm1023_vm1, %v1005_v36  ;;  %v3415_v40 = vmax.f32 %v1382_v34, 0.0  ;;  %v1366_v10 = vmul.f32 %v3246_v5, %v1346_v2  ;;  %v1367_v21 = vmul.f32 %v3246_v5, %v1347_v15  ;;  %v2980_v34 = vld [vmem:[%s4485_s17 + $0x4] sm:$0x3]  ;;  %v1718_v15 = vld [vmem:[%s3516_s11 + $0x18] sm:$0xff] }
  0x2e   : > { %2909 = vmatmul.msk.f32.gmra.mxu3 %vm1023_vm1, %v1391_v39  ;;  %2876 = vmatmul.msk.f32.gmra.mxu1 %vm1023_vm1, %v1004_v28  ;;  %v978_v28 = vmul.f32 %v3236_v3, %v958_v24  ;;  %v1015_v48 = vmax.f32 %v999_v43, 0.0  ;;  %v1384_v54 = vadd.f32 %v3253_v6, %v1364_v52  ;;  %v1001_v62 = vadd.f32 %v3241_v4, %v981_v59  ;;  %v3019_v24 = vld [vmem:[%s4486_s18 + $0x4] sm:$0x3]  ;;  %v3565_v59 = vld [vmem:[%s4487_s19] ss:$0 sm:$0xff] }
  0x2f   : > { %v1002_v12 = vadd.f32 %v3241_v4, %v982_v8  ;;  %v3463_v13 = vadd.f32 %v3253_v6, %v1366_v10  ;;  %3020 = vmatpush.msk.msra.mxu3 %vm1072_vm0, %v3019_v24  ;;  %2981 = vmatpush.msk.msra.mxu0 %vm1072_vm0, %v2980_v34  ;;  %v1719_v34 = vld [vmem:[%s3516_s11 + $0x20] sm:$0xff] }
  0x30   : > { %v998_v32 = vadd.f32 %v3241_v4, %v978_v28  ;;  %v3441_v60 = vmax.f32 %v1384_v54, 0.0  ;;  %v1017_v7 = vmax.f32 %v1001_v62, 0.0  ;;  %v1368_v28 = vmul.f32 %v3246_v5, %v1348_v26 }
  0x31   : > { %v1018_v16 = vmax.f32 %v1002_v12, 0.0  ;;  %v1402_v19 = vmax.f32 %v3463_v13, 0.0 }
  0x33   : > { %2894 = vmatmul.msk.f32.gmra.mxu2 %vm1023_vm1, %v1008_v45 }
  0x35   : > { %2861 = vmatmul.msk.f32.gmra.mxu0 %vm1023_vm1, %v1006_v29 }
  0x36   : > { %2910 = vmatmul.msk.f32.gmra.mxu3 %vm1023_vm1, %v1392_v47  ;;  %2877 = vmatmul.msk.f32.gmra.mxu1 %vm1023_vm1, %v1005_v36  ;;  %v1343_v36 = vld [vmem:[%s3268_s30 + $0x48] sm:$0xff]  ;;  %s4520_s30 = sld [smem:[#allocation9_spill]] }
  0x37   : > { %v1363_v41 = vmul.f32 %v3246_v5, %v1343_v36 }
  0x39   : > { %v1383_v44 = vadd.f32 %v3253_v6, %v1363_v41  ;;  %v1715_v41 = vld [vmem:[%s3516_s11] sm:$0xff] }
  0x3b   : > { %2895 = vmatmul.msk.f32.gmra.mxu2 %vm1023_vm1, %v1009_v53  ;;  %v3428_v51 = vmax.f32 %v1383_v44, 0.0  ;;  %v3537_v44 = vld [vmem:[%s4480_s12] ss:$0 sm:$0xff] }
  0x3c   : > { %v3523_v38 = vld [vmem:[%s4520_s30] ss:$0 sm:$0xff]  ;;  %s4529_s30 = sld [smem:[#allocation11_spill]] }
  0x3d   : > { %2862 = vmatmul.msk.f32.gmra.mxu0 %vm1023_vm1, %v1007_v37  ;;  %v1735_v43 = vmul.f32 %v3523_v38, %v1715_v41 }
  0x3e   : > { %2911 = vmatmul.msk.f32.gmra.mxu3 %vm1023_vm1, %v1393_v55  ;;  %2878 = vmatmul.msk.f32.gmra.mxu1 %vm1023_vm1, %v1006_v29  ;;  %v3402_v29 = vmax.f32 %v1381_v23, 0.0  ;;  %v3478_v23 = vadd.f32 %v3253_v6, %v1367_v21 }
  0x43   : > { %2896 = vmatmul.msk.f32.gmra.mxu2 %vm1023_vm1, %v1010_v61 }
  0x45   : > { %2863 = vmatmul.msk.f32.gmra.mxu0 %vm1023_vm1, %v1008_v45 }
  0x46   : > { %2912 = vmatmul.msk.f32.gmra.mxu3 %vm1023_vm1, %v3363_v63  ;;  %2879 = vmatmul.msk.f32.gmra.mxu1 %vm1023_vm1, %v1007_v37  ;;  %v1014_v37 = vmax.f32 %v998_v32, 0.0  ;;  %v3501_v32 = vadd.f32 %v3253_v6, %v1368_v28 }
  0x48   : > { %v1404_v36 = vmax.f32 %v3501_v32, 0.0 }
  0x4b   : > { %2897 = vmatmul.msk.f32.gmra.mxu2 %vm1023_vm1, %v1011_v9 }
  0x4d   : > { %2864 = vmatmul.msk.f32.gmra.mxu0 %vm1023_vm1, %v1009_v53 }
  0x4e   : > { %2913 = vmatmul.msk.f32.gmra.mxu3 %vm1023_vm1, %v3376_v11  ;;  %2880 = vmatmul.msk.f32.gmra.mxu1 %vm1023_vm1, %v1008_v45  ;;  %v960_v45 = vld [vmem:[%s3262_s2 + $0x60] sm:$0xff]  ;;  %s4521_s2 = sld [smem:[#allocation5_spill]] }
  0x4f   : > { %v980_v49 = vmul.f32 %v3236_v3, %v960_v45 }
  0x53   : > { %2898 = vmatmul.msk.f32.gmra.mxu2 %vm1023_vm1, %v1012_v18 }
  0x54   : > { %s3834_s3 = scalar_lea.vmem %s4521_s2, %s3248_s9 }
  0x55   : > { %2865 = vmatmul.msk.f32.gmra.mxu0 %vm1023_vm1, %v1010_v61 }
  0x56   : > { %2914 = vmatmul.msk.f32.gmra.mxu3 %vm1023_vm1, %v3389_v20  ;;  %2881 = vmatmul.msk.f32.gmra.mxu1 %vm1023_vm1, %v1009_v53  ;;  %v1000_v53 = vadd.f32 %v3241_v4, %v980_v49 }
  0x58   : > { %v1016_v58 = vmax.f32 %v1000_v53, 0.0 }
  0x5b   : > { %2899 = vmatmul.msk.f32.gmra.mxu2 %vm1023_vm1, %v1013_v27 }
  0x5d   : > { %2866 = vmatmul.msk.f32.gmra.mxu0 %vm1023_vm1, %v1011_v9 }
  0x5e   : > { %2915 = vmatmul.msk.f32.gmra.mxu3 %vm1023_vm1, %v3402_v29  ;;  %2882 = vmatmul.msk.f32.gmra.mxu1 %vm1023_vm1, %v1010_v61  ;;  %v1365_v61 = vmul.f32 %v3246_v5, %v1345_v57 }
  0x60   : > { %v1385_v0 = vadd.f32 %v3253_v6, %v1365_v61 }
  0x63   : > { %2900 = vmatmul.msk.f32.gmra.mxu2 %vm1023_vm1, %v1014_v37 }
  0x65   : > { %2867 = vmatmul.msk.f32.gmra.mxu0 %vm1023_vm1, %v1012_v18 }
  0x66   : > { %2916 = vmatmul.msk.f32.gmra.mxu3 %vm1023_vm1, %v3415_v40  ;;  %2883 = vmatmul.msk.f32.gmra.mxu1 %vm1023_vm1, %v1011_v9  ;;  %v3454_v9 = vmax.f32 %v1385_v0, 0.0 }
  0x6b   : > { %2901 = vmatmul.msk.f32.gmra.mxu2 %vm1023_vm1, %v1015_v48 }
  0x6d   : > { %2868 = vmatmul.msk.f32.gmra.mxu0 %vm1023_vm1, %v1013_v27 }
  0x6e   : > { %2917 = vmatmul.msk.f32.gmra.mxu3 %vm1023_vm1, %v3428_v51  ;;  %2884 = vmatmul.msk.f32.gmra.mxu1 %vm1023_vm1, %v1012_v18  ;;  %v983_v18 = vmul.f32 %v3236_v3, %v963_v14  ;;  %v2168_v3 = vld [vmem:[%s4486_s18] sm:$0x3] }
  0x6f   : > { %3010 = vmatpush.msk.msra.mxu2 %vm1072_vm0, %v2168_v3  ;;  %v1738_v3 = vmul.f32 %v3523_v38, %v1718_v15 }
  0x70   : > { %v1003_v22 = vadd.f32 %v3241_v4, %v983_v18 }
  0x71   : > { %v3605_v31 = vadd.f32 %v3537_v44, %v1738_v3  ;;  %v1721_v3 = vld [vmem:[%s3516_s11 + $0x30] sm:$0xff] }
  0x72   : > { %v1019_v4 = vmax.f32 %v1003_v22, 0.0 }
  0x73   : > { %2902 = vmatmul.msk.f32.gmra.mxu2 %vm1023_vm1, %v1016_v58 }
  0x75   : > { %2869 = vmatmul.msk.f32.gmra.mxu0 %vm1023_vm1, %v1014_v37 }
  0x76   : > { %2918 = vmatmul.msk.f32.gmra.mxu3 %vm1023_vm1, %v3441_v60  ;;  %2885 = vmatmul.msk.f32.gmra.mxu1 %vm1023_vm1, %v1013_v27  ;;  %v1403_v27 = vmax.f32 %v3478_v23, 0.0 }
  0x7b   : > { %2903 = vmatmul.msk.f32.gmra.mxu2 %vm1023_vm1, %v1017_v7 }
  0x7d   : > { %2870 = vmatmul.msk.f32.gmra.mxu0 %vm1023_vm1, %v1015_v48 }
  0x7e   : > { %2919 = vmatmul.msk.f32.gmra.mxu3 %vm1023_vm1, %v3454_v9  ;;  %2886 = vmatmul.msk.f32.gmra.mxu1 %vm1023_vm1, %v1014_v37  ;;  %v1369_v37 = vmul.f32 %v3246_v5, %v1349_v35 }
  0x80   : > { %v3529_v5 = vadd.f32 %v3253_v6, %v1369_v37  ;;  %v3543_v6 = vadd.f32 %v3537_v44, %v1735_v43  ;;  %v1774_v43 = vmax.f32 %v3605_v31, 0.0 }
  0x82   : > { %v1405_v45 = vmax.f32 %v3529_v5, 0.0  ;;  %v1771_v49 = vmax.f32 %v3543_v6, 0.0 }
  0x83   : > { %2904 = vmatmul.msk.f32.gmra.mxu2 %vm1023_vm1, %v1018_v16 }
  0x85   : > { %2871 = vmatmul.msk.f32.gmra.mxu0 %vm1023_vm1, %v1016_v58 }
  0x86   : > { %2920 = vmatmul.msk.f32.gmra.mxu3 %vm1023_vm1, %v1402_v19  ;;  %2887 = vmatmul.msk.f32.gmra.mxu1 %vm1023_vm1, %v1015_v48  ;;  %v1716_v48 = vld [vmem:[%s3516_s11 + $0x8] sm:$0xff] }
  0x87   : > { %v1736_v52 = vmul.f32 %v3523_v38, %v1716_v48 }
  0x89   : > { %v3558_v57 = vadd.f32 %v3537_v44, %v1736_v52 }
  0x8b   : > { %2905 = vmatmul.msk.f32.gmra.mxu2 %vm1023_vm1, %v1019_v4  ;;  %v1772_v1 = vmax.f32 %v3558_v57, 0.0 }
  0x8d   : > { %2872 = vmatmul.msk.f32.gmra.mxu0 %vm1023_vm1, %v1017_v7 }
  0x8e   : > { %2921 = vmatmul.msk.f32.gmra.mxu3 %vm1023_vm1, %v1403_v27  ;;  %2888 = vmatmul.msk.f32.gmra.mxu1 %vm1023_vm1, %v1016_v58  ;;  %v1717_v58 = vld [vmem:[%s3516_s11 + $0x10] sm:$0xff] }
  0x8f   : > { %v1737_v2 = vmul.f32 %v3523_v38, %v1717_v58  ;;  %v1720_v58 = vld [vmem:[%s3516_s11 + $0x28] sm:$0xff] }
  0x91   : > { %v3587_v14 = vadd.f32 %v3537_v44, %v1737_v2 }
  0x93   : > { %1275 = vmatmul.f32.gmra.mxu2 %v3072_v17  ;;  %v1773_v22 = vmax.f32 %v3587_v14, 0.0 }
  0x95   : > { %2873 = vmatmul.msk.f32.gmra.mxu0 %vm1023_vm1, %v1018_v16 }
  0x96   : > { %2922 = vmatmul.msk.f32.gmra.mxu3 %vm1023_vm1, %v1404_v36  ;;  %2889 = vmatmul.msk.f32.gmra.mxu1 %vm1023_vm1, %v1017_v7 }
  0x9b   : > { %v1164_v46 = vpop.f32.mrf.mxu1  ;;  %1278 = vmatmul.f32.gmra.mxu2 %v3072_v17 }
  0x9d   : > { %2874 = vmatmul.msk.f32.gmra.mxu0 %vm1023_vm1, %v1019_v4 }
  0x9e   : > { %2923 = vmatmul.msk.f32.gmra.mxu3 %vm1023_vm1, %v1405_v45  ;;  %2939 = vmatmul.msk.f32.vlgmr.msrb.gmra.mxu1 %vm1023_vm1, %v3363_v63 }
  0xa2   : > { %v1093_v53 = vpop.f32.mrf.mxu0 }
  0xa3   : > { %v1167_v54 = vpop.f32.mrf.mxu1  ;;  %v1165_v56 = vadd.f32 %v1164_v46, %v1093_v53  ;;  %2953 = vmatmul.msk.f32.vlgmr.msrb.gmra.mxu2 %vm1023_vm1, %v1771_v49  ;;  %v1739_v46 = vmul.f32 %v3523_v38, %v1719_v34 }
  0xa5   : > { %1544 = vmatmul.f32.vlgmr.msrb.gmra.mxu0 %v3072_v17 }
  0xa6   : > { %1925 = vmatmul.f32.vlgmr.msrb.gmra.mxu3 %v3072_v17  ;;  %2940 = vmatmul.msk.f32.gmra.mxu1 %vm1023_vm1, %v3376_v11  ;;  %v1234_v61 = vpop.f32.mrf.mxu2 }
  0xa7   : > { %v1282_v62 = vadd.f32 %v1234_v61, %v1165_v56  ;;  %v3623_v56 = vadd.f32 %v3537_v44, %v1739_v46 }
  0xa9   : > { %v3569_v0 = vpop.f32.mrf.mxu3  ;;  %v1302_v8 = vadd.f32 %v3565_v59, %v1282_v62 }
  0xaa   : > { %v1096_v7 = vpop.f32.mrf.mxu0 }
  0xab   : > { %v1170_v10 = vpop.f32.mrf.mxu1  ;;  %1318 = vst.msk [vmem:[%s3577_s29] sm:$0xff] %vm1023_vm1, %v1302_v8  ;;  %v1168_v12 = vadd.f32 %v1167_v54, %v1096_v7  ;;  %2954 = vmatmul.msk.f32.gmra.mxu2 %vm1023_vm1, %v1772_v1  ;;  %v1775_v7 = vmax.f32 %v3623_v56, 0.0  ;;  %v1740_v8 = vmul.f32 %v3523_v38, %v1720_v58 }
  0xad   : > { %1547 = vmatmul.f32.gmra.mxu0 %v3072_v17 }
  0xae   : > { %1928 = vmatmul.f32.gmra.mxu3 %v3072_v17  ;;  %2941 = vmatmul.msk.f32.gmra.mxu1 %vm1023_vm1, %v3389_v20  ;;  %v1237_v16 = vpop.f32.mrf.mxu2 }
  0xaf   : > { %v1283_v18 = vadd.f32 %v1237_v16, %v1168_v12 }
  0xb1   : > { %v3593_v21 = vpop.f32.mrf.mxu3  ;;  %v1303_v26 = vadd.f32 %v3565_v59, %v1283_v18  ;;  %v3643_v18 = vadd.f32 %v3537_v44, %v1740_v8 }
  0xb2   : > { %v1099_v24 = vpop.f32.mrf.mxu0 }
  0xb3   : > { %v1173_v4 = vpop.f32.mrf.mxu1  ;;  %1319 = vst.msk [vmem:[%s3577_s29 + $0x8] sm:$0xff] %vm1023_vm1, %v1303_v26  ;;  %v1171_v28 = vadd.f32 %v1170_v10, %v1099_v24  ;;  %2955 = vmatmul.msk.f32.gmra.mxu2 %vm1023_vm1, %v1773_v22  ;;  %v1776_v25 = vmax.f32 %v3643_v18, 0.0 }
  0xb5   : > { %1550 = vmatmul.f32.gmra.mxu0 %v3072_v17 }
  0xb6   : > { %1931 = vmatmul.f32.gmra.mxu3 %v3072_v17  ;;  %2942 = vmatmul.msk.f32.gmra.mxu1 %vm1023_vm1, %v3402_v29  ;;  %v1240_v35 = vpop.f32.mrf.mxu2 }
  0xb7   : > { %v1284_v37 = vadd.f32 %v1240_v35, %v1171_v28 }
  0xb9   : > { %v3611_v41 = vpop.f32.mrf.mxu3  ;;  %v1304_v52 = vadd.f32 %v3565_v59, %v1284_v37 }
  0xba   : > { %v1102_v48 = vpop.f32.mrf.mxu0 }
  0xbb   : > { %v1176_v53 = vpop.f32.mrf.mxu1  ;;  %1320 = vst.msk [vmem:[%s3577_s29 + $0x10] sm:$0xff] %vm1023_vm1, %v1304_v52  ;;  %v1174_v54 = vadd.f32 %v1173_v4, %v1102_v48  ;;  %2956 = vmatmul.msk.f32.gmra.mxu2 %vm1023_vm1, %v1774_v43  ;;  %v1722_v48 = vld [vmem:[%s3516_s11 + $0x38] sm:$0xff] }
  0xbd   : > { %1553 = vmatmul.f32.gmra.mxu0 %v3072_v17 }
  0xbe   : > { %1934 = vmatmul.f32.gmra.mxu3 %v3072_v17  ;;  %2943 = vmatmul.msk.f32.gmra.mxu1 %vm1023_vm1, %v3415_v40  ;;  %v1243_v61 = vpop.f32.mrf.mxu2 }
  0xbf   : > { %v1285_v62 = vadd.f32 %v1243_v61, %v1174_v54 }
  0xc1   : > { %v3629_v2 = vpop.f32.mrf.mxu3  ;;  %v1305_v12 = vadd.f32 %v3565_v59, %v1285_v62 }
  0xc2   : > { %v1105_v10 = vpop.f32.mrf.mxu0 }
  0xc3   : > { %v1179_v15 = vpop.f32.mrf.mxu1  ;;  %1321 = vst.msk [vmem:[%s3577_s29 + $0x18] sm:$0xff] %vm1023_vm1, %v1305_v12  ;;  %v1177_v16 = vadd.f32 %v1176_v53, %v1105_v10  ;;  %2957 = vmatmul.msk.f32.gmra.mxu2 %vm1023_vm1, %v1775_v7  ;;  %v1723_v12 = vld [vmem:[%s3516_s11 + $0x40] sm:$0xff] }
  0xc5   : > { %2925 = vmatmul.msk.f32.gmra.mxu0 %vm1023_vm1, %v1390_v30  ;;  %v1741_v30 = vmul.f32 %v3523_v38, %v1721_v3 }
  0xc6   : > { %1937 = vmatmul.f32.gmra.mxu3 %v3072_v17  ;;  %2944 = vmatmul.msk.f32.gmra.mxu1 %vm1023_vm1, %v3428_v51  ;;  %v1246_v24 = vpop.f32.mrf.mxu2 }
  0xc7   : > { %v1286_v26 = vadd.f32 %v1246_v24, %v1177_v16  ;;  %v1761_v46 = vadd.f32 %v3537_v44, %v1741_v30 }
  0xc9   : > { %v3649_v4 = vpop.f32.mrf.mxu3  ;;  %v1306_v34 = vadd.f32 %v3565_v59, %v1286_v26  ;;  %v3669_v33 = vmax.f32 %v1761_v46, 0.0 }
  0xca   : > { %v1108_v28 = vpop.f32.mrf.mxu0 }
  0xcb   : > { %v1182_v35 = vpop.f32.mrf.mxu1  ;;  %1322 = vst.msk [vmem:[%s3577_s29 + $0x20] sm:$0xff] %vm1023_vm1, %v1306_v34  ;;  %v1180_v37 = vadd.f32 %v1179_v15, %v1108_v28  ;;  %2958 = vmatmul.msk.f32.gmra.mxu2 %vm1023_vm1, %v1776_v25  ;;  %v1724_v28 = vld [vmem:[%s3516_s11 + $0x48] sm:$0xff] }
  0xcd   : > { %2926 = vmatmul.msk.f32.gmra.mxu0 %vm1023_vm1, %v1391_v39  ;;  %v1742_v39 = vmul.f32 %v3523_v38, %v1722_v48 }
  0xce   : > { %1940 = vmatmul.f32.gmra.mxu3 %v3072_v17  ;;  %2945 = vmatmul.msk.f32.gmra.mxu1 %vm1023_vm1, %v3441_v60  ;;  %v1249_v52 = vpop.f32.mrf.mxu2 }
  0xcf   : > { %v1287_v53 = vadd.f32 %v1249_v52, %v1180_v37  ;;  %v1762_v10 = vadd.f32 %v3537_v44, %v1742_v39  ;;  %v1744_v37 = vmul.f32 %v3523_v38, %v1724_v28 }
  0xd1   : > { %v3667_v54 = vpop.f32.mrf.mxu3  ;;  %v1307_v61 = vadd.f32 %v3565_v59, %v1287_v53  ;;  %v3689_v42 = vmax.f32 %v1762_v10, 0.0  ;;  %v1764_v13 = vadd.f32 %v3537_v44, %v1744_v37 }
  0xd2   : > { %v1111_v58 = vpop.f32.mrf.mxu0 }
  0xd3   : > { %v1185_v62 = vpop.f32.mrf.mxu1  ;;  %1323 = vst.msk [vmem:[%s3577_s29 + $0x28] sm:$0xff] %vm1023_vm1, %v1307_v61  ;;  %v1183_v8 = vadd.f32 %v1182_v35, %v1111_v58  ;;  %2959 = vmatmul.msk.f32.gmra.mxu2 %vm1023_vm1, %v3669_v33 }
  0xd5   : > { %2927 = vmatmul.msk.f32.gmra.mxu0 %vm1023_vm1, %v1392_v47  ;;  %v1743_v47 = vmul.f32 %v3523_v38, %v1723_v12 }
  0xd6   : > { %2970 = vmatmul.msk.f32.gmra.mxu3 %vm1023_vm1, %v1771_v49  ;;  %2946 = vmatmul.msk.f32.gmra.mxu1 %vm1023_vm1, %v3454_v9  ;;  %v1252_v15 = vpop.f32.mrf.mxu2 }
  0xd7   : > { %v1288_v16 = vadd.f32 %v1252_v15, %v1183_v8  ;;  %v1763_v49 = vadd.f32 %v3537_v44, %v1743_v47 }
  0xd9   : > { %v3687_v3 = vpop.f32.mrf.mxu3  ;;  %v1308_v26 = vadd.f32 %v3565_v59, %v1288_v16 }
  0xda   : > { %v1114_v24 = vpop.f32.mrf.mxu0 }
  0xdb   : > { %v1188_v30 = vpop.f32.mrf.mxu1  ;;  %1324 = vst.msk [vmem:[%s3577_s29 + $0x30] sm:$0xff] %vm1023_vm1, %v1308_v26  ;;  %v1186_v6 = vadd.f32 %v1185_v62, %v1114_v24  ;;  %2960 = vmatmul.msk.f32.gmra.mxu2 %vm1023_vm1, %v3689_v42 }
  0xdd   : > { %2928 = vmatmul.msk.f32.gmra.mxu0 %vm1023_vm1, %v1393_v55  ;;  %v3710_v55 = vmax.f32 %v1763_v49, 0.0 }
  0xde   : > { %2971 = vmatmul.msk.f32.gmra.mxu3 %vm1023_vm1, %v1772_v1  ;;  %2947 = vmatmul.msk.f32.gmra.mxu1 %vm1023_vm1, %v1402_v19  ;;  %v1255_v34 = vpop.f32.mrf.mxu2  ;;  %v1725_v19 = vld [vmem:[%s3516_s11 + $0x50] sm:$0xff] }
  0xdf   : > { %v1289_v35 = vadd.f32 %v1255_v34, %v1186_v6  ;;  %v1745_v58 = vmul.f32 %v3523_v38, %v1725_v19 }
  0xe1   : > { %v3708_v50 = vpop.f32.mrf.mxu3  ;;  %v1309_v48 = vadd.f32 %v3565_v59, %v1289_v35  ;;  %v3741_v23 = vadd.f32 %v3537_v44, %v1745_v58 }
  0xe2   : > { %v1117_v46 = vpop.f32.mrf.mxu0 }
  0xe3   : > { %v1191_v57 = vpop.f32.mrf.mxu1  ;;  %1325 = vst.msk [vmem:[%s3577_s29 + $0x38] sm:$0xff] %vm1023_vm1, %v1309_v48  ;;  %v1189_v1 = vadd.f32 %v1188_v30, %v1117_v46  ;;  %2961 = vmatmul.msk.f32.gmra.mxu2 %vm1023_vm1, %v3710_v55 }
  0xe5   : > { %2929 = vmatmul.msk.f32.gmra.mxu0 %vm1023_vm1, %v3363_v63  ;;  %v3730_v63 = vmax.f32 %v1764_v13, 0.0  ;;  %v1729_v13 = vld [vmem:[%s3516_s11 + $0x70] sm:$0xff] }
  0xe6   : > { %2972 = vmatmul.msk.f32.gmra.mxu3 %vm1023_vm1, %v1773_v22  ;;  %2948 = vmatmul.msk.f32.gmra.mxu1 %vm1023_vm1, %v1403_v27  ;;  %v1258_v52 = vpop.f32.mrf.mxu2  ;;  %v1726_v27 = vld [vmem:[%s3516_s11 + $0x58] sm:$0xff]  ;;  %v1749_v58 = vmul.f32 %v3523_v38, %v1729_v13 }
  0xe7   : > { %v1290_v53 = vadd.f32 %v1258_v52, %v1189_v1  ;;  %v1746_v15 = vmul.f32 %v3523_v38, %v1726_v27 }
  0xe8   : > { %v3824_v27 = vadd.f32 %v3537_v44, %v1749_v58  ;;  %v2105_v58 = vld [vmem:[%s3834_s3 + $0x48] sm:$0xff] }
  0xe9   : > { %v3728_v39 = vpop.f32.mrf.mxu3  ;;  %v1310_v62 = vadd.f32 %v3565_v59, %v1290_v53  ;;  %v3763_v32 = vadd.f32 %v3537_v44, %v1746_v15 }
  0xea   : > { %v1120_v61 = vpop.f32.mrf.mxu0 }
  0xeb   : > { %v1194_v14 = vpop.f32.mrf.mxu1  ;;  %1326 = vst.msk [vmem:[%s3577_s29 + $0x40] sm:$0xff] %vm1023_vm1, %v1310_v62  ;;  %v1192_v22 = vadd.f32 %v1191_v57, %v1120_v61  ;;  %2962 = vmatmul.msk.f32.gmra.mxu2 %vm1023_vm1, %v3730_v63  ;;  %v1782_v30 = vmax.f32 %v3763_v32, 0.0 }
  0xed   : > { %2930 = vmatmul.msk.f32.gmra.mxu0 %vm1023_vm1, %v3376_v11  ;;  %v1781_v11 = vmax.f32 %v3741_v23, 0.0 }
  0xee   : > { %2973 = vmatmul.msk.f32.gmra.mxu3 %vm1023_vm1, %v1774_v43  ;;  %2949 = vmatmul.msk.f32.gmra.mxu1 %vm1023_vm1, %v1404_v36  ;;  %v1261_v8 = vpop.f32.mrf.mxu2  ;;  %v1727_v36 = vld [vmem:[%s3516_s11 + $0x60] sm:$0xff] }
  0xef   : > { %v1291_v10 = vadd.f32 %v1261_v8, %v1192_v22  ;;  %v1747_v6 = vmul.f32 %v3523_v38, %v1727_v36  ;;  %v1730_v8 = vld [vmem:[%s3516_s11 + $0x78] sm:$0xff] }
  0xf1   : > { %v3750_v12 = vpop.f32.mrf.mxu3  ;;  %v1311_v47 = vadd.f32 %v3565_v59, %v1291_v10  ;;  %v3785_v5 = vadd.f32 %v3537_v44, %v1747_v6  ;;  %v2096_v10 = vld [vmem:[%s3834_s3] sm:$0xff] }
  0xf2   : > { %v1123_v16 = vpop.f32.mrf.mxu0 }
  0xf3   : > { %v1197_v31 = vpop.f32.mrf.mxu1  ;;  %1327 = vst.msk [vmem:[%s3577_s29 + $0x48] sm:$0xff] %vm1023_vm1, %v1311_v47  ;;  %v1195_v43 = vadd.f32 %v1194_v14, %v1123_v16  ;;  %2963 = vmatmul.msk.f32.gmra.mxu2 %vm1023_vm1, %v1781_v11  ;;  %v1785_v47 = vmax.f32 %v3824_v27, 0.0 }
  0xf5   : > { %2931 = vmatmul.msk.f32.gmra.mxu0 %vm1023_vm1, %v3389_v20 }
  0xf6   : > { %2974 = vmatmul.msk.f32.gmra.mxu3 %vm1023_vm1, %v1775_v7  ;;  %2950 = vmatmul.msk.f32.gmra.mxu1 %vm1023_vm1, %v1405_v45  ;;  %v1264_v24 = vpop.f32.mrf.mxu2  ;;  %v1728_v45 = vld [vmem:[%s3516_s11 + $0x68] sm:$0xff]  ;;  %s4239_s11 = scalar_lea.vmem %s4493_s25, %s3248_s9 }
  0xf7   : > { %v1292_v26 = vadd.f32 %v1264_v24, %v1195_v43  ;;  %v1748_v46 = vmul.f32 %v3523_v38, %v1728_v45  ;;  %v3844_v43 = vld [vmem:[%s4522_s8] ss:$0 sm:$0xff]  ;;  %v2097_v45 = vld [vmem:[%s3834_s3 + $0x8] sm:$0xff] }
  0xf9   : > { %v3772_v20 = vpop.f32.mrf.mxu3  ;;  %v1312_v28 = vadd.f32 %v3565_v59, %v1292_v26  ;;  %v2116_v26 = vmul.f32 %v3844_v43, %v2096_v10  ;;  %v2125_v10 = vmul.f32 %v3844_v43, %v2105_v58 }
  0xfa   : > { %v1126_v49 = vpop.f32.mrf.mxu0 }
  0xfb   : > { %v1200_v56 = vpop.f32.mrf.mxu1  ;;  %1328 = vst.msk [vmem:[%s3577_s29 + $0x50] sm:$0xff] %vm1023_vm1, %v1312_v28  ;;  %v1198_v7 = vadd.f32 %v1197_v31, %v1126_v49  ;;  %2964 = vmatmul.msk.f32.gmra.mxu2 %vm1023_vm1, %v1782_v30  ;;  %v1750_v31 = vmul.f32 %v3523_v38, %v1730_v8  ;;  %v3861_v28 = vld [vmem:[%s4481_s13] ss:$0 sm:$0xff] }
  0xfd   : > { %2932 = vmatmul.msk.f32.gmra.mxu0 %vm1023_vm1, %v3402_v29  ;;  %v1783_v29 = vmax.f32 %v3785_v5, 0.0  ;;  %v3856_v38 = vadd.f32 %v3537_v44, %v1750_v31 }
  0xfe   : > { %2975 = vmatmul.msk.f32.gmra.mxu3 %vm1023_vm1, %v1776_v25  ;;  %1650 = vmatmul.f32.gmra.mxu1 %v3072_v17  ;;  %v1267_v34 = vpop.f32.mrf.mxu2  ;;  %v3805_v25 = vadd.f32 %v3537_v44, %v1748_v46 }
  0xff   : > { %v1293_v35 = vadd.f32 %v1267_v34, %v1198_v7 }
 0x101   : > { %v3792_v37 = vpop.f32.mrf.mxu3  ;;  %v1313_v57 = vadd.f32 %v3565_v59, %v1293_v35  ;;  %v1786_v35 = vmax.f32 %v3856_v38, 0.0 }
 0x102   : > { %v1129_v48 = vpop.f32.mrf.mxu0 }
 0x103   : > { %v1203_v1 = vpop.f32.mrf.mxu1  ;;  %1329 = vst.msk [vmem:[%s3577_s29 + $0x58] sm:$0xff] %vm1023_vm1, %v1313_v57  ;;  %v1201_v18 = vadd.f32 %v1200_v56, %v1129_v48  ;;  %2965 = vmatmul.msk.f32.gmra.mxu2 %vm1023_vm1, %v1783_v29  ;;  %v2104_v56 = vld [vmem:[%s3834_s3 + $0x40] sm:$0xff] }
 0x104   : > { %v2124_v48 = vmul.f32 %v3844_v43, %v2104_v56 }
 0x105   : > { %2933 = vmatmul.msk.f32.gmra.mxu0 %vm1023_vm1, %v3415_v40  ;;  %v1784_v40 = vmax.f32 %v3805_v25, 0.0 }
 0x106   : > { %2976 = vmatmul.msk.f32.gmra.mxu3 %vm1023_vm1, %v3669_v33  ;;  %1653 = vmatmul.f32.gmra.mxu1 %v3072_v17  ;;  %v1270_v19 = vpop.f32.mrf.mxu2 }
 0x107   : > { %v1294_v52 = vadd.f32 %v1270_v19, %v1201_v18  ;;  %v2117_v18 = vmul.f32 %v3844_v43, %v2097_v45  ;;  %v2099_v45 = vld [vmem:[%s3834_s3 + $0x18] sm:$0xff] }
 0x108   : > { %v2119_v58 = vmul.f32 %v3844_v43, %v2099_v45 }
 0x109   : > { %v3811_v53 = vpop.f32.mrf.mxu3  ;;  %v1314_v62 = vadd.f32 %v3565_v59, %v1294_v52  ;;  %v3888_v52 = vadd.f32 %v3861_v28, %v2124_v48 }
 0x10a   : > { %v1132_v61 = vpop.f32.mrf.mxu0 }
 0x10b   : > { %v1206_v14 = vpop.f32.mrf.mxu1  ;;  %1330 = vst.msk [vmem:[%s3577_s29 + $0x60] sm:$0xff] %vm1023_vm1, %v1314_v62  ;;  %v1204_v22 = vadd.f32 %v1203_v1, %v1132_v61  ;;  %2966 = vmatmul.msk.f32.gmra.mxu2 %vm1023_vm1, %v1784_v40  ;;  %v3895_v61 = vadd.f32 %v3861_v28, %v2117_v18  ;;  %v2098_v62 = vld [vmem:[%s3834_s3 + $0x10] sm:$0xff] }
 0x10d   : > { %2934 = vmatmul.msk.f32.gmra.mxu0 %vm1023_vm1, %v3428_v51 }
 0x10e   : > { %2977 = vmatmul.msk.f32.gmra.mxu3 %vm1023_vm1, %v3689_v42  ;;  %1656 = vmatmul.f32.gmra.mxu1 %v3072_v17  ;;  %v1273_v51 = vpop.f32.mrf.mxu2 }
 0x10f   : > { %v1295_v15 = vadd.f32 %v1273_v51, %v1204_v22  ;;  %v2160_v51 = vmax.f32 %v3888_v52, 0.0 }
 0x111   : > { %v3837_v16 = vpop.f32.mrf.mxu3  ;;  %v1315_v24 = vadd.f32 %v3565_v59, %v1295_v15 }
 0x112   : > { %v1135_v36 = vpop.f32.mrf.mxu0 }
 0x113   : > { %v1209_v6 = vpop.f32.mrf.mxu1  ;;  %1331 = vst.msk [vmem:[%s3577_s29 + $0x68] sm:$0xff] %vm1023_vm1, %v1315_v24  ;;  %v1207_v49 = vadd.f32 %v1206_v14, %v1135_v36  ;;  %2967 = vmatmul.msk.f32.gmra.mxu2 %vm1023_vm1, %v1785_v47  ;;  %v3907_v36 = vld [vmem:[%s4488_s20] ss:$0 sm:$0xff]  ;;  %v2153_v24 = vmax.f32 %v3895_v61, 0.0 }
 0x115   : > { %2935 = vmatmul.msk.f32.gmra.mxu0 %vm1023_vm1, %v3441_v60  ;;  %v3868_v60 = vadd.f32 %v3861_v28, %v2116_v26  ;;  %v2118_v26 = vmul.f32 %v3844_v43, %v2098_v62 }
 0x116   : > { %2978 = vmatmul.msk.f32.gmra.mxu3 %vm1023_vm1, %v3710_v55  ;;  %1659 = vmatmul.f32.gmra.mxu1 %v3072_v17  ;;  %v1276_v7 = vpop.f32.mrf.mxu2 }
 0x117   : > { %v1296_v34 = vadd.f32 %v1276_v7, %v1207_v49  ;;  %v2152_v1 = vmax.f32 %v3868_v60, 0.0  ;;  %v3934_v56 = vadd.f32 %v3861_v28, %v2118_v26 }
 0x119   : > { %v3871_v44 = vpop.f32.mrf.mxu3  ;;  %v1316_v57 = vadd.f32 %v3565_v59, %v1296_v34 }
 0x11a   : > { %v1138_v46 = vpop.f32.mrf.mxu0 }
 0x11b   : > { %v1615_v13 = vpop.f32.mrf.mxu1  ;;  %1332 = vst.msk [vmem:[%s3577_s29 + $0x70] sm:$0xff] %vm1023_vm1, %v1316_v57  ;;  %v1210_v19 = vadd.f32 %v1209_v6, %v1138_v46  ;;  %2968 = vmatmul.msk.f32.gmra.mxu2 %vm1023_vm1, %v1786_v35 }
 0x11d   : > { %2936 = vmatmul.msk.f32.gmra.mxu0 %vm1023_vm1, %v3454_v9 }
 0x11e   : > { %2979 = vmatmul.msk.f32.gmra.mxu3 %vm1023_vm1, %v3730_v63  ;;  %2994 = vmatmul.msk.f32.vlgmr.msra.gmra.mxu1 %vm1023_vm1, %v2152_v1  ;;  %v1279_v9 = vpop.f32.mrf.mxu2 }
 0x11f   : > { %v1297_v14 = vadd.f32 %v1279_v9, %v1210_v19  ;;  %v2154_v19 = vmax.f32 %v3934_v56, 0.0 }
 0x121   : > { %v3898_v22 = vpop.f32.mrf.mxu3  ;;  %v1317_v15 = vadd.f32 %v3565_v59, %v1297_v14  ;;  %v3926_v59 = vadd.f32 %v3861_v28, %v2125_v10  ;;  %v3961_v10 = vadd.f32 %v3861_v28, %v2119_v58 }
 0x122   : > { %v1545_v8 = vpop.f32.mrf.mxu0 }
 0x123   : > { %v1546_v31 = vadd.f32 %v1545_v8, %v3569_v0  ;;  %v1618_v6 = vpop.f32.mrf.mxu1  ;;  %1333 = vst.msk [vmem:[%s3577_s29 + $0x78] sm:$0xff] %vm1023_vm1, %v1317_v15  ;;  %2306 = vmatmul.f32.vlgmr.msra.gmra.mxu2 %v3072_v17  ;;  %v2161_v57 = vmax.f32 %v3926_v59, 0.0  ;;  %v2107_v8 = vld [vmem:[%s3834_s3 + $0x58] sm:$0xff]  ;;  %v2100_v15 = vld [vmem:[%s3834_s3 + $0x20] sm:$0xff] }
 0x124   : > { %v2120_v45 = vmul.f32 %v3844_v43, %v2100_v15 }
 0x125   : > { %v1663_v49 = vadd.f32 %v1615_v13, %v1546_v31  ;;  %2982 = vmatmul.msk.f32.vlgmr.msra.gmra.mxu0 %vm1023_vm1, %v3669_v33  ;;  %v2106_v33 = vld [vmem:[%s3834_s3 + $0x50] sm:$0xff] }
 0x126   : > { %3021 = vmatmul.msk.f32.vlgmr.msra.gmra.mxu3 %vm1023_vm1, %v2160_v51  ;;  %2995 = vmatmul.msk.f32.gmra.mxu1 %vm1023_vm1, %v2153_v24  ;;  %v1858_v7 = vpop.f32.mrf.mxu2  ;;  %v2126_v18 = vmul.f32 %v3844_v43, %v2106_v33  ;;  %v3988_v58 = vadd.f32 %v3861_v28, %v2120_v45 }
 0x127   : > { %v1683_v0 = vadd.f32 %v3907_v36, %v1663_v49 }
 0x128   : > { %v3953_v14 = vadd.f32 %v3861_v28, %v2126_v18 }
 0x129   : > { %1699 = vst.msk [vmem:[%s3920_s6] sm:$0xff] %vm1023_vm1, %v1683_v0  ;;  %v1926_v34 = vpop.f32.mrf.mxu3  ;;  %v2127_v0 = vmul.f32 %v3844_v43, %v2107_v8 }
 0x12a   : > { %v3939_v46 = vadd.f32 %v1926_v34, %v1858_v7  ;;  %v1548_v48 = vpop.f32.mrf.mxu0  ;;  %v2162_v49 = vmax.f32 %v3953_v14, 0.0  ;;  %v4497_v7 = vmax.f32 %v3961_v10, 0.0 }
 0x12b   : > { %v1549_v13 = vadd.f32 %v1548_v48, %v3593_v21  ;;  %v1621_v9 = vpop.f32.mrf.mxu1  ;;  %2309 = vmatmul.f32.gmra.mxu2 %v3072_v17  ;;  %v3980_v18 = vadd.f32 %v3861_v28, %v2127_v0 }
 0x12d   : > { %v1664_v62 = vadd.f32 %v1618_v6, %v1549_v13  ;;  %2983 = vmatmul.msk.f32.gmra.mxu0 %vm1023_vm1, %v3689_v42  ;;  %v2108_v13 = vld [vmem:[%s3834_s3 + $0x60] sm:$0xff]  ;;  %v4498_v15 = vmax.f32 %v3980_v18, 0.0 }
 0x12e   : > { %3022 = vmatmul.msk.f32.gmra.mxu3 %vm1023_vm1, %v2161_v57  ;;  %2996 = vmatmul.msk.f32.gmra.mxu1 %vm1023_vm1, %v2154_v19  ;;  %v1861_v42 = vpop.f32.mrf.mxu2 }
 0x12f   : > { %v1684_v21 = vadd.f32 %v3907_v36, %v1664_v62 }
 0x131   : > { %1700 = vst.msk [vmem:[%s3920_s6 + $0x8] sm:$0xff] %vm1023_vm1, %v1684_v21  ;;  %v1929_v31 = vpop.f32.mrf.mxu3  ;;  %v2111_v21 = vld [vmem:[%s3834_s3 + $0x78] sm:$0xff] }
 0x132   : > { %v3966_v26 = vadd.f32 %v1929_v31, %v1861_v42  ;;  %v1551_v6 = vpop.f32.mrf.mxu0  ;;  %v2128_v31 = vmul.f32 %v3844_v43, %v2108_v13 }
 0x133   : > { %v1552_v33 = vadd.f32 %v1551_v6, %v3611_v41  ;;  %v1624_v34 = vpop.f32.mrf.mxu1  ;;  %2312 = vmatmul.f32.gmra.mxu2 %v3072_v17  ;;  %v2131_v6 = vmul.f32 %v3844_v43, %v2111_v21 }
 0x135   : > { %v1665_v48 = vadd.f32 %v1621_v9, %v1552_v33  ;;  %2984 = vmatmul.msk.f32.gmra.mxu0 %vm1023_vm1, %v3710_v55  ;;  %v2101_v9 = vld [vmem:[%s3834_s3 + $0x28] sm:$0xff]  ;;  %v4496_v33 = vmax.f32 %v3988_v58, 0.0 }
 0x136   : > { %3023 = vmatmul.msk.f32.gmra.mxu3 %vm1023_vm1, %v2162_v49  ;;  %2997 = vmatmul.msk.f32.gmra.mxu1 %vm1023_vm1, %v4497_v7  ;;  %v1864_v55 = vpop.f32.mrf.mxu2  ;;  %v2121_v45 = vmul.f32 %v3844_v43, %v2101_v9  ;;  %v2109_v9 = vld [vmem:[%s3834_s3 + $0x68] sm:$0xff] }
 0x137   : > { %v1685_v41 = vadd.f32 %v3907_v36, %v1665_v48 }
 0x139   : > { %1701 = vst.msk [vmem:[%s3920_s6 + $0x10] sm:$0xff] %vm1023_vm1, %v1685_v41  ;;  %v1932_v62 = vpop.f32.mrf.mxu3  ;;  %v4003_v41 = vadd.f32 %v3861_v28, %v2131_v6 }
 0x13a   : > { %v3994_v8 = vadd.f32 %v1932_v62, %v1864_v55  ;;  %v1554_v42 = vpop.f32.mrf.mxu0  ;;  %v2102_v62 = vld [vmem:[%s3834_s3 + $0x30] sm:$0xff] }
 0x13b   : > { %v1555_v0 = vadd.f32 %v1554_v42, %v3629_v2  ;;  %v1627_v48 = vpop.f32.mrf.mxu1  ;;  %2315 = vmatmul.f32.gmra.mxu2 %v3072_v17  ;;  %v4012_v2 = vadd.f32 %v3861_v28, %v2128_v31 }
 0x13d   : > { %v1666_v55 = vadd.f32 %v1624_v34, %v1555_v0  ;;  %2985 = vmatmul.msk.f32.gmra.mxu0 %vm1023_vm1, %v3730_v63  ;;  %v4020_v34 = vadd.f32 %v3861_v28, %v2121_v45  ;;  %v4500_v6 = vmax.f32 %v4012_v2, 0.0  ;;  %v2129_v0 = vmul.f32 %v3844_v43, %v2109_v9  ;;  %v2103_v9 = vld [vmem:[%s3834_s3 + $0x38] sm:$0xff] }
 0x13e   : > { %3024 = vmatmul.msk.f32.gmra.mxu3 %vm1023_vm1, %v4498_v15  ;;  %2998 = vmatmul.msk.f32.gmra.mxu1 %vm1023_vm1, %v4496_v33  ;;  %v1867_v63 = vpop.f32.mrf.mxu2  ;;  %v2122_v33 = vmul.f32 %v3844_v43, %v2102_v62 }
 0x13f   : > { %v1686_v13 = vadd.f32 %v3907_v36, %v1666_v55  ;;  %v4499_v45 = vmax.f32 %v4020_v34, 0.0 }
 0x140   : > { %v4048_v23 = vadd.f32 %v3861_v28, %v2122_v33  ;;  %v2123_v33 = vmul.f32 %v3844_v43, %v2103_v9 }
 0x141   : > { %1702 = vst.msk [vmem:[%s3920_s6 + $0x18] sm:$0xff] %vm1023_vm1, %v1686_v13  ;;  %v1935_v21 = vpop.f32.mrf.mxu3  ;;  %v4040_v13 = vadd.f32 %v3861_v28, %v2129_v0 }
 0x142   : > { %v4025_v42 = vadd.f32 %v1935_v21, %v1867_v63  ;;  %v1557_v31 = vpop.f32.mrf.mxu0 }
 0x143   : > { %v1558_v55 = vadd.f32 %v1557_v31, %v3649_v4  ;;  %v1630_v7 = vpop.f32.mrf.mxu1  ;;  %2318 = vmatmul.f32.gmra.mxu2 %v3072_v17  ;;  %v2165_v31 = vmax.f32 %v4040_v13, 0.0 }
 0x145   : > { %v1667_v15 = vadd.f32 %v1627_v48, %v1558_v55  ;;  %2986 = vmatmul.msk.f32.gmra.mxu0 %vm1023_vm1, %v1781_v11  ;;  %v2110_v48 = vld [vmem:[%s3834_s3 + $0x70] sm:$0xff]  ;;  %v2158_v55 = vmax.f32 %v4048_v23, 0.0 }
 0x146   : > { %3025 = vmatmul.msk.f32.gmra.mxu3 %vm1023_vm1, %v4500_v6  ;;  %2999 = vmatmul.msk.f32.gmra.mxu1 %vm1023_vm1, %v4499_v45  ;;  %v1870_v11 = vpop.f32.mrf.mxu2 }
 0x147   : > { %v1687_v4 = vadd.f32 %v3907_v36, %v1667_v15  ;;  %v2130_v15 = vmul.f32 %v3844_v43, %v2110_v48  ;;  %v4075_v43 = vadd.f32 %v3861_v28, %v2123_v33 }
 0x149   : > { %1703 = vst.msk [vmem:[%s3920_s6 + $0x20] sm:$0xff] %vm1023_vm1, %v1687_v4  ;;  %v1938_v63 = vpop.f32.mrf.mxu3  ;;  %v4068_v4 = vadd.f32 %v3861_v28, %v2130_v15  ;;  %v2167_v15 = vmax.f32 %v4003_v41, 0.0 }
 0x14a   : > { %v4053_v62 = vadd.f32 %v1938_v63, %v1870_v11  ;;  %v1560_v21 = vpop.f32.mrf.mxu0 }
 0x14b   : > { %v1561_v0 = vadd.f32 %v1560_v21, %v3667_v54  ;;  %v1633_v45 = vpop.f32.mrf.mxu1  ;;  %2321 = vmatmul.f32.gmra.mxu2 %v3072_v17  ;;  %v2166_v11 = vmax.f32 %v4068_v4, 0.0 }
 0x14d   : > { %v1668_v6 = vadd.f32 %v1630_v7, %v1561_v0  ;;  %2987 = vmatmul.msk.f32.gmra.mxu0 %vm1023_vm1, %v1782_v30 }
 0x14e   : > { %3026 = vmatmul.msk.f32.gmra.mxu3 %vm1023_vm1, %v2165_v31  ;;  %3000 = vmatmul.msk.f32.gmra.mxu1 %vm1023_vm1, %v2158_v55  ;;  %v1873_v32 = vpop.f32.mrf.mxu2 }
 0x14f   : > { %v1688_v54 = vadd.f32 %v3907_v36, %v1668_v6  ;;  %v2159_v6 = vmax.f32 %v4075_v43, 0.0 }
 0x151   : > { %1704 = vst.msk [vmem:[%s3920_s6 + $0x28] sm:$0xff] %vm1023_vm1, %v1688_v54  ;;  %v1941_v30 = vpop.f32.mrf.mxu3 }
 0x152   : > { %v4079_v7 = vadd.f32 %v1941_v30, %v1873_v32  ;;  %v1563_v48 = vpop.f32.mrf.mxu0 }
 0x153   : > { %v1564_v9 = vadd.f32 %v1563_v48, %v3687_v3  ;;  %v1636_v63 = vpop.f32.mrf.mxu1  ;;  %2324 = vmatmul.f32.gmra.mxu2 %v3072_v17 }
 0x155   : > { %v1669_v21 = vadd.f32 %v1633_v45, %v1564_v9  ;;  %2988 = vmatmul.msk.f32.gmra.mxu0 %vm1023_vm1, %v1783_v29 }
 0x156   : > { %3027 = vmatmul.msk.f32.gmra.mxu3 %vm1023_vm1, %v2166_v11  ;;  %3001 = vmatmul.msk.f32.gmra.mxu1 %vm1023_vm1, %v2159_v6  ;;  %v1876_v3 = vpop.f32.mrf.mxu2 }
 0x157   : > { %v1689_v28 = vadd.f32 %v3907_v36, %v1669_v21 }
 0x159   : > { %1705 = vst.msk [vmem:[%s3920_s6 + $0x30] sm:$0xff] %vm1023_vm1, %v1689_v28  ;;  %v1944_v45 = vpop.f32.mrf.mxu3 }
 0x15a   : > { %v4097_v5 = vadd.f32 %v1944_v45, %v1876_v3  ;;  %v1566_v29 = vpop.f32.mrf.mxu0 }
 0x15b   : > { %v1567_v0 = vadd.f32 %v1566_v29, %v3708_v50  ;;  %v1639_v33 = vpop.f32.mrf.mxu1  ;;  %2327 = vmatmul.f32.gmra.mxu2 %v3072_v17 }
 0x15d   : > { %v1670_v54 = vadd.f32 %v1636_v63, %v1567_v0  ;;  %2989 = vmatmul.msk.f32.gmra.mxu0 %vm1023_vm1, %v1784_v40 }
 0x15e   : > { %3028 = vmatmul.msk.f32.gmra.mxu3 %vm1023_vm1, %v2167_v15  ;;  %3002 = vmatmul.msk.f32.gmra.mxu1 %vm1023_vm1, %v2160_v51  ;;  %v1879_v50 = vpop.f32.mrf.mxu2 }
 0x15f   : > { %v1690_v32 = vadd.f32 %v3907_v36, %v1670_v54  ;;  %v4525_v54 = vmax.f32 %v4012_v2, 0.0 }
 0x161   : > { %1706 = vst.msk [vmem:[%s3920_s6 + $0x38] sm:$0xff] %vm1023_vm1, %v1690_v32  ;;  %v1947_v30 = vpop.f32.mrf.mxu3 }
 0x162   : > { %v4114_v25 = vadd.f32 %v1947_v30, %v1879_v50  ;;  %v1569_v40 = vpop.f32.mrf.mxu0 }
 0x163   : > { %v1570_v48 = vadd.f32 %v1569_v40, %v3728_v39  ;;  %v1642_v9 = vpop.f32.mrf.mxu1  ;;  %3011 = vmatmul.msk.f32.gmra.mxu2 %vm1023_vm1, %v2152_v1 }
 0x165   : > { %v1671_v63 = vadd.f32 %v1639_v33, %v1570_v48  ;;  %2990 = vmatmul.msk.f32.gmra.mxu0 %vm1023_vm1, %v1785_v47  ;;  %v4524_v33 = vmax.f32 %v3961_v10, 0.0 }
 0x166   : > { %2400 = vmatmul.f32.gmra.mxu3 %v3072_v17  ;;  %3003 = vmatmul.msk.f32.gmra.mxu1 %vm1023_vm1, %v2161_v57  ;;  %v1882_v39 = vpop.f32.mrf.mxu2 }
 0x167   : > { %v1691_v52 = vadd.f32 %v3907_v36, %v1671_v63 }
 0x169   : > { %1707 = vst.msk [vmem:[%s3920_s6 + $0x40] sm:$0xff] %vm1023_vm1, %v1691_v52  ;;  %v1950_v51 = vpop.f32.mrf.mxu3 }
 0x16a   : > { %v4130_v27 = vadd.f32 %v1950_v51, %v1882_v39  ;;  %v1572_v47 = vpop.f32.mrf.mxu0 }
 0x16b   : > { %v1573_v60 = vadd.f32 %v1572_v47, %v3750_v12  ;;  %v1645_v21 = vpop.f32.mrf.mxu1  ;;  %3012 = vmatmul.msk.f32.gmra.mxu2 %vm1023_vm1, %v2153_v24 }
 0x16d   : > { %v1672_v1 = vadd.f32 %v1642_v9, %v1573_v60  ;;  %2991 = vmatmul.msk.f32.gmra.mxu0 %vm1023_vm1, %v1786_v35  ;;  %v4526_v9 = vmax.f32 %v3988_v58, 0.0  ;;  %v4527_v60 = vmax.f32 %v4020_v34, 0.0 }
 0x16e   : > { %2403 = vmatmul.f32.gmra.mxu3 %v3072_v17  ;;  %3004 = vmatmul.msk.f32.gmra.mxu1 %vm1023_vm1, %v2162_v49  ;;  %v1885_v12 = vpop.f32.mrf.mxu2  ;;  %v4523_v49 = vmax.f32 %v3980_v18, 0.0 }
 0x16f   : > { %v1692_v59 = vadd.f32 %v3907_v36, %v1672_v1 }
 0x171   : > { %1708 = vst.msk [vmem:[%s3920_s6 + $0x48] sm:$0xff] %vm1023_vm1, %v1692_v59  ;;  %v1953_v57 = vpop.f32.mrf.mxu3 }
 0x172   : > { %v4146_v38 = vadd.f32 %v1953_v57, %v1885_v12  ;;  %v1575_v35 = vpop.f32.mrf.mxu0 }
 0x173   : > { %v1576_v61 = vadd.f32 %v1575_v35, %v3772_v20  ;;  %v1648_v28 = vpop.f32.mrf.mxu1  ;;  %3013 = vmatmul.msk.f32.gmra.mxu2 %vm1023_vm1, %v2154_v19 }
 0x175   : > { %v1673_v24 = vadd.f32 %v1645_v21, %v1576_v61  ;;  %2025 = vmatmul.f32.gmra.mxu0 %v3072_v17 }
 0x176   : > { %2406 = vmatmul.f32.gmra.mxu3 %v3072_v17  ;;  %3005 = vmatmul.msk.f32.gmra.mxu1 %vm1023_vm1, %v4523_v49  ;;  %v1888_v3 = vpop.f32.mrf.mxu2 }
 0x177   : > { %v1693_v14 = vadd.f32 %v3907_v36, %v1673_v24 }
 0x179   : > { %1709 = vst.msk [vmem:[%s3920_s6 + $0x50] sm:$0xff] %vm1023_vm1, %v1693_v14  ;;  %v1956_v20 = vpop.f32.mrf.mxu3 }
 0x17a   : > { %v4160_v45 = vadd.f32 %v1956_v20, %v1888_v3  ;;  %v1578_v29 = vpop.f32.mrf.mxu0  ;;  %v4247_v20 = vld [vmem:[%s4490_s22] ss:$0 sm:$0xff] }
 0x17b   : > { %v1579_v56 = vadd.f32 %v1578_v29, %v3792_v37  ;;  %v1651_v0 = vpop.f32.mrf.mxu1  ;;  %3014 = vmatmul.msk.f32.gmra.mxu2 %vm1023_vm1, %v4524_v33 }
 0x17d   : > { %v1674_v19 = vadd.f32 %v1648_v28, %v1579_v56  ;;  %2028 = vmatmul.f32.gmra.mxu0 %v3072_v17 }
 0x17e   : > { %2409 = vmatmul.f32.gmra.mxu3 %v3072_v17  ;;  %3006 = vmatmul.msk.f32.gmra.mxu1 %vm1023_vm1, %v4525_v54  ;;  %v1891_v32 = vpop.f32.mrf.mxu2 }
 0x17f   : > { %v1694_v18 = vadd.f32 %v3907_v36, %v1674_v19 }
 0x181   : > { %1710 = vst.msk [vmem:[%s3920_s6 + $0x58] sm:$0xff] %vm1023_vm1, %v1694_v18  ;;  %v1959_v37 = vpop.f32.mrf.mxu3 }
 0x182   : > { %v4174_v50 = vadd.f32 %v1959_v37, %v1891_v32  ;;  %v1581_v30 = vpop.f32.mrf.mxu0 }
 0x183   : > { %v1582_v10 = vadd.f32 %v1581_v30, %v3811_v53  ;;  %v1654_v40 = vpop.f32.mrf.mxu1  ;;  %3015 = vmatmul.msk.f32.gmra.mxu2 %vm1023_vm1, %v4526_v9 }
 0x185   : > { %v1675_v48 = vadd.f32 %v1651_v0, %v1582_v10  ;;  %2031 = vmatmul.f32.gmra.mxu0 %v3072_v17 }
 0x186   : > { %2412 = vmatmul.f32.gmra.mxu3 %v3072_v17  ;;  %3007 = vmatmul.msk.f32.gmra.mxu1 %vm1023_vm1, %v2165_v31  ;;  %v1894_v63 = vpop.f32.mrf.mxu2 }
 0x187   : > { %v1695_v2 = vadd.f32 %v3907_v36, %v1675_v48 }
 0x189   : > { %1711 = vst.msk [vmem:[%s3920_s6 + $0x60] sm:$0xff] %vm1023_vm1, %v1695_v2  ;;  %v1962_v53 = vpop.f32.mrf.mxu3 }
 0x18a   : > { %v4188_v52 = vadd.f32 %v1962_v53, %v1894_v63  ;;  %v1584_v39 = vpop.f32.mrf.mxu0 }
 0x18b   : > { %v1585_v58 = vadd.f32 %v1584_v39, %v3837_v16  ;;  %v1657_v51 = vpop.f32.mrf.mxu1  ;;  %3016 = vmatmul.msk.f32.gmra.mxu2 %vm1023_vm1, %v4527_v60 }
 0x18d   : > { %v1676_v47 = vadd.f32 %v1654_v40, %v1585_v58  ;;  %2034 = vmatmul.f32.gmra.mxu0 %v3072_v17 }
 0x18e   : > { %2415 = vmatmul.f32.gmra.mxu3 %v3072_v17  ;;  %3008 = vmatmul.msk.f32.gmra.mxu1 %vm1023_vm1, %v2166_v11  ;;  %v1897_v31 = vpop.f32.mrf.mxu2 }
 0x18f   : > { %v1696_v13 = vadd.f32 %v3907_v36, %v1676_v47 }
 0x191   : > { %1712 = vst.msk [vmem:[%s3920_s6 + $0x68] sm:$0xff] %vm1023_vm1, %v1696_v13  ;;  %v1965_v16 = vpop.f32.mrf.mxu3 }
 0x192   : > { %v4202_v21 = vadd.f32 %v1965_v16, %v1897_v31  ;;  %v1587_v1 = vpop.f32.mrf.mxu0 }
 0x193   : > { %v1588_v34 = vadd.f32 %v1587_v1, %v3871_v44  ;;  %v1660_v59 = vpop.f32.mrf.mxu1  ;;  %3017 = vmatmul.msk.f32.gmra.mxu2 %vm1023_vm1, %v2158_v55 }
 0x195   : > { %v1677_v12 = vadd.f32 %v1657_v51, %v1588_v34  ;;  %2037 = vmatmul.f32.gmra.mxu0 %v3072_v17 }
 0x196   : > { %2418 = vmatmul.f32.gmra.mxu3 %v3072_v17  ;;  %3009 = vmatmul.msk.f32.gmra.mxu1 %vm1023_vm1, %v2167_v15  ;;  %v1900_v11 = vpop.f32.mrf.mxu2 }
 0x197   : > { %v1697_v4 = vadd.f32 %v3907_v36, %v1677_v12 }
 0x199   : > { %1713 = vst.msk [vmem:[%s3920_s6 + $0x70] sm:$0xff] %vm1023_vm1, %v1697_v4  ;;  %v1968_v44 = vpop.f32.mrf.mxu3 }
 0x19a   : > { %v4216_v57 = vadd.f32 %v1968_v44, %v1900_v11  ;;  %v1590_v35 = vpop.f32.mrf.mxu0 }
 0x19b   : > { %v1591_v23 = vadd.f32 %v1590_v35, %v3898_v22  ;;  %v2239_v55 = vpop.f32.mrf.mxu1  ;;  %3018 = vmatmul.msk.f32.gmra.mxu2 %vm1023_vm1, %v2159_v6  ;;  %v4230_v22 = vld [vmem:[%s4489_s21] ss:$0 sm:$0xff] }
 0x19d   : > { %v1678_v61 = vadd.f32 %v1660_v59, %v1591_v23  ;;  %2040 = vmatmul.f32.gmra.mxu0 %v3072_v17 }
 0x19e   : > { %2421 = vmatmul.f32.gmra.mxu3 %v3072_v17  ;;  %v1903_v15 = vpop.f32.mrf.mxu2 }
 0x19f   : > { %v1698_v41 = vadd.f32 %v3907_v36, %v1678_v61 }
 0x1a1   : > { %1714 = vst.msk [vmem:[%s3920_s6 + $0x78] sm:$0xff] %vm1023_vm1, %v1698_v41  ;;  %v1971_v28 = vpop.f32.mrf.mxu3  ;;  %s4528_s6 = sld [smem:[#allocation6_spill]] }
 0x1a2   : > { %v4232_v24 = vadd.f32 %v1971_v28, %v1903_v15  ;;  %v1996_v14 = vpop.f32.mrf.mxu0 }
 0x1a3   : > { %v2044_v43 = vadd.f32 %v1996_v14, %v3939_v46  ;;  %v2242_v17 = vpop.f32.mrf.mxu1 }
 0x1a5   : > { %v2064_v36 = vadd.f32 %v4230_v22, %v2044_v43 }
 0x1a6   : > { %v2307_v6 = vpop.f32.mrf.mxu2 }
 0x1a7   : > { %2080 = vst.msk [vmem:[%s4239_s11] sm:$0xff] %vm1023_vm1, %v2064_v36  ;;  %v2308_v49 = vadd.f32 %v2307_v6, %v2239_v55  ;;  %s4330_s29 = scalar_lea.vmem %s4528_s6, %s3248_s9 }
 0x1a9   : > { %v2377_v3 = vpop.f32.mrf.mxu3 }
 0x1aa   : > { %v1999_v46 = vpop.f32.mrf.mxu0  ;;  %v2425_v56 = vadd.f32 %v2377_v3, %v2308_v49 }
 0x1ab   : > { %v2045_v29 = vadd.f32 %v1999_v46, %v3966_v26  ;;  %v2245_v0 = vpop.f32.mrf.mxu1 }
 0x1ac   : > { %v2445_v33 = vadd.f32 %v4247_v20, %v2425_v56 }
 0x1ad   : > { %v2065_v19 = vadd.f32 %v4230_v22, %v2045_v29 }
 0x1ae   : > { %2461 = vst.msk [vmem:[%s4255_s0] sm:$0xff] %vm1023_vm1, %v2445_v33  ;;  %v2310_v18 = vpop.f32.mrf.mxu2 }
 0x1af   : > { %2081 = vst.msk [vmem:[%s4239_s11 + $0x8] sm:$0xff] %vm1023_vm1, %v2065_v19  ;;  %v2311_v26 = vadd.f32 %v2310_v18, %v2242_v17 }
 0x1b1   : > { %v2380_v54 = vpop.f32.mrf.mxu3 }
 0x1b2   : > { %v2002_v32 = vpop.f32.mrf.mxu0  ;;  %v2426_v30 = vadd.f32 %v2380_v54, %v2311_v26 }
 0x1b3   : > { %v2046_v37 = vadd.f32 %v2002_v32, %v3994_v8  ;;  %v2248_v10 = vpop.f32.mrf.mxu1 }
 0x1b4   : > { %v2446_v48 = vadd.f32 %v4247_v20, %v2426_v30 }
 0x1b5   : > { %v2066_v40 = vadd.f32 %v4230_v22, %v2046_v37 }
 0x1b6   : > { %2462 = vst.msk [vmem:[%s4255_s0 + $0x8] sm:$0xff] %vm1023_vm1, %v2446_v48  ;;  %v2313_v9 = vpop.f32.mrf.mxu2 }
 0x1b7   : > { %2082 = vst.msk [vmem:[%s4239_s11 + $0x10] sm:$0xff] %vm1023_vm1, %v2066_v40  ;;  %v2314_v2 = vadd.f32 %v2313_v9, %v2245_v0 }
 0x1b9   : > { %v2383_v63 = vpop.f32.mrf.mxu3 }
 0x1ba   : > { %v2005_v53 = vpop.f32.mrf.mxu0  ;;  %v2427_v8 = vadd.f32 %v2383_v63, %v2314_v2 }
 0x1bb   : > { %v2047_v39 = vadd.f32 %v2005_v53, %v4025_v42  ;;  %v2251_v58 = vpop.f32.mrf.mxu1 }
 0x1bc   : > { %v2447_v47 = vadd.f32 %v4247_v20, %v2427_v8 }
 0x1bd   : > { %v2067_v51 = vadd.f32 %v4230_v22, %v2047_v39 }
 0x1be   : > { %2463 = vst.msk [vmem:[%s4255_s0 + $0x10] sm:$0xff] %vm1023_vm1, %v2447_v47  ;;  %v2316_v60 = vpop.f32.mrf.mxu2 }
 0x1bf   : > { %2083 = vst.msk [vmem:[%s4239_s11 + $0x18] sm:$0xff] %vm1023_vm1, %v2067_v51  ;;  %v2317_v13 = vadd.f32 %v2316_v60, %v2248_v10 }
 0x1c1   : > { %v2386_v31 = vpop.f32.mrf.mxu3 }
 0x1c2   : > { %v2008_v16 = vpop.f32.mrf.mxu0  ;;  %v2428_v42 = vadd.f32 %v2386_v31, %v2317_v13 }
 0x1c3   : > { %v2048_v1 = vadd.f32 %v2008_v16, %v4053_v62  ;;  %v2254_v34 = vpop.f32.mrf.mxu1 }
 0x1c4   : > { %v2448_v12 = vadd.f32 %v4247_v20, %v2428_v42 }
 0x1c5   : > { %v2068_v59 = vadd.f32 %v4230_v22, %v2048_v1 }
 0x1c6   : > { %2464 = vst.msk [vmem:[%s4255_s0 + $0x18] sm:$0xff] %vm1023_vm1, %v2448_v12  ;;  %v2319_v4 = vpop.f32.mrf.mxu2 }
 0x1c7   : > { %2084 = vst.msk [vmem:[%s4239_s11 + $0x20] sm:$0xff] %vm1023_vm1, %v2068_v59  ;;  %v2320_v11 = vadd.f32 %v2319_v4, %v2251_v58 }
 0x1c9   : > { %v2389_v44 = vpop.f32.mrf.mxu3 }
 0x1ca   : > { %v2011_v35 = vpop.f32.mrf.mxu0  ;;  %v2429_v62 = vadd.f32 %v2389_v44, %v2320_v11 }
 0x1cb   : > { %v2049_v23 = vadd.f32 %v2011_v35, %v4079_v7  ;;  %v2257_v55 = vpop.f32.mrf.mxu1 }
 0x1cc   : > { %v2449_v41 = vadd.f32 %v4247_v20, %v2429_v62  ;;  %v4337_v62 = vld [vmem:[%s4529_s30] ss:$0 sm:$0xff] }
 0x1cd   : > { %v2069_v61 = vadd.f32 %v4230_v22, %v2049_v23 }
 0x1ce   : > { %2465 = vst.msk [vmem:[%s4255_s0 + $0x20] sm:$0xff] %vm1023_vm1, %v2449_v41  ;;  %v2322_v15 = vpop.f32.mrf.mxu2 }
 0x1cf   : > { %2085 = vst.msk [vmem:[%s4239_s11 + $0x28] sm:$0xff] %vm1023_vm1, %v2069_v61  ;;  %v2323_v28 = vadd.f32 %v2322_v15, %v2254_v34  ;;  %v2479_v61 = vld [vmem:[%s4330_s29 + $0x10] sm:$0xff] }
 0x1d1   : > { %v2392_v14 = vpop.f32.mrf.mxu3 }
 0x1d2   : > { %v2014_v43 = vpop.f32.mrf.mxu0  ;;  %v2430_v7 = vadd.f32 %v2392_v14, %v2323_v28 }
 0x1d3   : > { %v2050_v17 = vadd.f32 %v2014_v43, %v4097_v5  ;;  %v2260_v36 = vpop.f32.mrf.mxu1 }
 0x1d4   : > { %v2450_v49 = vadd.f32 %v4247_v20, %v2430_v7 }
 0x1d5   : > { %v2070_v6 = vadd.f32 %v4230_v22, %v2050_v17  ;;  %v2480_v17 = vld [vmem:[%s4330_s29 + $0x18] sm:$0xff] }
 0x1d6   : > { %2466 = vst.msk [vmem:[%s4255_s0 + $0x28] sm:$0xff] %vm1023_vm1, %v2450_v49  ;;  %v2325_v3 = vpop.f32.mrf.mxu2  ;;  %v4353_v49 = vld [vmem:[%s4482_s14] ss:$0 sm:$0xff] }
 0x1d7   : > { %2086 = vst.msk [vmem:[%s4239_s11 + $0x30] sm:$0xff] %vm1023_vm1, %v2070_v6  ;;  %v2326_v46 = vadd.f32 %v2325_v3, %v2257_v55  ;;  %v2478_v55 = vld [vmem:[%s4330_s29 + $0x8] sm:$0xff]  ;;  %v2499_v6 = vmul.f32 %v4337_v62, %v2479_v61 }
 0x1d9   : > { %v2395_v29 = vpop.f32.mrf.mxu3 }
 0x1da   : > { %v2017_v56 = vpop.f32.mrf.mxu0  ;;  %v2431_v5 = vadd.f32 %v2395_v29, %v2326_v46  ;;  %v2481_v29 = vld [vmem:[%s4330_s29 + $0x20] sm:$0xff] }
 0x1db   : > { %v2051_v0 = vadd.f32 %v2017_v56, %v4114_v25  ;;  %v2263_v19 = vpop.f32.mrf.mxu1  ;;  %v2482_v56 = vld [vmem:[%s4330_s29 + $0x28] sm:$0xff] }
 0x1dc   : > { %v2451_v18 = vadd.f32 %v4247_v20, %v2431_v5 }
 0x1dd   : > { %v2071_v33 = vadd.f32 %v4230_v22, %v2051_v0 }
 0x1de   : > { %2467 = vst.msk [vmem:[%s4255_s0 + $0x30] sm:$0xff] %vm1023_vm1, %v2451_v18  ;;  %v2328_v26 = vpop.f32.mrf.mxu2  ;;  %v2500_v18 = vmul.f32 %v4337_v62, %v2480_v17 }
 0x1df   : > { %2087 = vst.msk [vmem:[%s4239_s11 + $0x38] sm:$0xff] %vm1023_vm1, %v2071_v33  ;;  %v2329_v54 = vadd.f32 %v2328_v26, %v2260_v36  ;;  %v2498_v36 = vmul.f32 %v4337_v62, %v2478_v55  ;;  %v2484_v33 = vld [vmem:[%s4330_s29 + $0x38] sm:$0xff]  ;;  %v2485_v26 = vld [vmem:[%s4330_s29 + $0x40] sm:$0xff] }
 0x1e1   : > { %v2398_v32 = vpop.f32.mrf.mxu3 }
 0x1e2   : > { %v2020_v37 = vpop.f32.mrf.mxu0  ;;  %v2432_v25 = vadd.f32 %v2398_v32, %v2329_v54  ;;  %v2501_v54 = vmul.f32 %v4337_v62, %v2481_v29  ;;  %v2518_v32 = vadd.f32 %v4353_v49, %v2498_v36 }
 0x1e3   : > { %v2052_v30 = vadd.f32 %v2020_v37, %v4130_v27  ;;  %v2266_v10 = vpop.f32.mrf.mxu1  ;;  %v2519_v37 = vadd.f32 %v4353_v49, %v2499_v6 }
 0x1e4   : > { %v2452_v48 = vadd.f32 %v4247_v20, %v2432_v25 }
 0x1e5   : > { %v2072_v40 = vadd.f32 %v4230_v22, %v2052_v30  ;;  %v2502_v30 = vmul.f32 %v4337_v62, %v2482_v56 }
 0x1e6   : > { %2468 = vst.msk [vmem:[%s4255_s0 + $0x38] sm:$0xff] %vm1023_vm1, %v2452_v48  ;;  %v2331_v9 = vpop.f32.mrf.mxu2  ;;  %v2504_v48 = vmul.f32 %v4337_v62, %v2484_v33 }
 0x1e7   : > { %2088 = vst.msk [vmem:[%s4239_s11 + $0x40] sm:$0xff] %vm1023_vm1, %v2072_v40  ;;  %v2332_v2 = vadd.f32 %v2331_v9, %v2263_v19  ;;  %v2483_v19 = vld [vmem:[%s4330_s29 + $0x30] sm:$0xff] }
 0x1e8   : > { %v2503_v40 = vmul.f32 %v4337_v62, %v2483_v19 }
 0x1e9   : > { %v2401_v63 = vpop.f32.mrf.mxu3 }
 0x1ea   : > { %v2023_v53 = vpop.f32.mrf.mxu0  ;;  %v2433_v27 = vadd.f32 %v2401_v63, %v2332_v2  ;;  %v2487_v63 = vld [vmem:[%s4330_s29 + $0x50] sm:$0xff] }
 0x1eb   : > { %v2053_v39 = vadd.f32 %v2023_v53, %v4146_v38  ;;  %v2269_v8 = vpop.f32.mrf.mxu1  ;;  %v2488_v53 = vld [vmem:[%s4330_s29 + $0x58] sm:$0xff] }
 0x1ec   : > { %v2453_v51 = vadd.f32 %v4247_v20, %v2433_v27  ;;  %v2520_v27 = vadd.f32 %v4353_v49, %v2500_v18 }
 0x1ed   : > { %v2073_v58 = vadd.f32 %v4230_v22, %v2053_v39  ;;  %v2505_v39 = vmul.f32 %v4337_v62, %v2485_v26 }
 0x1ee   : > { %2469 = vst.msk [vmem:[%s4255_s0 + $0x40] sm:$0xff] %vm1023_vm1, %v2453_v51  ;;  %v2334_v47 = vpop.f32.mrf.mxu2  ;;  %v2521_v51 = vadd.f32 %v4353_v49, %v2501_v54 }
 0x1ef   : > { %2089 = vst.msk [vmem:[%s4239_s11 + $0x48] sm:$0xff] %vm1023_vm1, %v2073_v58  ;;  %v2335_v60 = vadd.f32 %v2334_v47, %v2266_v10  ;;  %v2486_v10 = vld [vmem:[%s4330_s29 + $0x48] sm:$0xff] }
 0x1f0   : > { %v2537_v55 = vmax.f32 %v2521_v51, 0.0 }
 0x1f1   : > { %v2404_v13 = vpop.f32.mrf.mxu3 }
 0x1f2   : > { %v2026_v31 = vpop.f32.mrf.mxu0  ;;  %v2434_v38 = vadd.f32 %v2404_v13, %v2335_v60  ;;  %v2534_v60 = vmax.f32 %v2518_v32, 0.0  ;;  %v2535_v13 = vmax.f32 %v2519_v37, 0.0 }
 0x1f3   : > { %v2054_v16 = vadd.f32 %v2026_v31, %v4160_v45  ;;  %v2272_v34 = vpop.f32.mrf.mxu1 }
 0x1f4   : > { %v2454_v42 = vadd.f32 %v4247_v20, %v2434_v38  ;;  %v2506_v38 = vmul.f32 %v4337_v62, %v2486_v10  ;;  %v2553_v18 = vmax.f32 %v2535_v13, %v2537_v55 }
 0x1f5   : > { %v2074_v1 = vadd.f32 %v4230_v22, %v2054_v16 }
 0x1f6   : > { %2470 = vst.msk [vmem:[%s4255_s0 + $0x48] sm:$0xff] %vm1023_vm1, %v2454_v42  ;;  %v2337_v59 = vpop.f32.mrf.mxu2  ;;  %v2489_v42 = vld [vmem:[%s4330_s29 + $0x60] sm:$0xff]  ;;  %v2526_v6 = vadd.f32 %v4353_v49, %v2506_v38 }
 0x1f7   : > { %2090 = vst.msk [vmem:[%s4239_s11 + $0x50] sm:$0xff] %vm1023_vm1, %v2074_v1  ;;  %v2338_v12 = vadd.f32 %v2337_v59, %v2269_v8  ;;  %v2522_v1 = vadd.f32 %v4353_v49, %v2502_v30  ;;  %v2491_v59 = vld [vmem:[%s4330_s29 + $0x70] sm:$0xff] }
 0x1f9   : > { %v2407_v4 = vpop.f32.mrf.mxu3  ;;  %v2538_v17 = vmax.f32 %v2522_v1, 0.0 }
 0x1fa   : > { %v2029_v11 = vpop.f32.mrf.mxu0  ;;  %v2435_v35 = vadd.f32 %v2407_v4, %v2338_v12  ;;  %v2507_v12 = vmul.f32 %v4337_v62, %v2487_v63  ;;  %v2508_v4 = vmul.f32 %v4337_v62, %v2488_v53 }
 0x1fb   : > { %v2055_v44 = vadd.f32 %v2029_v11, %v4174_v50  ;;  %v2477_v50 = vld [vmem:[%s4330_s29] sm:$0xff]  ;;  %v2275_v15 = vpop.f32.mrf.mxu1  ;;  %v2523_v11 = vadd.f32 %v4353_v49, %v2503_v40 }
 0x1fc   : > { %v2455_v23 = vadd.f32 %v4247_v20, %v2435_v35  ;;  %v2497_v7 = vmul.f32 %v4337_v62, %v2477_v50  ;;  %v2536_v50 = vmax.f32 %v2520_v27, 0.0  ;;  %v2528_v37 = vadd.f32 %v4353_v49, %v2508_v4 }
 0x1fd   : > { %v2075_v45 = vadd.f32 %v4230_v22, %v2055_v44  ;;  %v2524_v44 = vadd.f32 %v4353_v49, %v2504_v48  ;;  %v2542_v48 = vmax.f32 %v2526_v6, 0.0 }
 0x1fe   : > { %2471 = vst.msk [vmem:[%s4255_s0 + $0x50] sm:$0xff] %vm1023_vm1, %v2455_v23  ;;  %v2340_v41 = vpop.f32.mrf.mxu2  ;;  %v2525_v23 = vadd.f32 %v4353_v49, %v2505_v39  ;;  %v2552_v19 = vmax.f32 %v2534_v60, %v2536_v50  ;;  %v2554_v30 = vmax.f32 %v2536_v50, %v2538_v17  ;;  %v2544_v51 = vmax.f32 %v2528_v37, 0.0 }
 0x1ff   : > { %2091 = vst.msk [vmem:[%s4239_s11 + $0x58] sm:$0xff] %vm1023_vm1, %v2075_v45  ;;  %v2341_v28 = vadd.f32 %v2340_v41, %v2272_v34  ;;  %v2490_v34 = vld [vmem:[%s4330_s29 + $0x68] sm:$0xff]  ;;  %v2492_v45 = vld [vmem:[%s4330_s29 + $0x78] sm:$0xff]  ;;  %v2550_v41 = vmax.f32 %v2534_v60, 0.0 }
 0x200   : > { %v2512_v36 = vmul.f32 %v4337_v62, %v2492_v45  ;;  %v2568_v53 = vmax.f32 %v2552_v19, %v2538_v17 }
 0x201   : > { %v2410_v14 = vpop.f32.mrf.mxu3 }
 0x202   : > { %v2032_v43 = vpop.f32.mrf.mxu0  ;;  %v2436_v46 = vadd.f32 %v2410_v14, %v2341_v28  ;;  %v2509_v28 = vmul.f32 %v4337_v62, %v2489_v42  ;;  %v2510_v14 = vmul.f32 %v4337_v62, %v2490_v34  ;;  %2584 = vst.msk [vmem:[%s4409_s10 + $0x18] sm:$0xff] %vm1023_vm1, %v2568_v53 }
 0x203   : > { %v2056_v3 = vadd.f32 %v2032_v43, %v4188_v52  ;;  %v2517_v52 = vadd.f32 %v4353_v49, %v2497_v7  ;;  %v2278_v58 = vpop.f32.mrf.mxu1  ;;  %v2511_v43 = vmul.f32 %v4337_v62, %v2491_v59  ;;  %v2566_v62 = vmax.f32 %v2550_v41, %v2536_v50 }
 0x204   : > { %v2456_v5 = vadd.f32 %v4247_v20, %v2436_v46  ;;  %v2539_v46 = vmax.f32 %v2523_v11, 0.0  ;;  %v2529_v10 = vadd.f32 %v4353_v49, %v2509_v28  ;;  %v2530_v40 = vadd.f32 %v4353_v49, %v2510_v14 }
 0x205   : > { %v2076_v0 = vadd.f32 %v4230_v22, %v2056_v3  ;;  %v2533_v47 = vmax.f32 %v2517_v52, 0.0  ;;  %v2527_v3 = vadd.f32 %v4353_v49, %v2507_v12  ;;  %2582 = vst.msk [vmem:[%s4409_s10 + $0x8] sm:$0xff] %vm1023_vm1, %v2566_v62  ;;  %v2531_v39 = vadd.f32 %v4353_v49, %v2511_v43 }
 0x206   : > { %2472 = vst.msk [vmem:[%s4255_s0 + $0x58] sm:$0xff] %vm1023_vm1, %v2456_v5  ;;  %v2343_v25 = vpop.f32.mrf.mxu2  ;;  %v2541_v5 = vmax.f32 %v2525_v23, 0.0  ;;  %v2546_v42 = vmax.f32 %v2530_v40, 0.0 }
 0x207   : > { %2092 = vst.msk [vmem:[%s4239_s11 + $0x60] sm:$0xff] %vm1023_vm1, %v2076_v0  ;;  %v2344_v9 = vadd.f32 %v2343_v25, %v2275_v15  ;;  %v2549_v61 = vmax.f32 %v2533_v47, 0.0  ;;  %v2551_v15 = vmax.f32 %v2533_v47, %v2535_v13  ;;  %v2540_v0 = vmax.f32 %v2524_v44, 0.0 }
 0x208   : > { %v2543_v27 = vmax.f32 %v2527_v3, 0.0  ;;  %v2547_v4 = vmax.f32 %v2531_v39, 0.0 }
 0x209   : > { %v2413_v2 = vpop.f32.mrf.mxu3  ;;  %v2565_v26 = vmax.f32 %v2549_v61, %v2535_v13  ;;  %v2567_v54 = vmax.f32 %v2551_v15, %v2537_v55  ;;  %v2556_v63 = vmax.f32 %v2538_v17, %v2540_v0  ;;  %v2570_v47 = vmax.f32 %v2554_v30, %v2540_v0 }
 0x20a   : > { %v2035_v8 = vpop.f32.mrf.mxu0  ;;  %v2437_v16 = vadd.f32 %v2413_v2, %v2344_v9  ;;  %v2555_v9 = vmax.f32 %v2537_v55, %v2539_v46  ;;  %v2532_v13 = vadd.f32 %v4353_v49, %v2512_v36  ;;  %v2558_v34 = vmax.f32 %v2540_v0, %v2542_v48 }
 0x20b   : > { %v2057_v31 = vadd.f32 %v2035_v8, %v4202_v21  ;;  %v2281_v25 = vpop.f32.mrf.mxu1  ;;  %2581 = vst.msk [vmem:[%s4409_s10] sm:$0xff] %vm1023_vm1, %v2565_v26  ;;  %v2557_v8 = vmax.f32 %v2539_v46, %v2541_v5  ;;  %v2572_v59 = vmax.f32 %v2556_v63, %v2542_v48  ;;  %v2559_v11 = vmax.f32 %v2541_v5, %v2543_v27 }
 0x20c   : > { %v2457_v35 = vadd.f32 %v4247_v20, %v2437_v16  ;;  %2583 = vst.msk [vmem:[%s4409_s10 + $0x10] sm:$0xff] %vm1023_vm1, %v2567_v54  ;;  %v2571_v16 = vmax.f32 %v2555_v9, %v2541_v5  ;;  %v2548_v45 = vmax.f32 %v2532_v13, 0.0  ;;  %v2562_v61 = vmax.f32 %v2544_v51, %v2546_v42 }
 0x20d   : > { %v2077_v21 = vadd.f32 %v4230_v22, %v2057_v31  ;;  %v2545_v31 = vmax.f32 %v2529_v10, 0.0  ;;  %v2573_v44 = vmax.f32 %v2557_v8, %v2543_v27  ;;  %2586 = vst.msk [vmem:[%s4409_s10 + $0x28] sm:$0xff] %vm1023_vm1, %v2570_v47  ;;  %v2574_v41 = vmax.f32 %v2558_v34, %v2544_v51 }
 0x20e   : > { %2473 = vst.msk [vmem:[%s4255_s0 + $0x60] sm:$0xff] %vm1023_vm1, %v2457_v35  ;;  %v2346_v7 = vpop.f32.mrf.mxu2  ;;  %v2560_v35 = vmax.f32 %v2542_v48, %v2544_v51  ;;  %v2564_v43 = vmax.f32 %v2546_v42, %v2548_v45  ;;  %v2578_v6 = vmax.f32 %v2562_v61, %v2548_v45 }
 0x20f   : > { %2093 = vst.msk [vmem:[%s4239_s11 + $0x68] sm:$0xff] %vm1023_vm1, %v2077_v21  ;;  %v2347_v29 = vadd.f32 %v2346_v7, %v2278_v58  ;;  %v2569_v58 = vmax.f32 %v2553_v18, %v2539_v46  ;;  %v2561_v23 = vmax.f32 %v2543_v27, %v2545_v31  ;;  %v2563_v15 = vmax.f32 %v2545_v31, %v2547_v4 }
 0x210   : > { %2587 = vst.msk [vmem:[%s4409_s10 + $0x30] sm:$0xff] %vm1023_vm1, %v2571_v16  ;;  %v2575_v28 = vmax.f32 %v2559_v11, %v2545_v31  ;;  %v2576_v14 = vmax.f32 %v2560_v35, %v2546_v42 }
 0x211   : > { %v2416_v56 = vpop.f32.mrf.mxu3  ;;  %2585 = vst.msk [vmem:[%s4409_s10 + $0x20] sm:$0xff] %vm1023_vm1, %v2569_v58  ;;  %v2577_v17 = vmax.f32 %v2561_v23, %v2547_v4  ;;  %v2579_v3 = vmax.f32 %v2563_v15, 0.0 }
 0x212   : > { %v2038_v33 = vpop.f32.mrf.mxu0  ;;  %v2438_v32 = vadd.f32 %v2416_v56, %v2347_v29  ;;  %2588 = vst.msk [vmem:[%s4409_s10 + $0x38] sm:$0xff] %vm1023_vm1, %v2572_v59  ;;  %v2580_v29 = vmax.f32 %v2564_v43, 0.0 }
 0x213   : > { %v2058_v52 = vadd.f32 %v2038_v33, %v4216_v57  ;;  %2589 = vst.msk [vmem:[%s4409_s10 + $0x40] sm:$0xff] %vm1023_vm1, %v2573_v44 }
 0x214   : > { %v2458_v57 = vadd.f32 %v4247_v20, %v2438_v32  ;;  %2590 = vst.msk [vmem:[%s4409_s10 + $0x48] sm:$0xff] %vm1023_vm1, %v2574_v41 }
 0x215   : > { %v2078_v2 = vadd.f32 %v4230_v22, %v2058_v52  ;;  %2591 = vst.msk [vmem:[%s4409_s10 + $0x50] sm:$0xff] %vm1023_vm1, %v2575_v28 }
 0x216   : > { %2474 = vst.msk [vmem:[%s4255_s0 + $0x68] sm:$0xff] %vm1023_vm1, %v2458_v57  ;;  %v2349_v60 = vpop.f32.mrf.mxu2 }
 0x217   : > { %2094 = vst.msk [vmem:[%s4239_s11 + $0x70] sm:$0xff] %vm1023_vm1, %v2078_v2  ;;  %v2350_v38 = vadd.f32 %v2349_v60, %v2281_v25 }
 0x218   : > { %2592 = vst.msk [vmem:[%s4409_s10 + $0x58] sm:$0xff] %vm1023_vm1, %v2576_v14 }
 0x219   : > { %v2419_v1 = vpop.f32.mrf.mxu3  ;;  %2593 = vst.msk [vmem:[%s4409_s10 + $0x60] sm:$0xff] %vm1023_vm1, %v2577_v17 }
 0x21a   : > { %v2041_v12 = vpop.f32.mrf.mxu0  ;;  %v2439_v21 = vadd.f32 %v2419_v1, %v2350_v38  ;;  %2594 = vst.msk [vmem:[%s4409_s10 + $0x68] sm:$0xff] %vm1023_vm1, %v2578_v6 }
 0x21b   : > { %v2059_v49 = vadd.f32 %v2041_v12, %v4232_v24  ;;  %v2284_v24 = vpop.f32.mrf.mxu1  ;;  %2595 = vst.msk [vmem:[%s4409_s10 + $0x70] sm:$0xff] %vm1023_vm1, %v2579_v3 }
 0x21c   : > { %v2459_v55 = vadd.f32 %v4247_v20, %v2439_v21  ;;  %2596 = vst.msk [vmem:[%s4409_s10 + $0x78] sm:$0xff] %vm1023_vm1, %v2580_v29 }
 0x21d   : > { %v2079_v50 = vadd.f32 %v4230_v22, %v2059_v49 }
 0x21e   : > { %2475 = vst.msk [vmem:[%s4255_s0 + $0x70] sm:$0xff] %vm1023_vm1, %v2459_v55  ;;  %v2352_v22 = vpop.f32.mrf.mxu2 }
 0x21f   : > { %2095 = vst.msk [vmem:[%s4239_s11 + $0x78] sm:$0xff] %vm1023_vm1, %v2079_v50  ;;  %v2353_v7 = vadd.f32 %v2352_v22, %v2284_v24 }
 0x221   : > { %v2422_v36 = vpop.f32.mrf.mxu3 }
 0x222   : > { %v2440_v46 = vadd.f32 %v2422_v36, %v2353_v7 }
 0x224   : > { %v2460_v56 = vadd.f32 %v4247_v20, %v2440_v46 }
 0x226   : > { %2476 = vst.msk [vmem:[%s4255_s0 + $0x78] sm:$0xff] %vm1023_vm1, %v2460_v56 }
 0x227 PF: > { %s38_s7 = sadd.s32 1, %s3070_s7  }
 0x228   : > { %p35_p4 = scmp.ge.s32.totalorder %s38_s7, 4  }
 0x22a   :  { %37 = sbr.rel (!%p35_p4) target bundleno = 13 (0xd), region = 210 }

// kernel: msftcn_forward.9
= control target key start
LH: loop header
LB: loop body
LE: loop exit
PB: predicated region body
PF: predicated region fallthrough
CT: control target
= control target key end

     0   :  { %vm118_vm0 = vcmask 97280   ;;  %s475_s0 = inlined_call_operand.vmem [shape: f32[256,12], index: 0, kind: input, shape index: {}]   ;;  %s476_s1 = inlined_call_operand.vmem [shape: f32[1,12], index: 1, kind: input, shape index: {}]   ;;  %s477_s2 = inlined_call_operand.vmem [shape: f32[1,12], index: 2, kind: input, shape index: {}]   ;;  %s478_s3 = inlined_call_operand.vmem [shape: f32[256,12], index: 3, kind: output, shape index: {}]  }
   0x1   :  { %v14_v0 = vld [vmem:[%s475_s0] sm:$0xff]  ;;  %v15_v3 = vld [vmem:[%s475_s0 + $0x8] sm:$0xff]  ;;  %v16_v6 = vld [vmem:[%s475_s0 + $0x10] sm:$0xff] }
   0x2   :  { %v183_v1 = vld [vmem:[%s476_s1] ss:$0 sm:$0xff]  ;;  %v17_v7 = vld [vmem:[%s475_s0 + $0x18] sm:$0xff]  ;;  %v19_v12 = vld [vmem:[%s475_s0 + $0x28] sm:$0xff] }
   0x3   :  { %v188_v2 = vld [vmem:[%s477_s2] ss:$0 sm:$0xff]  ;;  %v50_v4 = vmul.f32 %v183_v1, %v14_v0  ;;  %v51_v5 = vmul.f32 %v183_v1, %v15_v3  ;;  %v52_v9 = vmul.f32 %v183_v1, %v16_v6  ;;  %v53_v10 = vmul.f32 %v183_v1, %v17_v7  ;;  %v20_v13 = vld [vmem:[%s475_s0 + $0x30] sm:$0xff]  ;;  %v21_v14 = vld [vmem:[%s475_s0 + $0x38] sm:$0xff] }
   0x4   :  { %v18_v8 = vld [vmem:[%s475_s0 + $0x20] sm:$0xff]  ;;  %v55_v17 = vmul.f32 %v183_v1, %v19_v12  ;;  %v56_v18 = vmul.f32 %v183_v1, %v20_v13  ;;  %v23_v20 = vld [vmem:[%s475_s0 + $0x48] sm:$0xff]  ;;  %v57_v23 = vmul.f32 %v183_v1, %v21_v14  ;;  %v24_v24 = vld [vmem:[%s475_s0 + $0x50] sm:$0xff] }
   0x5   :  { %v54_v11 = vmul.f32 %v183_v1, %v18_v8  ;;  %v86_v15 = vadd.f32 %v188_v2, %v50_v4  ;;  %v87_v16 = vadd.f32 %v188_v2, %v51_v5  ;;  %v22_v19 = vld [vmem:[%s475_s0 + $0x40] sm:$0xff]  ;;  %v88_v21 = vadd.f32 %v188_v2, %v52_v9  ;;  %v25_v27 = vld [vmem:[%s475_s0 + $0x58] sm:$0xff]  ;;  %v27_v33 = vld [vmem:[%s475_s0 + $0x68] sm:$0xff] }
   0x6   :  { %v89_v22 = vadd.f32 %v188_v2, %v53_v10  ;;  %v58_v26 = vmul.f32 %v183_v1, %v22_v19  ;;  %v91_v28 = vadd.f32 %v188_v2, %v55_v17  ;;  %v59_v29 = vmul.f32 %v183_v1, %v23_v20  ;;  %v26_v30 = vld [vmem:[%s475_s0 + $0x60] sm:$0xff]  ;;  %v28_v36 = vld [vmem:[%s475_s0 + $0x70] sm:$0xff]  ;;  %v29_v39 = vld [vmem:[%s475_s0 + $0x78] sm:$0xff] }
   0x7   :  { %119 = vst.msk [vmem:[%s478_s3] sm:$0xff] %vm118_vm0, %v86_v15  ;;  %v90_v25 = vadd.f32 %v188_v2, %v54_v11  ;;  %v92_v31 = vadd.f32 %v188_v2, %v56_v18  ;;  %v60_v32 = vmul.f32 %v183_v1, %v24_v24  ;;  %v93_v34 = vadd.f32 %v188_v2, %v57_v23  ;;  %v30_v42 = vld [vmem:[%s475_s0 + $0x80] sm:$0xff]  ;;  %v31_v45 = vld [vmem:[%s475_s0 + $0x88] sm:$0xff]  ;;  %v32_v48 = vld [vmem:[%s475_s0 + $0x90] sm:$0xff] }
   0x8   :  { %120 = vst.msk [vmem:[%s478_s3 + $0x8] sm:$0xff] %vm118_vm0, %v87_v16  ;;  %v61_v35 = vmul.f32 %v183_v1, %v25_v27  ;;  %v94_v37 = vadd.f32 %v188_v2, %v58_v26  ;;  %v62_v38 = vmul.f32 %v183_v1, %v26_v30  ;;  %v95_v40 = vadd.f32 %v188_v2, %v59_v29  ;;  %v33_v51 = vld [vmem:[%s475_s0 + $0x98] sm:$0xff]  ;;  %v34_v54 = vld [vmem:[%s475_s0 + $0xa0] sm:$0xff]  ;;  %v35_v57 = vld [vmem:[%s475_s0 + $0xa8] sm:$0xff] }
   0x9   :  { %121 = vst.msk [vmem:[%s478_s3 + $0x10] sm:$0xff] %vm118_vm0, %v88_v21  ;;  %v63_v41 = vmul.f32 %v183_v1, %v27_v33  ;;  %v96_v43 = vadd.f32 %v188_v2, %v60_v32  ;;  %v64_v44 = vmul.f32 %v183_v1, %v28_v36  ;;  %v65_v47 = vmul.f32 %v183_v1, %v29_v39  ;;  %v36_v60 = vld [vmem:[%s475_s0 + $0xb0] sm:$0xff]  ;;  %v37_v63 = vld [vmem:[%s475_s0 + $0xb8] sm:$0xff]  ;;  %v38_v4 = vld [vmem:[%s475_s0 + $0xc0] sm:$0xff] }
   0xa   :  { %122 = vst.msk [vmem:[%s478_s3 + $0x18] sm:$0xff] %vm118_vm0, %v89_v22  ;;  %v97_v46 = vadd.f32 %v188_v2, %v61_v35  ;;  %v98_v49 = vadd.f32 %v188_v2, %v62_v38  ;;  %v66_v50 = vmul.f32 %v183_v1, %v30_v42  ;;  %v67_v53 = vmul.f32 %v183_v1, %v31_v45  ;;  %v39_v7 = vld [vmem:[%s475_s0 + $0xc8] sm:$0xff]  ;;  %v40_v10 = vld [vmem:[%s475_s0 + $0xd0] sm:$0xff]  ;;  %v41_v13 = vld [vmem:[%s475_s0 + $0xd8] sm:$0xff] }
   0xb   :  { %123 = vst.msk [vmem:[%s478_s3 + $0x20] sm:$0xff] %vm118_vm0, %v90_v25  ;;  %v99_v52 = vadd.f32 %v188_v2, %v63_v41  ;;  %v100_v55 = vadd.f32 %v188_v2, %v64_v44  ;;  %v68_v56 = vmul.f32 %v183_v1, %v32_v48  ;;  %v101_v58 = vadd.f32 %v188_v2, %v65_v47  ;;  %v42_v16 = vld [vmem:[%s475_s0 + $0xe0] sm:$0xff]  ;;  %v43_v19 = vld [vmem:[%s475_s0 + $0xe8] sm:$0xff]  ;;  %v44_v22 = vld [vmem:[%s475_s0 + $0xf0] sm:$0xff] }
   0xc   :  { %124 = vst.msk [vmem:[%s478_s3 + $0x28] sm:$0xff] %vm118_vm0, %v91_v28  ;;  %v69_v59 = vmul.f32 %v183_v1, %v33_v51  ;;  %v102_v61 = vadd.f32 %v188_v2, %v66_v50  ;;  %v70_v62 = vmul.f32 %v183_v1, %v34_v54  ;;  %v103_v0 = vadd.f32 %v188_v2, %v67_v53  ;;  %v45_v25 = vld [vmem:[%s475_s0 + $0xf8] sm:$0xff] }
   0xd   :  { %125 = vst.msk [vmem:[%s478_s3 + $0x30] sm:$0xff] %vm118_vm0, %v92_v31  ;;  %v71_v3 = vmul.f32 %v183_v1, %v35_v57  ;;  %v104_v5 = vadd.f32 %v188_v2, %v68_v56  ;;  %v72_v6 = vmul.f32 %v183_v1, %v36_v60  ;;  %v73_v9 = vmul.f32 %v183_v1, %v37_v63 }
   0xe   :  { %126 = vst.msk [vmem:[%s478_s3 + $0x38] sm:$0xff] %vm118_vm0, %v93_v34  ;;  %v105_v8 = vadd.f32 %v188_v2, %v69_v59  ;;  %v106_v11 = vadd.f32 %v188_v2, %v70_v62  ;;  %v74_v12 = vmul.f32 %v183_v1, %v38_v4  ;;  %v75_v15 = vmul.f32 %v183_v1, %v39_v7 }
   0xf   :  { %127 = vst.msk [vmem:[%s478_s3 + $0x40] sm:$0xff] %vm118_vm0, %v94_v37  ;;  %v107_v14 = vadd.f32 %v188_v2, %v71_v3  ;;  %v108_v17 = vadd.f32 %v188_v2, %v72_v6  ;;  %v76_v18 = vmul.f32 %v183_v1, %v40_v10  ;;  %v109_v20 = vadd.f32 %v188_v2, %v73_v9 }
  0x10   :  { %128 = vst.msk [vmem:[%s478_s3 + $0x48] sm:$0xff] %vm118_vm0, %v95_v40  ;;  %v77_v21 = vmul.f32 %v183_v1, %v41_v13  ;;  %v110_v23 = vadd.f32 %v188_v2, %v74_v12  ;;  %v78_v24 = vmul.f32 %v183_v1, %v42_v16  ;;  %v111_v26 = vadd.f32 %v188_v2, %v75_v15 }
  0x11   :  { %129 = vst.msk [vmem:[%s478_s3 + $0x50] sm:$0xff] %vm118_vm0, %v96_v43  ;;  %v79_v27 = vmul.f32 %v183_v1, %v43_v19  ;;  %v112_v28 = vadd.f32 %v188_v2, %v76_v18  ;;  %v80_v29 = vmul.f32 %v183_v1, %v44_v22  ;;  %v81_v31 = vmul.f32 %v183_v1, %v45_v25 }
  0x12   :  { %130 = vst.msk [vmem:[%s478_s3 + $0x58] sm:$0xff] %vm118_vm0, %v97_v46  ;;  %v113_v30 = vadd.f32 %v188_v2, %v77_v21  ;;  %v114_v32 = vadd.f32 %v188_v2, %v78_v24 }
  0x13   :  { %131 = vst.msk [vmem:[%s478_s3 + $0x60] sm:$0xff] %vm118_vm0, %v98_v49  ;;  %v115_v33 = vadd.f32 %v188_v2, %v79_v27  ;;  %v116_v1 = vadd.f32 %v188_v2, %v80_v29  ;;  %v117_v34 = vadd.f32 %v188_v2, %v81_v31 }
  0x14   :  { %132 = vst.msk [vmem:[%s478_s3 + $0x68] sm:$0xff] %vm118_vm0, %v99_v52 }
  0x15   :  { %133 = vst.msk [vmem:[%s478_s3 + $0x70] sm:$0xff] %vm118_vm0, %v100_v55 }
  0x16   :  { %134 = vst.msk [vmem:[%s478_s3 + $0x78] sm:$0xff] %vm118_vm0, %v101_v58 }
  0x17   :  { %135 = vst.msk [vmem:[%s478_s3 + $0x80] sm:$0xff] %vm118_vm0, %v102_v61 }
  0x18   :  { %136 = vst.msk [vmem:[%s478_s3 + $0x88] sm:$0xff] %vm118_vm0, %v103_v0 }
  0x19   :  { %137 = vst.msk [vmem:[%s478_s3 + $0x90] sm:$0xff] %vm118_vm0, %v104_v5 }
  0x1a   :  { %138 = vst.msk [vmem:[%s478_s3 + $0x98] sm:$0xff] %vm118_vm0, %v105_v8 }
  0x1b   :  { %139 = vst.msk [vmem:[%s478_s3 + $0xa0] sm:$0xff] %vm118_vm0, %v106_v11 }
  0x1c   :  { %140 = vst.msk [vmem:[%s478_s3 + $0xa8] sm:$0xff] %vm118_vm0, %v107_v14 }
  0x1d   :  { %141 = vst.msk [vmem:[%s478_s3 + $0xb0] sm:$0xff] %vm118_vm0, %v108_v17 }
  0x1e   :  { %142 = vst.msk [vmem:[%s478_s3 + $0xb8] sm:$0xff] %vm118_vm0, %v109_v20 }
  0x1f   :  { %143 = vst.msk [vmem:[%s478_s3 + $0xc0] sm:$0xff] %vm118_vm0, %v110_v23 }
  0x20   :  { %144 = vst.msk [vmem:[%s478_s3 + $0xc8] sm:$0xff] %vm118_vm0, %v111_v26 }
  0x21   :  { %145 = vst.msk [vmem:[%s478_s3 + $0xd0] sm:$0xff] %vm118_vm0, %v112_v28 }
  0x22   :  { %146 = vst.msk [vmem:[%s478_s3 + $0xd8] sm:$0xff] %vm118_vm0, %v113_v30 }
  0x23   :  { %147 = vst.msk [vmem:[%s478_s3 + $0xe0] sm:$0xff] %vm118_vm0, %v114_v32 }
  0x24   :  { %148 = vst.msk [vmem:[%s478_s3 + $0xe8] sm:$0xff] %vm118_vm0, %v115_v33 }
  0x25   :  { %149 = vst.msk [vmem:[%s478_s3 + $0xf0] sm:$0xff] %vm118_vm0, %v116_v1 }
  0x26   :  { %150 = vst.msk [vmem:[%s478_s3 + $0xf8] sm:$0xff] %vm118_vm0, %v117_v34 }

// kernel: msftcn_forward.8
= control target key start
LH: loop header
LB: loop body
LE: loop exit
PB: predicated region body
PF: predicated region fallthrough
CT: control target
= control target key end

     0   :  { %vm269_vm0 = vcmask 1043456   ;;  %vm172_vm1 = vcmask 97280   ;;  %vm27_vm2 = vcmask 90112   ;;  %s1294_s3 = inlined_call_operand.vmem [shape: f32[12,12], index: 3, kind: input, shape index: {}]   ;;  %s1295_s0 = inlined_call_operand.vmem [shape: f32[256,12], index: 0, kind: input, shape index: {}]   ;;  %s1296_s1 = inlined_call_operand.vmem [shape: f32[1,12], index: 1, kind: input, shape index: {}]   ;;  %s1297_s2 = inlined_call_operand.vmem [shape: f32[1,12], index: 2, kind: input, shape index: {}]   ;;  %s1298_s4 = inlined_call_operand.vmem [shape: f32[1,12], index: 4, kind: input, shape index: {}]   ;;  %s1299_s5 = inlined_call_operand.vmem [shape: f32[256,12], index: 5, kind: output, shape index: {0}]   ;;  %s1300_s6 = inlined_call_operand.vmem [shape: f32[1,12], index: 6, kind: output, shape index: {1}]   ;;  %s1301_s7 = inlined_call_operand.vmem [shape: f32[1,12], index: 7, kind: output, shape index: {2}]  }
   0x1   :  { %v167_v0 = vld [vmem:[%s1294_s3 + $0x8] sm:$0xf]  ;;  %v166_v1 = vld [vmem:[%s1294_s3] sm:$0xff]  ;;  %v32_v23 = vld [vmem:[%s1295_s0 + $0x10] sm:$0xff] }
   0x2   :  { %v30_v2 = vld [vmem:[%s1295_s0] sm:$0xff]  ;;  %607 = vmatpush.msk.msra.mxu0 %vm269_vm0, %v167_v0  ;;  %640 = vmatpush.msk.msra.mxu1 %vm269_vm0, %v167_v0  ;;  %v31_v5 = vld [vmem:[%s1295_s0 + $0x8] sm:$0xff]  ;;  %v40_v25 = vld [vmem:[%s1295_s0 + $0x50] sm:$0xff] }
   0x3   :  { %v703_v3 = vld [vmem:[%s1296_s1] ss:$0 sm:$0xff]  ;;  %641 = vmatpush.msk.msra.mxu2 %vm269_vm0, %v167_v0  ;;  %642 = vmatpush.msk.msra.mxu3 %vm269_vm0, %v167_v0  ;;  %v39_v8 = vld [vmem:[%s1295_s0 + $0x48] sm:$0xff]  ;;  %v48_v27 = vld [vmem:[%s1295_s0 + $0x90] sm:$0xff] }
   0x4   :  { %v708_v4 = vld [vmem:[%s1297_s2] ss:$0 sm:$0xff]  ;;  %288 = vmatpush.msra.mxu0 %v166_v1  ;;  %v66_v6 = vmul.f32 %v703_v3, %v30_v2  ;;  %643 = vmatpush.msra.mxu1 %v166_v1  ;;  %v67_v12 = vmul.f32 %v703_v3, %v31_v5  ;;  %v75_v15 = vmul.f32 %v703_v3, %v39_v8  ;;  %v47_v16 = vld [vmem:[%s1295_s0 + $0x88] sm:$0xff]  ;;  %v33_v38 = vld [vmem:[%s1295_s0 + $0x18] sm:$0xff] }
   0x5   :  { %v38_v7 = vld [vmem:[%s1295_s0 + $0x40] sm:$0xff]  ;;  %644 = vmatpush.msra.mxu2 %v166_v1  ;;  %645 = vmatpush.msra.mxu3 %v166_v1  ;;  %v83_v22 = vmul.f32 %v703_v3, %v47_v16  ;;  %v68_v30 = vmul.f32 %v703_v3, %v32_v23  ;;  %v76_v32 = vmul.f32 %v703_v3, %v40_v25  ;;  %v41_v41 = vld [vmem:[%s1295_s0 + $0x58] sm:$0xff]  ;;  %v55_v44 = vld [vmem:[%s1295_s0 + $0xc8] sm:$0xff] }
   0x6   :  { %v74_v9 = vmul.f32 %v703_v3, %v38_v7  ;;  %v46_v10 = vld [vmem:[%s1295_s0 + $0x80] sm:$0xff]  ;;  %v102_v11 = vadd.f32 %v708_v4, %v66_v6  ;;  %v103_v20 = vadd.f32 %v708_v4, %v67_v12  ;;  %v111_v24 = vadd.f32 %v708_v4, %v75_v15  ;;  %v49_v43 = vld [vmem:[%s1295_s0 + $0x98] sm:$0xff]  ;;  %v56_v60 = vld [vmem:[%s1295_s0 + $0xd0] sm:$0xff] }
   0x7   :  { %v82_v13 = vmul.f32 %v703_v3, %v46_v10  ;;  %v119_v26 = vadd.f32 %v708_v4, %v83_v22  ;;  %v54_v28 = vld [vmem:[%s1295_s0 + $0xc0] sm:$0xff]  ;;  %v84_v35 = vmul.f32 %v703_v3, %v48_v27  ;;  %v104_v37 = vadd.f32 %v708_v4, %v68_v30  ;;  %v35_v10 = vld [vmem:[%s1295_s0 + $0x28] sm:$0xff] }
   0x8   :  { %v110_v14 = vadd.f32 %v708_v4, %v74_v9  ;;  %v134_v17 = vmax.f32 %v102_v11, 0.0  ;;  %v135_v29 = vmax.f32 %v103_v20, 0.0  ;;  %v143_v31 = vmax.f32 %v111_v24, 0.0  ;;  %v34_v55 = vld [vmem:[%s1295_s0 + $0x20] sm:$0xff]  ;;  %v57_v9 = vld [vmem:[%s1295_s0 + $0xd8] sm:$0xff]  ;;  %v51_v15 = vld [vmem:[%s1295_s0 + $0xa8] sm:$0xff] }
   0x9   :  { %v118_v18 = vadd.f32 %v708_v4, %v82_v13  ;;  %v90_v33 = vmul.f32 %v703_v3, %v54_v28  ;;  %v151_v34 = vmax.f32 %v119_v26, 0.0  ;;  %v112_v39 = vadd.f32 %v708_v4, %v76_v32  ;;  %v42_v57 = vld [vmem:[%s1295_s0 + $0x60] sm:$0xff]  ;;  %v43_v13 = vld [vmem:[%s1295_s0 + $0x68] sm:$0xff]  ;;  %v61_v20 = vld [vmem:[%s1295_s0 + $0xf8] sm:$0xff] }
   0xa   :  { %v142_v19 = vmax.f32 %v110_v14, 0.0  ;;  %608 = vmatmul.msk.f32.vlgmr.msra.gmra.mxu0 %vm172_vm1, %v134_v17  ;;  %v120_v42 = vadd.f32 %v708_v4, %v84_v35  ;;  %v136_v45 = vmax.f32 %v104_v37, 0.0  ;;  %v69_v46 = vmul.f32 %v703_v3, %v33_v38  ;;  %v50_v59 = vld [vmem:[%s1295_s0 + $0xa0] sm:$0xff]  ;;  %v44_v32 = vld [vmem:[%s1295_s0 + $0x70] sm:$0xff]  ;;  %v59_v38 = vld [vmem:[%s1295_s0 + $0xe8] sm:$0xff] }
   0xb   :  { %v150_v21 = vmax.f32 %v118_v18, 0.0  ;;  %v126_v36 = vadd.f32 %v708_v4, %v90_v33  ;;  %v91_v47 = vmul.f32 %v703_v3, %v55_v44  ;;  %v144_v48 = vmax.f32 %v112_v39, 0.0 }
   0xc   :  { %616 = vmatmul.msk.f32.vlgmr.msra.gmra.mxu1 %vm172_vm1, %v142_v19  ;;  %v77_v49 = vmul.f32 %v703_v3, %v41_v41  ;;  %v152_v50 = vmax.f32 %v120_v42, 0.0  ;;  %v85_v51 = vmul.f32 %v703_v3, %v49_v43  ;;  %v105_v53 = vadd.f32 %v708_v4, %v69_v46  ;;  %v58_v19 = vld [vmem:[%s1295_s0 + $0xe0] sm:$0xff]  ;;  %v37_v46 = vld [vmem:[%s1295_s0 + $0x38] sm:$0xff] }
   0xd   :  { %624 = vmatmul.msk.f32.vlgmr.msra.gmra.mxu2 %vm172_vm1, %v150_v21  ;;  %v158_v40 = vmax.f32 %v126_v36, 0.0  ;;  %v127_v52 = vadd.f32 %v708_v4, %v91_v47  ;;  %v70_v62 = vmul.f32 %v703_v3, %v34_v55  ;;  %v92_v63 = vmul.f32 %v703_v3, %v56_v60 }
   0xe   :  { %v113_v56 = vadd.f32 %v708_v4, %v77_v49  ;;  %v121_v58 = vadd.f32 %v708_v4, %v85_v51  ;;  %v137_v61 = vmax.f32 %v105_v53, 0.0  ;;  %v78_v1 = vmul.f32 %v703_v3, %v42_v57 }
   0xf   :  { %632 = vmatmul.msk.f32.vlgmr.msra.gmra.mxu3 %vm172_vm1, %v158_v40  ;;  %v159_v54 = vmax.f32 %v127_v52, 0.0  ;;  %v86_v5 = vmul.f32 %v703_v3, %v50_v59  ;;  %v128_v6 = vadd.f32 %v708_v4, %v92_v63  ;;  %v106_v7 = vadd.f32 %v708_v4, %v70_v62 }
  0x10   :  { %v145_v0 = vmax.f32 %v113_v56, 0.0  ;;  %v153_v2 = vmax.f32 %v121_v58, 0.0  ;;  %v114_v11 = vadd.f32 %v708_v4, %v78_v1  ;;  %v93_v12 = vmul.f32 %v703_v3, %v57_v9 }
  0x11   :  { %v160_v8 = vmax.f32 %v128_v6, 0.0  ;;  %v122_v14 = vadd.f32 %v708_v4, %v86_v5  ;;  %v138_v17 = vmax.f32 %v106_v7, 0.0  ;;  %v71_v18 = vmul.f32 %v703_v3, %v35_v10  ;;  %v902_v7 = vld [vmem:[%s1298_s4] ss:$0 sm:$0xff] }
  0x12   :  { %609 = vmatmul.msk.f32.gmra.mxu0 %vm172_vm1, %v135_v29  ;;  %v129_v16 = vadd.f32 %v708_v4, %v93_v12  ;;  %v146_v21 = vmax.f32 %v114_v11, 0.0  ;;  %v79_v22 = vmul.f32 %v703_v3, %v43_v13  ;;  %v87_v24 = vmul.f32 %v703_v3, %v51_v15  ;;  %v36_v29 = vld [vmem:[%s1295_s0 + $0x30] sm:$0xff] }
  0x13   :  { %v154_v23 = vmax.f32 %v122_v14, 0.0  ;;  %v94_v26 = vmul.f32 %v703_v3, %v58_v19  ;;  %v97_v27 = vmul.f32 %v703_v3, %v61_v20  ;;  %v107_v28 = vadd.f32 %v708_v4, %v71_v18 }
  0x14   :  { %617 = vmatmul.msk.f32.gmra.mxu1 %vm172_vm1, %v143_v31  ;;  %v161_v25 = vmax.f32 %v129_v16, 0.0  ;;  %v115_v30 = vadd.f32 %v708_v4, %v79_v22  ;;  %v123_v33 = vadd.f32 %v708_v4, %v87_v24  ;;  %v72_v37 = vmul.f32 %v703_v3, %v36_v29 }
  0x15   :  { %625 = vmatmul.msk.f32.gmra.mxu2 %vm172_vm1, %v151_v34  ;;  %v133_v31 = vadd.f32 %v708_v4, %v97_v27  ;;  %v52_v34 = vld [vmem:[%s1295_s0 + $0xb0] sm:$0xff]  ;;  %v130_v35 = vadd.f32 %v708_v4, %v94_v26  ;;  %v139_v36 = vmax.f32 %v107_v28, 0.0  ;;  %v80_v40 = vmul.f32 %v703_v3, %v44_v32 }
  0x16   :  { %v147_v39 = vmax.f32 %v115_v30, 0.0  ;;  %v155_v41 = vmax.f32 %v123_v33, 0.0  ;;  %v88_v42 = vmul.f32 %v703_v3, %v52_v34  ;;  %v95_v44 = vmul.f32 %v703_v3, %v59_v38 }
  0x17   :  { %633 = vmatmul.msk.f32.gmra.mxu3 %vm172_vm1, %v159_v54  ;;  %v162_v43 = vmax.f32 %v130_v35, 0.0  ;;  %v116_v47 = vadd.f32 %v708_v4, %v80_v40  ;;  %v73_v53 = vmul.f32 %v703_v3, %v37_v46  ;;  %v60_v54 = vld [vmem:[%s1295_s0 + $0xf0] sm:$0xff]  ;;  %v165_v6 = vmax.f32 %v133_v31, 0.0 }
  0x18   :  { %v124_v49 = vadd.f32 %v708_v4, %v88_v42  ;;  %v131_v51 = vadd.f32 %v708_v4, %v95_v44  ;;  %v96_v60 = vmul.f32 %v703_v3, %v60_v54 }
  0x19   :  { %v148_v55 = vmax.f32 %v116_v47, 0.0 }
  0x1a   :  { %610 = vmatmul.msk.f32.gmra.mxu0 %vm172_vm1, %v136_v45  ;;  %v108_v45 = vadd.f32 %v708_v4, %v72_v37  ;;  %v156_v57 = vmax.f32 %v124_v49, 0.0  ;;  %v163_v59 = vmax.f32 %v131_v51, 0.0 }
  0x1c   :  { %618 = vmatmul.msk.f32.gmra.mxu1 %vm172_vm1, %v144_v48  ;;  %v45_v48 = vld [vmem:[%s1295_s0 + $0x78] sm:$0xff]  ;;  %v140_v52 = vmax.f32 %v108_v45, 0.0 }
  0x1d   :  { %626 = vmatmul.msk.f32.gmra.mxu2 %vm172_vm1, %v152_v50  ;;  %v53_v50 = vld [vmem:[%s1295_s0 + $0xb8] sm:$0xff]  ;;  %v81_v56 = vmul.f32 %v703_v3, %v45_v48 }
  0x1e   :  { %v89_v58 = vmul.f32 %v703_v3, %v53_v50 }
  0x1f   :  { %634 = vmatmul.msk.f32.gmra.mxu3 %vm172_vm1, %v160_v8  ;;  %v117_v62 = vadd.f32 %v708_v4, %v81_v56 }
  0x20   :  { %v125_v63 = vadd.f32 %v708_v4, %v89_v58 }
  0x22   :  { %611 = vmatmul.msk.f32.gmra.mxu0 %vm172_vm1, %v137_v61  ;;  %v109_v61 = vadd.f32 %v708_v4, %v73_v53  ;;  %v157_v5 = vmax.f32 %v125_v63, 0.0 }
  0x24   :  { %619 = vmatmul.msk.f32.gmra.mxu1 %vm172_vm1, %v145_v0  ;;  %v132_v0 = vadd.f32 %v708_v4, %v96_v60  ;;  %v141_v1 = vmax.f32 %v109_v61, 0.0 }
  0x25   :  { %627 = vmatmul.msk.f32.gmra.mxu2 %vm172_vm1, %v153_v2  ;;  %v149_v2 = vmax.f32 %v117_v62, 0.0 }
  0x26   :  { %v164_v3 = vmax.f32 %v132_v0, 0.0 }
  0x27   :  { %635 = vmatmul.msk.f32.gmra.mxu3 %vm172_vm1, %v161_v25 }
  0x2a   :  { %612 = vmatmul.msk.f32.gmra.mxu0 %vm172_vm1, %v138_v17 }
  0x2c   :  { %620 = vmatmul.msk.f32.gmra.mxu1 %vm172_vm1, %v146_v21 }
  0x2d   :  { %628 = vmatmul.msk.f32.gmra.mxu2 %vm172_vm1, %v154_v23 }
  0x2f   :  { %636 = vmatmul.msk.f32.gmra.mxu3 %vm172_vm1, %v162_v43 }
  0x32   :  { %613 = vmatmul.msk.f32.gmra.mxu0 %vm172_vm1, %v139_v36 }
  0x34   :  { %621 = vmatmul.msk.f32.gmra.mxu1 %vm172_vm1, %v147_v39 }
  0x35   :  { %629 = vmatmul.msk.f32.gmra.mxu2 %vm172_vm1, %v155_v41 }
  0x37   :  { %637 = vmatmul.msk.f32.gmra.mxu3 %vm172_vm1, %v163_v59 }
  0x3a   :  { %614 = vmatmul.msk.f32.gmra.mxu0 %vm172_vm1, %v140_v52 }
  0x3c   :  { %622 = vmatmul.msk.f32.gmra.mxu1 %vm172_vm1, %v148_v55 }
  0x3d   :  { %630 = vmatmul.msk.f32.gmra.mxu2 %vm172_vm1, %v156_v57 }
  0x3f   :  { %638 = vmatmul.msk.f32.gmra.mxu3 %vm172_vm1, %v164_v3 }
  0x42   :  { %615 = vmatmul.msk.f32.gmra.mxu0 %vm172_vm1, %v141_v1 }
  0x44   :  { %623 = vmatmul.msk.f32.gmra.mxu1 %vm172_vm1, %v149_v2 }
  0x45   :  { %631 = vmatmul.msk.f32.gmra.mxu2 %vm172_vm1, %v157_v5 }
  0x47   :  { %639 = vmatmul.msk.f32.gmra.mxu3 %vm172_vm1, %v165_v6 }
  0x87   :  { %v290_v4 = vpop.f32.mrf.mxu0 }
  0x88   :  { %v905_v8 = vadd.f32 %v902_v7, %v290_v4 }
  0x89   :  { %v314_v9 = vpop.f32.mrf.mxu1 }
  0x8a   :  { %v908_v10 = vadd.f32 %v902_v7, %v314_v9  ;;  %386 = vst.msk [vmem:[%s1299_s5] sm:$0xff] %vm172_vm1, %v905_v8  ;;  %v492_v50 = vmul.f32 %v905_v8, %v905_v8  ;;  %v419_v53 = vsel %vm172_vm1, %v905_v8, 0.0 }
  0x8c   :  { %394 = vst.msk [vmem:[%s1299_s5 + $0x40] sm:$0xff] %vm172_vm1, %v908_v10  ;;  %v524_v57 = vsel %vm172_vm1, %v492_v50, 0.0 }
  0x8f   :  { %v293_v11 = vpop.f32.mrf.mxu0 }
  0x90   :  { %v338_v12 = vpop.f32.mrf.mxu2  ;;  %v294_v13 = vadd.f32 %v902_v7, %v293_v11 }
  0x91   :  { %v317_v14 = vpop.f32.mrf.mxu1  ;;  %v922_v15 = vadd.f32 %v902_v7, %v338_v12 }
  0x92   :  { %v925_v16 = vadd.f32 %v902_v7, %v317_v14  ;;  %387 = vst.msk [vmem:[%s1299_s5 + $0x8] sm:$0xff] %vm172_vm1, %v294_v13  ;;  %v362_v22 = vpop.f32.mrf.mxu3  ;;  %v493_v49 = vmul.f32 %v294_v13, %v294_v13  ;;  %v420_v52 = vsel %vm172_vm1, %v294_v13, 0.0 }
  0x93   :  { %402 = vst.msk [vmem:[%s1299_s5 + $0x80] sm:$0xff] %vm172_vm1, %v922_v15  ;;  %v949_v24 = vadd.f32 %v902_v7, %v362_v22  ;;  %v421_v58 = vadd.f32 %v420_v52, %v419_v53 }
  0x94   :  { %395 = vst.msk [vmem:[%s1299_s5 + $0x48] sm:$0xff] %vm172_vm1, %v925_v16  ;;  %v525_v54 = vsel %vm172_vm1, %v493_v49, 0.0  ;;  %v500_v49 = vmul.f32 %v908_v10, %v908_v10 }
  0x95   :  { %410 = vst.msk [vmem:[%s1299_s5 + $0xc0] sm:$0xff] %vm172_vm1, %v949_v24  ;;  %v526_v3 = vadd.f32 %v525_v54, %v524_v57  ;;  %v434_v54 = vsel %vm172_vm1, %v908_v10, 0.0 }
  0x96   :  { %v539_v10 = vsel %vm172_vm1, %v500_v49, 0.0 }
  0x97   :  { %v296_v17 = vpop.f32.mrf.mxu0 }
  0x98   :  { %v341_v18 = vpop.f32.mrf.mxu2  ;;  %v297_v19 = vadd.f32 %v902_v7, %v296_v17 }
  0x99   :  { %v320_v20 = vpop.f32.mrf.mxu1  ;;  %v943_v21 = vadd.f32 %v902_v7, %v341_v18 }
  0x9a   :  { %v946_v23 = vadd.f32 %v902_v7, %v320_v20  ;;  %388 = vst.msk [vmem:[%s1299_s5 + $0x10] sm:$0xff] %vm172_vm1, %v297_v19  ;;  %v365_v30 = vpop.f32.mrf.mxu3  ;;  %v494_v51 = vmul.f32 %v297_v19, %v297_v19  ;;  %v422_v55 = vsel %vm172_vm1, %v297_v19, 0.0 }
  0x9b   :  { %403 = vst.msk [vmem:[%s1299_s5 + $0x88] sm:$0xff] %vm172_vm1, %v943_v21  ;;  %v978_v32 = vadd.f32 %v902_v7, %v365_v30  ;;  %v423_v6 = vadd.f32 %v422_v55, %v421_v58  ;;  %v501_v55 = vmul.f32 %v925_v16, %v925_v16 }
  0x9c   :  { %396 = vst.msk [vmem:[%s1299_s5 + $0x50] sm:$0xff] %vm172_vm1, %v946_v23  ;;  %v527_v59 = vsel %vm172_vm1, %v494_v51, 0.0 }
  0x9d   :  { %411 = vst.msk [vmem:[%s1299_s5 + $0xc8] sm:$0xff] %vm172_vm1, %v978_v32  ;;  %v528_v13 = vadd.f32 %v527_v59, %v526_v3  ;;  %v436_v59 = vsel %vm172_vm1, %v925_v16, 0.0 }
  0x9f   :  { %v299_v25 = vpop.f32.mrf.mxu0 }
  0xa0   :  { %v344_v26 = vpop.f32.mrf.mxu2  ;;  %v300_v27 = vadd.f32 %v902_v7, %v299_v25 }
  0xa1   :  { %v323_v28 = vpop.f32.mrf.mxu1  ;;  %v972_v29 = vadd.f32 %v902_v7, %v344_v26 }
  0xa2   :  { %v975_v31 = vadd.f32 %v902_v7, %v323_v28  ;;  %389 = vst.msk [vmem:[%s1299_s5 + $0x18] sm:$0xff] %vm172_vm1, %v300_v27  ;;  %v368_v38 = vpop.f32.mrf.mxu3  ;;  %v495_v56 = vmul.f32 %v300_v27, %v300_v27  ;;  %v424_v62 = vsel %vm172_vm1, %v300_v27, 0.0 }
  0xa3   :  { %404 = vst.msk [vmem:[%s1299_s5 + $0x90] sm:$0xff] %vm172_vm1, %v972_v29  ;;  %v1007_v40 = vadd.f32 %v902_v7, %v368_v38  ;;  %v425_v14 = vadd.f32 %v424_v62, %v423_v6 }
  0xa4   :  { %397 = vst.msk [vmem:[%s1299_s5 + $0x58] sm:$0xff] %vm172_vm1, %v975_v31  ;;  %v529_v9 = vsel %vm172_vm1, %v495_v56, 0.0 }
  0xa5   :  { %412 = vst.msk [vmem:[%s1299_s5 + $0xd0] sm:$0xff] %vm172_vm1, %v1007_v40  ;;  %v530_v20 = vadd.f32 %v529_v9, %v528_v13  ;;  %v440_v13 = vsel %vm172_vm1, %v975_v31, 0.0 }
  0xa7   :  { %v302_v33 = vpop.f32.mrf.mxu0 }
  0xa8   :  { %v347_v34 = vpop.f32.mrf.mxu2  ;;  %v303_v35 = vadd.f32 %v902_v7, %v302_v33 }
  0xa9   :  { %v326_v36 = vpop.f32.mrf.mxu1  ;;  %v1001_v37 = vadd.f32 %v902_v7, %v347_v34 }
  0xaa   :  { %v1004_v39 = vadd.f32 %v902_v7, %v326_v36  ;;  %390 = vst.msk [vmem:[%s1299_s5 + $0x20] sm:$0xff] %vm172_vm1, %v303_v35  ;;  %v371_v46 = vpop.f32.mrf.mxu3  ;;  %v496_v63 = vmul.f32 %v303_v35, %v303_v35  ;;  %v426_v11 = vsel %vm172_vm1, %v303_v35, 0.0 }
  0xab   :  { %405 = vst.msk [vmem:[%s1299_s5 + $0x98] sm:$0xff] %vm172_vm1, %v1001_v37  ;;  %v1036_v48 = vadd.f32 %v902_v7, %v371_v46  ;;  %v427_v22 = vadd.f32 %v426_v11, %v425_v14 }
  0xac   :  { %398 = vst.msk [vmem:[%s1299_s5 + $0x60] sm:$0xff] %vm172_vm1, %v1004_v39  ;;  %v531_v17 = vsel %vm172_vm1, %v496_v63, 0.0 }
  0xad   :  { %413 = vst.msk [vmem:[%s1299_s5 + $0xd8] sm:$0xff] %vm172_vm1, %v1036_v48  ;;  %v532_v27 = vadd.f32 %v531_v17, %v530_v20 }
  0xaf   :  { %v305_v41 = vpop.f32.mrf.mxu0 }
  0xb0   :  { %v350_v42 = vpop.f32.mrf.mxu2  ;;  %v306_v43 = vadd.f32 %v902_v7, %v305_v41 }
  0xb1   :  { %v329_v44 = vpop.f32.mrf.mxu1  ;;  %v1030_v45 = vadd.f32 %v902_v7, %v350_v42 }
  0xb2   :  { %v1033_v47 = vadd.f32 %v902_v7, %v329_v44  ;;  %391 = vst.msk [vmem:[%s1299_s5 + $0x28] sm:$0xff] %vm172_vm1, %v306_v43  ;;  %v374_v5 = vpop.f32.mrf.mxu3  ;;  %v497_v12 = vmul.f32 %v306_v43, %v306_v43  ;;  %v428_v18 = vsel %vm172_vm1, %v306_v43, 0.0 }
  0xb3   :  { %406 = vst.msk [vmem:[%s1299_s5 + $0xa0] sm:$0xff] %vm172_vm1, %v1030_v45  ;;  %v1075_v8 = vadd.f32 %v902_v7, %v374_v5  ;;  %v429_v28 = vadd.f32 %v428_v18, %v427_v22  ;;  %v503_v5 = vmul.f32 %v975_v31, %v975_v31  ;;  %v442_v31 = vsel %vm172_vm1, %v1004_v39, 0.0 }
  0xb4   :  { %399 = vst.msk [vmem:[%s1299_s5 + $0x68] sm:$0xff] %vm172_vm1, %v1033_v47  ;;  %v533_v25 = vsel %vm172_vm1, %v497_v12, 0.0 }
  0xb5   :  { %414 = vst.msk [vmem:[%s1299_s5 + $0xe0] sm:$0xff] %vm172_vm1, %v1075_v8  ;;  %v534_v42 = vadd.f32 %v533_v25, %v532_v27  ;;  %v545_v18 = vsel %vm172_vm1, %v503_v5, 0.0 }
  0xb7   :  { %v308_v60 = vpop.f32.mrf.mxu0 }
  0xb8   :  { %v353_v61 = vpop.f32.mrf.mxu2  ;;  %v309_v0 = vadd.f32 %v902_v7, %v308_v60  ;;  %v502_v60 = vmul.f32 %v946_v23, %v946_v23 }
  0xb9   :  { %v332_v1 = vpop.f32.mrf.mxu1  ;;  %v1069_v2 = vadd.f32 %v902_v7, %v353_v61 }
  0xba   :  { %v1072_v4 = vadd.f32 %v902_v7, %v332_v1  ;;  %392 = vst.msk [vmem:[%s1299_s5 + $0x30] sm:$0xff] %vm172_vm1, %v309_v0  ;;  %v498_v19 = vmul.f32 %v309_v0, %v309_v0  ;;  %v430_v26 = vsel %vm172_vm1, %v309_v0, 0.0  ;;  %v377_v41 = vpop.f32.mrf.mxu3  ;;  %v541_v0 = vsel %vm172_vm1, %v501_v55, 0.0 }
  0xbb   :  { %407 = vst.msk [vmem:[%s1299_s5 + $0xa8] sm:$0xff] %vm172_vm1, %v1069_v2  ;;  %v431_v43 = vadd.f32 %v430_v26, %v429_v28  ;;  %v1109_v46 = vadd.f32 %v902_v7, %v377_v41  ;;  %v438_v1 = vsel %vm172_vm1, %v946_v23, 0.0  ;;  %v543_v12 = vsel %vm172_vm1, %v502_v60, 0.0 }
  0xbc   :  { %400 = vst.msk [vmem:[%s1299_s5 + $0x70] sm:$0xff] %vm172_vm1, %v1072_v4  ;;  %v535_v34 = vsel %vm172_vm1, %v498_v19, 0.0  ;;  %v504_v23 = vmul.f32 %v1004_v39, %v1004_v39  ;;  %v505_v19 = vmul.f32 %v1033_v47, %v1033_v47  ;;  %v444_v26 = vsel %vm172_vm1, %v1033_v47, 0.0 }
  0xbd   :  { %v536_v52 = vadd.f32 %v535_v34, %v534_v42  ;;  %415 = vst.msk [vmem:[%s1299_s5 + $0xe8] sm:$0xff] %vm172_vm1, %v1109_v46  ;;  %v506_v27 = vmul.f32 %v1072_v4, %v1072_v4  ;;  %v446_v39 = vsel %vm172_vm1, %v1072_v4, 0.0  ;;  %v508_v47 = vmul.f32 %v922_v15, %v922_v15 }
  0xbe   :  { %v547_v25 = vsel %vm172_vm1, %v504_v23, 0.0  ;;  %v549_v34 = vsel %vm172_vm1, %v505_v19, 0.0  ;;  %v509_v4 = vmul.f32 %v943_v21, %v943_v21  ;;  %v511_v60 = vmul.f32 %v1001_v37, %v1001_v37 }
  0xbf   :  { %v311_v30 = vpop.f32.mrf.mxu0  ;;  %v551_v49 = vsel %vm172_vm1, %v506_v27, 0.0  ;;  %v555_v55 = vsel %vm172_vm1, %v508_v47, 0.0  ;;  %v519_v47 = vmul.f32 %v1036_v48, %v1036_v48 }
  0xc0   :  { %v356_v33 = vpop.f32.mrf.mxu2  ;;  %v312_v35 = vadd.f32 %v902_v7, %v311_v30 }
  0xc1   :  { %v335_v36 = vpop.f32.mrf.mxu1  ;;  %v1105_v38 = vadd.f32 %v902_v7, %v356_v33 }
  0xc2   :  { %v336_v44 = vadd.f32 %v902_v7, %v335_v36  ;;  %393 = vst.msk [vmem:[%s1299_s5 + $0x38] sm:$0xff] %vm172_vm1, %v312_v35  ;;  %v432_v50 = vsel %vm172_vm1, %v312_v35, 0.0  ;;  %v499_v51 = vmul.f32 %v312_v35, %v312_v35  ;;  %v380_v6 = vpop.f32.mrf.mxu3 }
  0xc3   :  { %v433_v53 = vadd.f32 %v432_v50, %v431_v43  ;;  %408 = vst.msk [vmem:[%s1299_s5 + $0xb0] sm:$0xff] %vm172_vm1, %v1105_v38  ;;  %v1151_v11 = vadd.f32 %v902_v7, %v380_v6  ;;  %v561_v6 = vsel %vm172_vm1, %v511_v60, 0.0  ;;  %v514_v23 = vmul.f32 %v1105_v38, %v1105_v38 }
  0xc4   :  { %401 = vst.msk [vmem:[%s1299_s5 + $0x78] sm:$0xff] %vm172_vm1, %v336_v44  ;;  %v537_v56 = vsel %vm172_vm1, %v499_v51, 0.0  ;;  %v507_v28 = vmul.f32 %v336_v44, %v336_v44  ;;  %v448_v35 = vsel %vm172_vm1, %v336_v44, 0.0  ;;  %v650_v44 = vmov 0.0  }
  0xc5   :  { %v435_v57 = vadd.f32 %v434_v54, %v433_v53  ;;  %v538_v58 = vadd.f32 %v537_v56, %v536_v52  ;;  %416 = vst.msk [vmem:[%s1299_s5 + $0xf0] sm:$0xff] %vm172_vm1, %v1151_v11  ;;  %v510_v56 = vmul.f32 %v972_v29, %v972_v29 }
  0xc6   :  { %v553_v50 = vsel %vm172_vm1, %v507_v28, 0.0  ;;  %28 = vst.msk [vmem:[%s1300_s6] sm:$0x1] %vm27_vm2, %v650_v44 }
  0xc7   :  { %v437_v61 = vadd.f32 %v436_v59, %v435_v57  ;;  %v540_v62 = vadd.f32 %v539_v10, %v538_v58  ;;  %29 = vst.msk [vmem:[%s1301_s7] sm:$0x1] %vm27_vm2, %v650_v44  ;;  %v557_v10 = vsel %vm172_vm1, %v509_v4, 0.0  ;;  %v454_v59 = vsel %vm172_vm1, %v972_v29, 0.0 }
  0xc8   :  { %v359_v63 = vpop.f32.mrf.mxu2  ;;  %v458_v29 = vsel %vm172_vm1, %v1030_v45, 0.0  ;;  %v577_v44 = vsel %vm172_vm1, %v519_v47, 0.0 }
  0xc9   :  { %v1148_v3 = vadd.f32 %v902_v7, %v359_v63  ;;  %v542_v9 = vadd.f32 %v541_v0, %v540_v62  ;;  %v439_v16 = vadd.f32 %v438_v1, %v437_v61  ;;  %v559_v63 = vsel %vm172_vm1, %v510_v56, 0.0 }
  0xca   :  { %v383_v36 = vpop.f32.mrf.mxu3  ;;  %v512_v0 = vmul.f32 %v1030_v45, %v1030_v45  ;;  %v522_v56 = vmul.f32 %v1151_v11, %v1151_v11 }
  0xcb   :  { %409 = vst.msk [vmem:[%s1299_s5 + $0xb8] sm:$0xff] %vm172_vm1, %v1148_v3  ;;  %v441_v14 = vadd.f32 %v440_v13, %v439_v16  ;;  %v544_v17 = vadd.f32 %v543_v12, %v542_v9  ;;  %v1183_v43 = vadd.f32 %v902_v7, %v383_v36  ;;  %v450_v7 = vsel %vm172_vm1, %v922_v15, 0.0 }
  0xcc   :  { %v452_v15 = vsel %vm172_vm1, %v943_v21, 0.0  ;;  %v456_v21 = vsel %vm172_vm1, %v1001_v37, 0.0  ;;  %v513_v9 = vmul.f32 %v1069_v2, %v1069_v2  ;;  %v563_v13 = vsel %vm172_vm1, %v512_v0, 0.0 }
  0xcd   :  { %v443_v20 = vadd.f32 %v442_v31, %v441_v14  ;;  %v546_v22 = vadd.f32 %v545_v18, %v544_v17  ;;  %417 = vst.msk [vmem:[%s1299_s5 + $0xf8] sm:$0xff] %vm172_vm1, %v1183_v43  ;;  %v460_v37 = vsel %vm172_vm1, %v1069_v2, 0.0  ;;  %v515_v14 = vmul.f32 %v1148_v3, %v1148_v3 }
  0xce   :  { %v565_v45 = vsel %vm172_vm1, %v513_v9, 0.0  ;;  %v462_v31 = vsel %vm172_vm1, %v1105_v38, 0.0  ;;  %v464_v19 = vsel %vm172_vm1, %v1148_v3, 0.0  ;;  %v516_v2 = vmul.f32 %v949_v24, %v949_v24 }
  0xcf   :  { %v445_v30 = vadd.f32 %v444_v26, %v443_v20  ;;  %v548_v33 = vadd.f32 %v547_v25, %v546_v22  ;;  %v567_v25 = vsel %vm172_vm1, %v514_v23, 0.0  ;;  %v569_v26 = vsel %vm172_vm1, %v515_v14, 0.0 }
  0xd0   :  { %v517_v38 = vmul.f32 %v978_v32, %v978_v32  ;;  %v571_v3 = vsel %vm172_vm1, %v516_v2, 0.0  ;;  %v480_v60 = vsel %vm172_vm1, %v1183_v43, 0.0 }
  0xd1   :  { %v550_v41 = vadd.f32 %v549_v34, %v548_v33  ;;  %v447_v42 = vadd.f32 %v446_v39, %v445_v30  ;;  %v466_v30 = vsel %vm172_vm1, %v949_v24, 0.0  ;;  %v468_v39 = vsel %vm172_vm1, %v978_v32, 0.0 }
  0xd2   :  { %v470_v24 = vsel %vm172_vm1, %v1007_v40, 0.0  ;;  %v472_v32 = vsel %vm172_vm1, %v1036_v48, 0.0  ;;  %v476_v48 = vsel %vm172_vm1, %v1109_v46, 0.0 }
  0xd3   :  { %v552_v51 = vadd.f32 %v551_v49, %v550_v41  ;;  %v449_v52 = vadd.f32 %v448_v35, %v447_v42  ;;  %v518_v35 = vmul.f32 %v1007_v40, %v1007_v40  ;;  %v573_v42 = vsel %vm172_vm1, %v517_v38, 0.0 }
  0xd4   :  { %v474_v40 = vsel %vm172_vm1, %v1075_v8, 0.0 }
  0xd5   :  { %v451_v53 = vadd.f32 %v450_v7, %v449_v52  ;;  %v554_v54 = vadd.f32 %v553_v50, %v552_v51  ;;  %v575_v51 = vsel %vm172_vm1, %v518_v35, 0.0  ;;  %v520_v52 = vmul.f32 %v1075_v8, %v1075_v8 }
  0xd7   :  { %v453_v57 = vadd.f32 %v452_v15, %v451_v53  ;;  %v556_v58 = vadd.f32 %v555_v55, %v554_v54  ;;  %v521_v53 = vmul.f32 %v1109_v46, %v1109_v46  ;;  %v579_v15 = vsel %vm172_vm1, %v520_v52, 0.0 }
  0xd8   :  { %v583_v46 = vsel %vm172_vm1, %v522_v56, 0.0 }
  0xd9   :  { %v558_v61 = vadd.f32 %v557_v10, %v556_v58  ;;  %v455_v62 = vadd.f32 %v454_v59, %v453_v57  ;;  %v523_v57 = vmul.f32 %v1183_v43, %v1183_v43  ;;  %v581_v8 = vsel %vm172_vm1, %v521_v53, 0.0  ;;  %v418_v43 = vld [vmem:[%s1300_s6] sm:$0x1] }
  0xda   :  { %v478_v59 = vsel %vm172_vm1, %v1151_v11, 0.0 }
  0xdb   :  { %v457_v1 = vadd.f32 %v456_v21, %v455_v62  ;;  %v560_v5 = vadd.f32 %v559_v63, %v558_v61  ;;  %v585_v63 = vsel %vm172_vm1, %v523_v57, 0.0 }
  0xdd   :  { %v459_v16 = vadd.f32 %v458_v29, %v457_v1  ;;  %v562_v12 = vadd.f32 %v561_v6, %v560_v5 }
  0xdf   :  { %v461_v17 = vadd.f32 %v460_v37, %v459_v16  ;;  %v564_v18 = vadd.f32 %v563_v13, %v562_v12 }
  0xe1   :  { %v566_v20 = vadd.f32 %v565_v45, %v564_v18  ;;  %v463_v22 = vadd.f32 %v462_v31, %v461_v17  ;;  %v491_v17 = vld [vmem:[%s1301_s7] sm:$0x1] }
  0xe3   :  { %v568_v27 = vadd.f32 %v567_v25, %v566_v20  ;;  %v465_v28 = vadd.f32 %v464_v19, %v463_v22 }
  0xe5   :  { %v467_v33 = vadd.f32 %v466_v30, %v465_v28  ;;  %v570_v34 = vadd.f32 %v569_v26, %v568_v27 }
  0xe7   :  { %v469_v36 = vadd.f32 %v468_v39, %v467_v33  ;;  %v572_v41 = vadd.f32 %v571_v3, %v570_v34 }
  0xe9   :  { %v574_v49 = vadd.f32 %v573_v42, %v572_v41  ;;  %v471_v50 = vadd.f32 %v470_v24, %v469_v36 }
  0xeb   :  { %v473_v7 = vadd.f32 %v472_v32, %v471_v50  ;;  %v576_v4 = vadd.f32 %v575_v51, %v574_v49 }
  0xed   :  { %v475_v54 = vadd.f32 %v474_v40, %v473_v7  ;;  %v578_v55 = vadd.f32 %v577_v44, %v576_v4 }
  0xef   :  { %v477_v58 = vadd.f32 %v476_v48, %v475_v54  ;;  %v580_v10 = vadd.f32 %v579_v15, %v578_v55 }
  0xf1   :  { %v582_v61 = vadd.f32 %v581_v8, %v580_v10  ;;  %v479_v62 = vadd.f32 %v478_v59, %v477_v58 }
  0xf3   :  { %v584_v21 = vadd.f32 %v583_v46, %v582_v61  ;;  %v481_v0 = vadd.f32 %v480_v60, %v479_v62 }
  0xf5   :  { %v482_v1 = vrot.slane %v481_v0, 4  ;;  %v586_v5 = vadd.f32 %v585_v63, %v584_v21 }
  0xf7   :  { %v483_v6 = vadd.f32 %v482_v1, %v481_v0  ;;  %v587_v29 = vrot.slane %v586_v5, 4 }
  0xf9   :  { %v484_v9 = vrot.slane %v483_v6, 2  ;;  %v588_v16 = vadd.f32 %v587_v29, %v586_v5 }
  0xfb   :  { %v485_v12 = vadd.f32 %v484_v9, %v483_v6  ;;  %v589_v13 = vrot.slane %v588_v16, 2 }
  0xfd   :  { %v486_v11 = vrot.slane %v485_v12, 1  ;;  %v590_v37 = vadd.f32 %v589_v13, %v588_v16 }
  0xff   :  { %v487_v23 = vadd.f32 %v486_v11, %v485_v12  ;;  %v591_v14 = vrot.slane %v590_v37, 1 }
 0x101   :  { %v488_v18 = vadd.f32 %v487_v23, %v418_v43  ;;  %v592_v45 = vadd.f32 %v591_v14, %v590_v37 }
 0x103   :  { %490 = vst.msk [vmem:[%s1300_s6] sm:$0x1] %vm27_vm2, %v488_v18  ;;  %v593_v31 = vadd.f32 %v592_v45, %v491_v17 }
 0x105   :  { %594 = vst.msk [vmem:[%s1301_s7] sm:$0x1] %vm27_vm2, %v593_v31 }

</bundles_post_ra>
